<compile_context>
chip_gen: v7x
topology: tpu7x:2x2x1
jax: 0.10.0
libtpu: 0.0.40
codegen_flags: <defaults>
</compile_context>

<pallas_src>
import jax
import jax.numpy as jnp
from jax.experimental import pallas as pl
from jax.experimental.pallas import tpu as pltpu  # noqa: F401  (TPU backend)

EPS = 1e-5


def _fused_kernel(x125_ref, x119_ref, w1_ref, gb_ref, w2_ref, out_ref):
    # conv2d39 as an MXU matmul: (C_out, C_in) @ (C_in, P) -> (C_out, P).
    # x125 arrives f32 and is cast to bf16 in-kernel (no separate XLA cast op
    # or HBM round trip); accumulation is f32.
    y1 = jnp.dot(w1_ref[...], x125_ref[...].astype(jnp.bfloat16),
                 preferred_element_type=jnp.float32)            # (C, P) f32

    # BatchNorm2d with training-mode batch statistics over the P = N*H*W
    # pixel axis, biased variance (matches PyTorch's forward normalization).
    # Two-pass variance: y1 is resident, so the centered pass is ~free and
    # numerically robust.
    inv_p = 1.0 / y1.shape[1]                       # compile-time constant
    mean = jnp.sum(y1, axis=1, keepdims=True) * inv_p           # (C, 1)
    d = y1 - mean                                               # centered y1
    var = jnp.sum(d * d, axis=1, keepdims=True) * inv_p         # (C, 1)
    scale = gb_ref[:, 0:1] * jax.lax.rsqrt(var + EPS)           # gamma/std

    # normalize + affine + residual add + ReLU, all f32 on the VPU.
    z = jnp.maximum(x119_ref[...] + d * scale + gb_ref[:, 1:2], 0.0)

    # conv2d40: bf16 on the MXU, f32 accumulation.
    out_ref[...] = jnp.dot(w2_ref[...], z.astype(jnp.bfloat16),
                           preferred_element_type=jnp.float32
                           ).astype(out_ref.dtype)


@jax.jit
def fused_conv_bn_add_relu_conv(x125_nchw, x119_nchw, w1_bf16, gb, w2_bf16):
    """x*_nchw: (1, C, H, W) f32.  w*_bf16: (C_out, C_in) conv weights already
    cast to bf16 (once, at setup).  gb: (C, 2) f32 with gamma in column 0 and
    beta in column 1.  Returns (1, C, H, W) f32."""
    N, C, H, W = x125_nchw.shape
    # BN batch statistics run over all of N*H*W; for the module's N == 1 the
    # (C, P) form is a free reshape of NCHW.
    assert N == 1, "kernel is specialized to the module's batch size of 1"
    P = H * W

    x125_cp = x125_nchw.reshape(C, P)          # free reshape, stays f32
    x119_cp = x119_nchw.reshape(C, P)          # free reshape, stays f32

    full = lambda shape: pl.BlockSpec(shape, lambda: (0, 0))

    cost = pl.CostEstimate(
        flops=2 * 2 * P * C * C,                  # two (C,C)x(C,P) matmuls
        transcendentals=C,                        # rsqrt per channel
        bytes_accessed=(C * P * 4                 # x125 f32
                        + C * P * 4               # x119 f32
                        + 2 * C * C * 2           # w1, w2 bf16
                        + C * 2 * 4               # gamma/beta
                        + C * P * 4),             # output f32
    )

    out_cp = pl.pallas_call(
        _fused_kernel,
        out_shape=jax.ShapeDtypeStruct((C, P), jnp.float32),
        in_specs=[
            full((C, P)),   # x125 (f32, cast in-kernel)
            full((C, P)),   # x119 (f32 residual)
            full((C, C)),   # w1 (bf16)
            full((C, 2)),   # gamma/beta stacked (f32)
            full((C, C)),   # w2 (bf16)
        ],
        out_specs=full((C, P)),
        cost_estimate=cost,
    )(x125_cp, x119_cp, w1_bf16, gb, w2_bf16)

    return out_cp.reshape(N, C, H, W)


def _reference(x125_nchw, x119_nchw, w1, gamma, beta, w2):
    """Pure-JAX f32 reference for sanity checking."""
    N, C, H, W = x125_nchw.shape
    x125 = x125_nchw.reshape(C, H * W)
    x119 = x119_nchw.reshape(C, H * W)
    y1 = w1 @ x125
    mean = jnp.mean(y1, axis=1, keepdims=True)
    var = jnp.mean((y1 - mean) ** 2, axis=1, keepdims=True)
    y_bn = (y1 - mean) / jnp.sqrt(var + EPS) * gamma[:, None] + beta[:, None]
    z = jnp.maximum(x119 + y_bn, 0.0)
    out = w2 @ z
    return out.reshape(N, C, H, W)


if __name__ == "__main__":
    # Shapes implied by the module: N=1, C=408, spatial 14x14.
    N, C, H, W = 1, 408, 14, 14

    key = jax.random.PRNGKey(0)
    k1, k2, k3, k4, k5, k6 = jax.random.split(key, 6)

    x125 = jax.random.normal(k1, (N, C, H, W), dtype=jnp.float32)
    x119 = jax.random.normal(k2, (N, C, H, W), dtype=jnp.float32)

    # Deterministic synthetic parameters.  Conv2d(408, 408, 1, bias=False)
    # weight is (C_out, C_in, 1, 1); kept squeezed as (C_out, C_in), which is
    # exactly the matmul form needed in the (C, P) layout.
    w_std = 1.0 / jnp.sqrt(jnp.float32(C))
    w1 = jax.random.normal(k3, (C, C), dtype=jnp.float32) * w_std   # conv2d39
    w2 = jax.random.normal(k4, (C, C), dtype=jnp.float32) * w_std   # conv2d40
    gamma = 1.0 + 0.1 * jax.random.normal(k5, (C,), dtype=jnp.float32)
    beta = 0.1 * jax.random.normal(k6, (C,), dtype=jnp.float32)

    # One-time parameter prep (outside the per-call jitted path): cast the
    # reused conv weights to bf16 once, stack gamma/beta into one array.
    w1_bf16 = w1.astype(jnp.bfloat16)
    w2_bf16 = w2.astype(jnp.bfloat16)
    gb = jnp.stack([gamma, beta], axis=1)            # (C, 2) f32

    out = jax.block_until_ready(
        fused_conv_bn_add_relu_conv(x125, x119, w1_bf16, gb, w2_bf16))

    ref = _reference(x125, x119, w1, gamma, beta, w2)
    assert out.shape == (N, C, H, W)
    # bf16 matmul inputs with f32 accumulation -> slightly looser tolerance
    # than the pure-f32 reference.
    assert jnp.allclose(out, ref, rtol=5e-2, atol=5e-2), (
        "max abs err = %f" % float(jnp.max(jnp.abs(out - ref))))

    print("KERNEL_OK")
</pallas_src>

<mosaic_0001>
module attributes {stable_mosaic.version = 11 : i64} {
  func.func @_fused_kernel(%arg0: memref<408x196xf32, #tpu.memory_space<vmem>>, %arg1: memref<408x196xf32, #tpu.memory_space<vmem>>, %arg2: memref<408x408xbf16, #tpu.memory_space<vmem>>, %arg3: memref<408x2xf32, #tpu.memory_space<vmem>>, %arg4: memref<408x408xbf16, #tpu.memory_space<vmem>>, %arg5: memref<408x196xf32, #tpu.memory_space<vmem>>) attributes {dimension_semantics = [], scalar_prefetch = 0 : i64, scratch_operands = 0 : i64, tpu.core_type = #tpu.core_type<tc>} {
    %c0 = arith.constant 0 : index
    %c0_0 = arith.constant 0 : index
    %0 = vector.load %arg2[%c0, %c0_0] : memref<408x408xbf16, #tpu.memory_space<vmem>>, vector<408x408xbf16>
    %c0_1 = arith.constant 0 : index
    %c0_2 = arith.constant 0 : index
    %1 = vector.load %arg0[%c0_1, %c0_2] : memref<408x196xf32, #tpu.memory_space<vmem>>, vector<408x196xf32>
    %2 = arith.truncf %1 : vector<408x196xf32> to vector<408x196xbf16>
    %cst = arith.constant dense<0.000000e+00> : vector<408x196xf32>
    %3 = tpu.matmul %0, %2, %cst {dimension_numbers = #tpu.dot_dimension_numbers<[1], [0], [0], [1], [0, 0, 1, 1], [], []>} : vector<408x408xbf16>, vector<408x196xbf16>, vector<408x196xf32> -> vector<408x196xf32>
    %cst_3 = arith.constant dense<0.000000e+00> : vector<408xf32>
    %4 = vector.multi_reduction <add>, %3, %cst_3 [1] : vector<408x196xf32> to vector<408xf32>
    %5 = vector.shape_cast %4 : vector<408xf32> to vector<408x1xf32>
    %cst_4 = arith.constant 0.00510204071 : f32
    %6 = vector.broadcast %cst_4 : f32 to vector<408x1xf32>
    %7 = arith.mulf %5, %6 : vector<408x1xf32>
    %8 = vector.broadcast %7 : vector<408x1xf32> to vector<408x196xf32>
    %9 = arith.subf %3, %8 : vector<408x196xf32>
    %10 = arith.mulf %9, %9 : vector<408x196xf32>
    %cst_5 = arith.constant dense<0.000000e+00> : vector<408xf32>
    %11 = vector.multi_reduction <add>, %10, %cst_5 [1] : vector<408x196xf32> to vector<408xf32>
    %12 = vector.shape_cast %11 : vector<408xf32> to vector<408x1xf32>
    %cst_6 = arith.constant 0.00510204071 : f32
    %13 = vector.broadcast %cst_6 : f32 to vector<408x1xf32>
    %14 = arith.mulf %12, %13 : vector<408x1xf32>
    %c0_7 = arith.constant 0 : index
    %c0_8 = arith.constant 0 : index
    %15 = vector.load %arg3[%c0_7, %c0_8] : memref<408x2xf32, #tpu.memory_space<vmem>>, vector<408x1xf32>
    %cst_9 = arith.constant 9.99999974E-6 : f32
    %16 = vector.broadcast %cst_9 : f32 to vector<408x1xf32>
    %17 = arith.addf %14, %16 : vector<408x1xf32>
    %18 = math.rsqrt %17 : vector<408x1xf32>
    %19 = arith.mulf %15, %18 : vector<408x1xf32>
    %c0_10 = arith.constant 0 : index
    %c0_11 = arith.constant 0 : index
    %20 = vector.load %arg1[%c0_10, %c0_11] : memref<408x196xf32, #tpu.memory_space<vmem>>, vector<408x196xf32>
    %21 = vector.broadcast %19 : vector<408x1xf32> to vector<408x196xf32>
    %22 = arith.mulf %9, %21 : vector<408x196xf32>
    %23 = arith.addf %20, %22 : vector<408x196xf32>
    %c0_12 = arith.constant 0 : index
    %c1 = arith.constant 1 : index
    %24 = vector.load %arg3[%c0_12, %c1] : memref<408x2xf32, #tpu.memory_space<vmem>>, vector<408x1xf32>
    %25 = vector.broadcast %24 : vector<408x1xf32> to vector<408x196xf32>
    %26 = arith.addf %23, %25 : vector<408x196xf32>
    %cst_13 = arith.constant 0.000000e+00 : f32
    %27 = vector.broadcast %cst_13 : f32 to vector<408x196xf32>
    %28 = arith.maximumf %26, %27 : vector<408x196xf32>
    %c0_14 = arith.constant 0 : index
    %c0_15 = arith.constant 0 : index
    %29 = vector.load %arg4[%c0_14, %c0_15] : memref<408x408xbf16, #tpu.memory_space<vmem>>, vector<408x408xbf16>
    %30 = arith.truncf %28 : vector<408x196xf32> to vector<408x196xbf16>
    %cst_16 = arith.constant dense<0.000000e+00> : vector<408x196xf32>
    %31 = tpu.matmul %29, %30, %cst_16 {dimension_numbers = #tpu.dot_dimension_numbers<[1], [0], [0], [1], [0, 0, 1, 1], [], []>} : vector<408x408xbf16>, vector<408x196xbf16>, vector<408x196xf32> -> vector<408x196xf32>
    %c0_17 = arith.constant 0 : index
    %c0_18 = arith.constant 0 : index
    %32 = vector.load %arg5[%c0_17, %c0_18] : memref<408x196xf32, #tpu.memory_space<vmem>>, vector<408x196xf32>
    tpu.vector_store %arg5[%c0_17, %c0_18], %31 {strides = array<i32>} : memref<408x196xf32, #tpu.memory_space<vmem>>, vector<408x196xf32>,
    return
  }
}

</mosaic_0001>

<bundles_post_ra>
// kernel: fused_conv_bn_add_relu_conv.1
= control target key start
LH: loop header
LB: loop body
LE: loop exit
PB: predicated region body
PF: predicated region fallthrough
CT: control target
= control target key end

     0   :  { %vm844_vm0 = vcmask 1043456   ;;  %vm765_vm1 = vcmask 195584   ;;  %vm1433_vm2 = vcmask 556032   ;;  %s8973_s0 = inlined_call_operand.vmem [shape: f32[408,196], index: 0, kind: input, shape index: {}]   ;;  %s8974_s2 = inlined_call_operand.vmem [shape: bf16[408,408], index: 2, kind: input, shape index: {}]   ;;  %s8975_s3 = inlined_call_operand.vmem [shape: f32[408,2], index: 3, kind: input, shape index: {}]   ;;  %s8976_s1 = inlined_call_operand.vmem [shape: f32[408,196], index: 1, kind: input, shape index: {}]   ;;  %s8977_s4 = inlined_call_operand.vmem [shape: bf16[408,408], index: 4, kind: input, shape index: {}]   ;;  %s8978_s5 = inlined_call_operand.vmem [shape: f32[408,196], index: 5, kind: output, shape index: {}]  }
   0x1   :  { %v124_v0 = vld [vmem:[%s8973_s0 + $0x8] sm:$0xff]  ;;  %v126_v1 = vld [vmem:[%s8973_s0 + $0x18] sm:$0xff]  ;;  %v123_v2 = vld [vmem:[%s8973_s0] sm:$0xff] }
   0x2   :  { %v226_v3 = vpack.c.bf16 %v126_v1, %v124_v0  ;;  %v125_v4 = vld [vmem:[%s8973_s0 + $0x10] sm:$0xff]  ;;  %v128_v5 = vld [vmem:[%s8973_s0 + $0x28] sm:$0xff]  ;;  %v130_v6 = vld [vmem:[%s8973_s0 + $0x38] sm:$0xff] }
   0x3   :  { %v225_v7 = vpack.c.bf16 %v125_v4, %v123_v2  ;;  %v228_v8 = vpack.c.bf16 %v130_v6, %v128_v5  ;;  %v127_v9 = vld [vmem:[%s8973_s0 + $0x20] sm:$0xff]  ;;  %v129_v10 = vld [vmem:[%s8973_s0 + $0x30] sm:$0xff]  ;;  %v132_v11 = vld [vmem:[%s8973_s0 + $0x48] sm:$0xff] }
   0x4   :  { %851 = vmatprep.subr.bf16.mxu0 %v226_v3  ;;  %v134_v12 = vld [vmem:[%s8973_s0 + $0x58] sm:$0xff]  ;;  %v227_v13 = vpack.c.bf16 %v129_v10, %v127_v9  ;;  %v131_v15 = vld [vmem:[%s8973_s0 + $0x40] sm:$0xff]  ;;  %v133_v16 = vld [vmem:[%s8973_s0 + $0x50] sm:$0xff] }
   0x5   :  { %852 = vmatpush1.bf16.msra.mxu0 %v225_v7  ;;  %v230_v14 = vpack.c.bf16 %v134_v12, %v132_v11  ;;  %v136_v17 = vld [vmem:[%s8973_s0 + $0x68] sm:$0xff]  ;;  %v138_v18 = vld [vmem:[%s8973_s0 + $0x78] sm:$0xff]  ;;  %v229_v19 = vpack.c.bf16 %v133_v16, %v131_v15  ;;  %v135_v21 = vld [vmem:[%s8973_s0 + $0x60] sm:$0xff] }
   0x6   :  { %853 = vmatprep.subr.bf16.mxu0 %v228_v8  ;;  %v232_v20 = vpack.c.bf16 %v138_v18, %v136_v17  ;;  %v137_v22 = vld [vmem:[%s8973_s0 + $0x70] sm:$0xff]  ;;  %v140_v23 = vld [vmem:[%s8973_s0 + $0x88] sm:$0xff]  ;;  %v142_v24 = vld [vmem:[%s8973_s0 + $0x98] sm:$0xff] }
   0x7   :  { %v231_v25 = vpack.c.bf16 %v137_v22, %v135_v21  ;;  %v234_v26 = vpack.c.bf16 %v142_v24, %v140_v23  ;;  %v139_v27 = vld [vmem:[%s8973_s0 + $0x80] sm:$0xff]  ;;  %v141_v28 = vld [vmem:[%s8973_s0 + $0x90] sm:$0xff]  ;;  %v144_v29 = vld [vmem:[%s8973_s0 + $0xa8] sm:$0xff] }
   0x8   :  { %v146_v30 = vld [vmem:[%s8973_s0 + $0xb8] sm:$0xff]  ;;  %v233_v31 = vpack.c.bf16 %v141_v28, %v139_v27  ;;  %v143_v33 = vld [vmem:[%s8973_s0 + $0xa0] sm:$0xff]  ;;  %v145_v34 = vld [vmem:[%s8973_s0 + $0xb0] sm:$0xff] }
   0x9   :  { %854 = vmatpush1.bf16.msra.mxu0 %v227_v13  ;;  %v236_v32 = vpack.c.bf16 %v146_v30, %v144_v29  ;;  %v148_v35 = vld [vmem:[%s8973_s0 + $0xc8] sm:$0xff]  ;;  %v150_v36 = vld [vmem:[%s8973_s0 + $0xd8] sm:$0xff]  ;;  %v235_v37 = vpack.c.bf16 %v145_v34, %v143_v33  ;;  %v147_v38 = vld [vmem:[%s8973_s0 + $0xc0] sm:$0xff] }
   0xa   :  { %855 = vmatprep.subr.bf16.mxu0 %v230_v14  ;;  %v149_v39 = vld [vmem:[%s8973_s0 + $0xd0] sm:$0xff]  ;;  %v238_v40 = vpack.c.bf16 %v150_v36, %v148_v35  ;;  %v152_v41 = vld [vmem:[%s8973_s0 + $0xe8] sm:$0xff]  ;;  %v154_v42 = vld [vmem:[%s8973_s0 + $0xf8] sm:$0xff] }
   0xb   :  { %v5270_v43 = vld [vmem:[%s8974_s2 + $0x4] ss:$16 sps:$4 sm:$0xff]   ;;  %v237_v44 = vpack.c.bf16 %v149_v39, %v147_v38  ;;  %v240_v46 = vpack.c.bf16 %v154_v42, %v152_v41  ;;  %v156_v48 = vld [vmem:[%s8973_s0 + $0x108] sm:$0xff]  ;;  %v158_v49 = vld [vmem:[%s8973_s0 + $0x118] sm:$0xff] }
   0xc   :  { %v151_v45 = vld [vmem:[%s8973_s0 + $0xe0] sm:$0xff]  ;;  %883 = vmatprep.mubr.bf16.mxu0 %v5270_v43  ;;  %v153_v47 = vld [vmem:[%s8973_s0 + $0xf0] sm:$0xff]  ;;  %v242_v52 = vpack.c.bf16 %v158_v49, %v156_v48  ;;  %v160_v54 = vld [vmem:[%s8973_s0 + $0x128] sm:$0xff] }
   0xd   :  { %856 = vmatpush1.bf16.msra.mxu0 %v229_v19  ;;  %v239_v50 = vpack.c.bf16 %v153_v47, %v151_v45  ;;  %v155_v51 = vld [vmem:[%s8973_s0 + $0x100] sm:$0xff]  ;;  %v157_v53 = vld [vmem:[%s8973_s0 + $0x110] sm:$0xff]  ;;  %v162_v55 = vld [vmem:[%s8973_s0 + $0x138] sm:$0xff] }
   0xe   :  { %857 = vmatprep.subr.bf16.mxu0 %v232_v20  ;;  %v241_v56 = vpack.c.bf16 %v157_v53, %v155_v51  ;;  %v159_v57 = vld [vmem:[%s8973_s0 + $0x120] sm:$0xff]  ;;  %v244_v58 = vpack.c.bf16 %v162_v55, %v160_v54  ;;  %v161_v59 = vld [vmem:[%s8973_s0 + $0x130] sm:$0xff]  ;;  %v164_v60 = vld [vmem:[%s8973_s0 + $0x148] sm:$0xff] }
   0xf   :  { %v166_v61 = vld [vmem:[%s8973_s0 + $0x158] sm:$0xff]  ;;  %v243_v62 = vpack.c.bf16 %v161_v59, %v159_v57  ;;  %v163_v63 = vld [vmem:[%s8973_s0 + $0x140] sm:$0xff]  ;;  %v165_v1 = vld [vmem:[%s8973_s0 + $0x150] sm:$0xff] }
  0x10   :  { %v246_v0 = vpack.c.bf16 %v166_v61, %v164_v60  ;;  %v168_v2 = vld [vmem:[%s8973_s0 + $0x168] sm:$0xff]  ;;  %v170_v3 = vld [vmem:[%s8973_s0 + $0x178] sm:$0xff]  ;;  %v167_v4 = vld [vmem:[%s8973_s0 + $0x160] sm:$0xff]  ;;  %v245_v6 = vpack.c.bf16 %v165_v1, %v163_v63 }
  0x11   :  { %858 = vmatpush1.bf16.msra.mxu0 %v231_v25  ;;  %v169_v5 = vld [vmem:[%s8973_s0 + $0x170] sm:$0xff]  ;;  %v172_v7 = vld [vmem:[%s8973_s0 + $0x188] sm:$0xff]  ;;  %v174_v8 = vld [vmem:[%s8973_s0 + $0x198] sm:$0xff]  ;;  %v248_v9 = vpack.c.bf16 %v170_v3, %v168_v2 }
  0x12   :  { %859 = vmatprep.subr.bf16.mxu0 %v234_v26  ;;  %v171_v10 = vld [vmem:[%s8973_s0 + $0x180] sm:$0xff]  ;;  %v173_v11 = vld [vmem:[%s8973_s0 + $0x190] sm:$0xff]  ;;  %v247_v12 = vpack.c.bf16 %v169_v5, %v167_v4  ;;  %v176_v13 = vld [vmem:[%s8973_s0 + $0x1a8] sm:$0xff]  ;;  %v250_v15 = vpack.c.bf16 %v174_v8, %v172_v7 }
  0x13   :  { %v178_v14 = vld [vmem:[%s8973_s0 + $0x1b8] sm:$0xff]  ;;  %v175_v16 = vld [vmem:[%s8973_s0 + $0x1a0] sm:$0xff]  ;;  %v177_v17 = vld [vmem:[%s8973_s0 + $0x1b0] sm:$0xff]  ;;  %v249_v18 = vpack.c.bf16 %v173_v11, %v171_v10 }
  0x14   :  { %v180_v19 = vld [vmem:[%s8973_s0 + $0x1c8] sm:$0xff]  ;;  %v182_v20 = vld [vmem:[%s8973_s0 + $0x1d8] sm:$0xff]  ;;  %v252_v21 = vpack.c.bf16 %v178_v14, %v176_v13  ;;  %v179_v22 = vld [vmem:[%s8973_s0 + $0x1c0] sm:$0xff]  ;;  %v251_v23 = vpack.c.bf16 %v177_v17, %v175_v16 }
  0x15   :  { %860 = vmatpush1.bf16.msra.mxu0 %v233_v31  ;;  %v181_v24 = vld [vmem:[%s8973_s0 + $0x1d0] sm:$0xff]  ;;  %v184_v25 = vld [vmem:[%s8973_s0 + $0x1e8] sm:$0xff]  ;;  %v186_v26 = vld [vmem:[%s8973_s0 + $0x1f8] sm:$0xff]  ;;  %v254_v27 = vpack.c.bf16 %v182_v20, %v180_v19 }
  0x16   :  { %861 = vmatprep.subr.bf16.mxu0 %v236_v32  ;;  %v183_v28 = vld [vmem:[%s8973_s0 + $0x1e0] sm:$0xff]  ;;  %v185_v29 = vld [vmem:[%s8973_s0 + $0x1f0] sm:$0xff]  ;;  %v253_v30 = vpack.c.bf16 %v181_v24, %v179_v22  ;;  %v188_v31 = vld [vmem:[%s8973_s0 + $0x208] sm:$0xff]  ;;  %v256_v33 = vpack.c.bf16 %v186_v26, %v184_v25 }
  0x17   :  { %v190_v32 = vld [vmem:[%s8973_s0 + $0x218] sm:$0xff]  ;;  %v187_v34 = vld [vmem:[%s8973_s0 + $0x200] sm:$0xff]  ;;  %v255_v35 = vpack.c.bf16 %v185_v29, %v183_v28  ;;  %v189_v36 = vld [vmem:[%s8973_s0 + $0x210] sm:$0xff] }
  0x18   :  { %v258_v38 = vpack.c.bf16 %v190_v32, %v188_v31  ;;  %v5271_v39 = vld [vmem:[%s8974_s2 + $0x24] ss:$16 sps:$4 sm:$0xff]   ;;  %v192_v41 = vld [vmem:[%s8973_s0 + $0x228] sm:$0xff]  ;;  %v194_v42 = vld [vmem:[%s8973_s0 + $0x238] sm:$0xff] }
  0x19   :  { %862 = vmatpush1.bf16.msra.mxu0 %v235_v37  ;;  %v5268_v37 = vld [vmem:[%s8974_s2] ss:$16 sps:$4 sm:$0xff]   ;;  %v5274_v48 = vld [vmem:[%s8974_s2 + $0x44] ss:$16 sps:$4 sm:$0xff]   ;;  %v196_v53 = vld [vmem:[%s8973_s0 + $0x248] sm:$0xff] }
  0x1a   :  { %863 = vmatprep.subr.bf16.mxu0 %v238_v40  ;;  %v257_v40 = vpack.c.bf16 %v189_v36, %v187_v34  ;;  %v191_v43 = vld [vmem:[%s8973_s0 + $0x220] sm:$0xff]  ;;  %v193_v45 = vld [vmem:[%s8973_s0 + $0x230] sm:$0xff]  ;;  %v198_v54 = vld [vmem:[%s8973_s0 + $0x258] sm:$0xff] }
  0x1b   :  { %v5273_v47 = vld [vmem:[%s8974_s2 + $0x20] ss:$16 sps:$4 sm:$0xff]   ;;  %v5283_v60 = vld [vmem:[%s8974_s2 + $0xa4] ss:$16 sps:$4 sm:$0xff]   ;;  %v200_v63 = vld [vmem:[%s8973_s0 + $0x268] sm:$0xff] }
  0x1c   :  { %v5276_v49 = vld [vmem:[%s8974_s2 + $0x40] ss:$16 sps:$4 sm:$0xff]   ;;  %v5289_v3 = vld [vmem:[%s8974_s2 + $0xe4] ss:$16 sps:$4 sm:$0xff]   ;;  %v206_v10 = vld [vmem:[%s8973_s0 + $0x298] sm:$0xff] }
  0x1d   :  { %864 = vmatpush1.bf16.msra.mxu0 %v237_v44  ;;  %v260_v44 = vpack.c.bf16 %v194_v42, %v192_v41  ;;  %v5279_v51 = vld [vmem:[%s8974_s2 + $0x60] ss:$16 sps:$4 sm:$0xff]   ;;  %v5292_v8 = vld [vmem:[%s8974_s2 + $0x104] ss:$16 sps:$4 sm:$0xff]   ;;  %v210_v16 = vld [vmem:[%s8973_s0 + $0x2b8] sm:$0xff] }
  0x1e   :  { %865 = vmatprep.subr.bf16.mxu0 %v240_v46  ;;  %v259_v46 = vpack.c.bf16 %v193_v45, %v191_v43  ;;  %v195_v55 = vld [vmem:[%s8973_s0 + $0x240] sm:$0xff]  ;;  %v197_v57 = vld [vmem:[%s8973_s0 + $0x250] sm:$0xff]  ;;  %v214_v24 = vld [vmem:[%s8973_s0 + $0x2d8] sm:$0xff] }
  0x1f   :  { %v5282_v59 = vld [vmem:[%s8974_s2 + $0x80] ss:$16 sps:$4 sm:$0xff]   ;;  %v5295_v22 = vld [vmem:[%s8974_s2 + $0x124] ss:$16 sps:$4 sm:$0xff]   ;;  %v216_v29 = vld [vmem:[%s8973_s0 + $0x2e8] sm:$0xff] }
  0x20   :  { %v5285_v61 = vld [vmem:[%s8974_s2 + $0xa0] ss:$16 sps:$4 sm:$0xff]   ;;  %v5298_v36 = vld [vmem:[%s8974_s2 + $0x144] ss:$16 sps:$4 sm:$0xff]   ;;  %v224_v43 = vld [vmem:[%s8973_s0 + $0x328] sm:$0xff] }
  0x21   :  { %866 = vmatpush1.bf16.msra.mxu0 %v239_v50  ;;  %v5277_v50 = vld [vmem:[%s8974_s2 + $0x64] ss:$16 sps:$4 sm:$0xff]   ;;  %v5288_v2 = vld [vmem:[%s8974_s2 + $0xc0] ss:$16 sps:$4 sm:$0xff]   ;;  %v276_v45 = vpack.c.bf16 %v224_v43, %v224_v43  ;;  %v2173_v43 = vld [vmem:[%s8975_s3 + $0xc8] sm:$0xff] }
  0x22   :  { %867 = vmatprep.subr.bf16.mxu0 %v242_v52  ;;  %v5280_v52 = vld [vmem:[%s8974_s2 + $0x84] ss:$16 sps:$4 sm:$0xff]   ;;  %v5291_v7 = vld [vmem:[%s8974_s2 + $0xe0] ss:$16 sps:$4 sm:$0xff]  }
  0x23   :  { %v199_v4 = vld [vmem:[%s8973_s0 + $0x260] sm:$0xff]  ;;  %v201_v5 = vld [vmem:[%s8973_s0 + $0x270] sm:$0xff] }
  0x24   :  { %v205_v13 = vld [vmem:[%s8973_s0 + $0x290] sm:$0xff]  ;;  %v207_v17 = vld [vmem:[%s8973_s0 + $0x2a0] sm:$0xff] }
  0x25   :  { %868 = vmatpush1.bf16.msra.mxu0 %v241_v56  ;;  %v262_v56 = vpack.c.bf16 %v198_v54, %v196_v53  ;;  %v209_v19 = vld [vmem:[%s8973_s0 + $0x2b0] sm:$0xff]  ;;  %v211_v26 = vld [vmem:[%s8973_s0 + $0x2c0] sm:$0xff] }
  0x26   :  { %869 = vmatprep.subr.bf16.mxu0 %v244_v58  ;;  %v261_v58 = vpack.c.bf16 %v197_v57, %v195_v55  ;;  %v267_v20 = vpack.c.bf16 %v209_v19, %v207_v17  ;;  %v215_v31 = vld [vmem:[%s8973_s0 + $0x2e0] sm:$0xff]  ;;  %v221_v41 = vld [vmem:[%s8973_s0 + $0x310] sm:$0xff] }
  0x27   :  { %v5307_v53 = vld [vmem:[%s8974_s2 + $0x1a4] ss:$16 sps:$4 sm:$0xff]   ;;  %v5309_v54 = vld [vmem:[%s8974_s2 + $0x1a0] ss:$16 sps:$4 sm:$0xff]  }
  0x28   :  { %v5310_v55 = vld [vmem:[%s8974_s2 + $0x1c4] ss:$16 sps:$4 sm:$0xff]   ;;  %v5339_v19 = vld [vmem:[%s8974_s2 + $0x2e0] ss:$16 sps:$4 sm:$0xff]  }
  0x29   :  { %870 = vmatpush1.bf16.msra.mxu0 %v243_v62  ;;  %v5286_v62 = vld [vmem:[%s8974_s2 + $0xc4] ss:$16 sps:$4 sm:$0xff]  }
  0x2a   :  { %871 = vmatprep.subr.bf16.mxu0 %v246_v0  ;;  %v202_v0 = vld [vmem:[%s8973_s0 + $0x278] sm:$0xff]  ;;  %v5313_v57 = vld [vmem:[%s8974_s2 + $0x1e4] ss:$16 sps:$4 sm:$0xff]  }
  0x2b   :  { %v264_v1 = vpack.c.bf16 %v202_v0, %v200_v63  ;;  %v5322_v63 = vld [vmem:[%s8974_s2 + $0x244] ss:$16 sps:$4 sm:$0xff]   ;;  %v5324_v0 = vld [vmem:[%s8974_s2 + $0x240] ss:$16 sps:$4 sm:$0xff]  }
  0x2c   :  { %v2152_v17 = vld [vmem:[%s8975_s3 + $0x20] sm:$0xff] }
  0x2d   :  { %872 = vmatpush1.bf16.msra.mxu0 %v245_v6  ;;  %v263_v6 = vpack.c.bf16 %v201_v5, %v199_v4  ;;  %v5330_v4 = vld [vmem:[%s8974_s2 + $0x280] ss:$16 sps:$4 sm:$0xff]   ;;  %v5331_v5 = vld [vmem:[%s8974_s2 + $0x2a4] ss:$16 sps:$4 sm:$0xff]  }
  0x2e   :  { %873 = vmatprep.subr.bf16.mxu0 %v248_v9  ;;  %v204_v9 = vld [vmem:[%s8973_s0 + $0x288] sm:$0xff] }
  0x2f   :  { %v266_v11 = vpack.c.bf16 %v206_v10, %v204_v9  ;;  %v5333_v9 = vld [vmem:[%s8974_s2 + $0x2a0] ss:$16 sps:$4 sm:$0xff]   ;;  %v5334_v10 = vld [vmem:[%s8974_s2 + $0x2c4] ss:$16 sps:$4 sm:$0xff]  }
  0x31   :  { %874 = vmatpush1.bf16.msra.mxu0 %v247_v12  ;;  %v203_v12 = vld [vmem:[%s8973_s0 + $0x280] sm:$0xff] }
  0x32   :  { %875 = vmatprep.subr.bf16.mxu0 %v250_v15  ;;  %v265_v14 = vpack.c.bf16 %v205_v13, %v203_v12  ;;  %v208_v15 = vld [vmem:[%s8973_s0 + $0x2a8] sm:$0xff]  ;;  %v5336_v13 = vld [vmem:[%s8974_s2 + $0x2c0] ss:$16 sps:$4 sm:$0xff]  }
  0x33   :  { %v2153_v12 = vld [vmem:[%s8975_s3 + $0x28] sm:$0xff] }
  0x35   :  { %876 = vmatpush1.bf16.msra.mxu0 %v249_v18  ;;  %v268_v18 = vpack.c.bf16 %v210_v16, %v208_v15  ;;  %v2151_v15 = vld [vmem:[%s8975_s3 + $0x18] sm:$0xff]  ;;  %v2154_v16 = vld [vmem:[%s8975_s3 + $0x30] sm:$0xff] }
  0x36   :  { %877 = vmatprep.subr.bf16.mxu0 %v252_v21  ;;  %v5294_v21 = vld [vmem:[%s8974_s2 + $0x100] ss:$16 sps:$4 sm:$0xff]  }
  0x39   :  { %878 = vmatpush1.bf16.msra.mxu0 %v251_v23  ;;  %v212_v23 = vld [vmem:[%s8973_s0 + $0x2c8] sm:$0xff] }
  0x3a   :  { %879 = vmatprep.subr.bf16.mxu0 %v254_v27  ;;  %v270_v25 = vpack.c.bf16 %v214_v24, %v212_v23  ;;  %v213_v27 = vld [vmem:[%s8973_s0 + $0x2d0] sm:$0xff]  ;;  %v121_v23 = vld [vmem:[%s8974_s2 + $0x320] sm:$0xff] }
  0x3b   :  { %v269_v28 = vpack.c.bf16 %v213_v27, %v211_v26  ;;  %v2156_v24 = vld [vmem:[%s8975_s3 + $0x40] sm:$0xff]  ;;  %v4887_v27 = vcombine.high %v121_v23, %v121_v23 }
  0x3c   :  { %v5342_v26 = vld [vmem:[%s8974_s2 + $0x300] ss:$16 sps:$4 sm:$0xff]  }
  0x3d   :  { %880 = vmatpush1.bf16.msra.mxu0 %v253_v30  ;;  %v218_v30 = vld [vmem:[%s8973_s0 + $0x2f8] sm:$0xff] }
  0x3e   :  { %881 = vmatprep.subr.bf16.mxu0 %v256_v33  ;;  %v272_v32 = vpack.c.bf16 %v218_v30, %v216_v29  ;;  %v217_v33 = vld [vmem:[%s8973_s0 + $0x2f0] sm:$0xff]  ;;  %v2160_v30 = vld [vmem:[%s8975_s3 + $0x60] sm:$0xff] }
  0x3f   :  { %v271_v34 = vpack.c.bf16 %v217_v33, %v215_v31  ;;  %v2162_v29 = vld [vmem:[%s8975_s3 + $0x70] sm:$0xff]  ;;  %v2165_v31 = vld [vmem:[%s8975_s3 + $0x88] sm:$0xff] }
  0x40   :  { %v5347_v33 = vld [vmem:[%s8974_s2 + $0xc] ss:$16 sps:$4 sm:$0xff]  }
  0x41   :  { %882 = vmatpush1.bf16.msra.mxu0 %v255_v35  ;;  %v5297_v35 = vld [vmem:[%s8974_s2 + $0x120] ss:$16 sps:$4 sm:$0xff]  }
  0x42   :  { %1142 = vmatprep.subr.bf16.mxu0 %v258_v38  ;;  %v222_v38 = vld [vmem:[%s8973_s0 + $0x318] sm:$0xff] }
  0x44   :  { %884 = vmatmul.mubr.bf16.vlgmr.msra.gmra.mrb[0].mxu0 %v5268_v37  ;;  %v220_v37 = vld [vmem:[%s8973_s0 + $0x308] sm:$0xff] }
  0x45   :  { %893 = vmatprep.mubr.bf16.mxu0 %v5271_v39  ;;  %1143 = vmatpush1.bf16.msra.mxu0 %v257_v40  ;;  %v274_v39 = vpack.c.bf16 %v222_v38, %v220_v37  ;;  %v219_v40 = vld [vmem:[%s8973_s0 + $0x300] sm:$0xff]  ;;  %v2169_v37 = vld [vmem:[%s8975_s3 + $0xa8] sm:$0xff] }
  0x46   :  { %1144 = vmatprep.subr.bf16.mxu0 %v260_v44  ;;  %v273_v42 = vpack.c.bf16 %v221_v41, %v219_v40  ;;  %v223_v44 = vld [vmem:[%s8973_s0 + $0x320] sm:$0xff]  ;;  %v5345_v38 = vld [vmem:[%s8974_s2 + $0x8] ss:$16 sps:$4 sm:$0xff]   ;;  %v2170_v41 = vld [vmem:[%s8975_s3 + $0xb0] sm:$0xff] }
  0x47   :  { %v2167_v40 = vld [vmem:[%s8975_s3 + $0x98] sm:$0xff] }
  0x49   :  { %1145 = vmatpush1.bf16.msra.mxu0 %v259_v46  ;;  %v275_v46 = vpack.c.bf16 %v223_v44, %v223_v44  ;;  %v5350_v44 = vld [vmem:[%s8974_s2 + $0x28] ss:$16 sps:$4 sm:$0xff]  }
  0x4a   :  { %1146 = vmatprep.subr.bf16.mxu0 %v262_v56  ;;  %v5312_v56 = vld [vmem:[%s8974_s2 + $0x1c0] ss:$16 sps:$4 sm:$0xff]  }
  0x4c   :  { %894 = vmatmul.mubr.bf16.gmra.mrb[4].mxu0 %v5273_v47  ;;  %v846_v47 = vsel %vm844_vm0, %v275_v46, 0  ;;  %v2171_v46 = vld [vmem:[%s8975_s3 + $0xb8] sm:$0xff] }
  0x4d   :  { %903 = vmatprep.mubr.bf16.mxu0 %v5274_v48  ;;  %1147 = vmatpush1.bf16.msra.mxu0 %v261_v58  ;;  %v5300_v48 = vld [vmem:[%s8974_s2 + $0x140] ss:$16 sps:$4 sm:$0xff]  }
  0x4e   :  { %1148 = vmatprep.subr.bf16.mxu0 %v264_v1  ;;  %v5315_v58 = vld [vmem:[%s8974_s2 + $0x1e0] ss:$16 sps:$4 sm:$0xff]   ;;  %v5325_v1 = vld [vmem:[%s8974_s2 + $0x264] ss:$16 sps:$4 sm:$0xff]  }
  0x51   :  { %1149 = vmatpush1.bf16.msra.mxu0 %v263_v6  ;;  %v8979_v6 = vmov 1  }
  0x52   :  { %1150 = vmatprep.subr.bf16.mxu0 %v266_v11  ;;  %5258 = vset.pattern.permute.xlu1 %v8979_v6  ;;  %v2150_v11 = vld [vmem:[%s8975_s3 + $0x10] sm:$0xff] }
  0x53   :  { %5259 = vset.pattern.permute.xlu0 %v8979_v6 }
  0x54   :  { %904 = vmatmul.mubr.bf16.gmra.mrb[8].mxu0 %v5276_v49  ;;  %v5301_v49 = vld [vmem:[%s8974_s2 + $0x164] ss:$16 sps:$4 sm:$0xff]   ;;  %2930 = vperm.xlu0 %5259, %v2151_v15   ;;  %v5389_v15 = vld [vmem:[%s8974_s2 + $0x1c8] ss:$16 sps:$4 sm:$0xff]  }
  0x55   :  { %913 = vmatprep.mubr.bf16.mxu0 %v5277_v50  ;;  %1151 = vmatpush1.bf16.msra.mxu0 %v265_v14  ;;  %v5303_v50 = vld [vmem:[%s8974_s2 + $0x160] ss:$16 sps:$4 sm:$0xff]   ;;  %v5337_v14 = vld [vmem:[%s8974_s2 + $0x2e4] ss:$16 sps:$4 sm:$0xff]  }
  0x56   :  { %1152 = vmatprep.subr.bf16.mxu0 %v268_v18  ;;  %v2157_v18 = vld [vmem:[%s8975_s3 + $0x48] sm:$0xff] }
  0x58   :  { %2935 = vperm.xlu0 %5259, %v2152_v17   ;;  %v5392_v17 = vld [vmem:[%s8974_s2 + $0x1e8] ss:$16 sps:$4 sm:$0xff]  }
  0x59   :  { %1153 = vmatpush1.bf16.msra.mxu0 %v267_v20  ;;  %v5340_v20 = vld [vmem:[%s8974_s2 + $0x304] ss:$16 sps:$4 sm:$0xff]  }
  0x5a   :  { %1154 = vmatprep.subr.bf16.mxu0 %v270_v25  ;;  %v2161_v25 = vld [vmem:[%s8975_s3 + $0x68] sm:$0xff] }
  0x5c   :  { %914 = vmatmul.mubr.bf16.gmra.mrb[12].mxu0 %v5279_v51  ;;  %v5304_v51 = vld [vmem:[%s8974_s2 + $0x184] ss:$16 sps:$4 sm:$0xff]  }
  0x5d   :  { %923 = vmatprep.mubr.bf16.mxu0 %v5280_v52  ;;  %1155 = vmatpush1.bf16.msra.mxu0 %v269_v28  ;;  %v5306_v52 = vld [vmem:[%s8974_s2 + $0x180] ss:$16 sps:$4 sm:$0xff]   ;;  %v2159_v28 = vld [vmem:[%s8975_s3 + $0x58] sm:$0xff] }
  0x5e   :  { %1156 = vmatprep.subr.bf16.mxu0 %v272_v32  ;;  %v4886_v32 = vcombine.low %v121_v23, %v121_v23  ;;  %v5401_v23 = vld [vmem:[%s8974_s2 + $0x248] ss:$16 sps:$4 sm:$0xff]  }
  0x61   :  { %1157 = vmatpush1.bf16.msra.mxu0 %v271_v34  ;;  %v2163_v34 = vld [vmem:[%s8975_s3 + $0x78] sm:$0xff] }
  0x62   :  { %1158 = vmatprep.subr.bf16.mxu0 %v274_v39  ;;  %v5348_v39 = vld [vmem:[%s8974_s2 + $0x2c] ss:$16 sps:$4 sm:$0xff]  }
  0x64   :  { %924 = vmatmul.mubr.bf16.gmra.mrb[16].mxu0 %v5282_v59  ;;  %v5316_v59 = vld [vmem:[%s8974_s2 + $0x204] ss:$16 sps:$4 sm:$0xff]  }
  0x65   :  { %933 = vmatprep.mubr.bf16.mxu0 %v5283_v60  ;;  %1159 = vmatpush1.bf16.msra.mxu0 %v273_v42  ;;  %v5318_v60 = vld [vmem:[%s8974_s2 + $0x200] ss:$16 sps:$4 sm:$0xff]  }
  0x66   :  { %4890 = vmatprep.subr.msk.bf16.mxu0 %vm844_vm0, %v276_v45  ;;  %v2168_v42 = vld [vmem:[%s8975_s3 + $0xa0] sm:$0xff]  ;;  %v5351_v45 = vld [vmem:[%s8974_s2 + $0x4c] ss:$16 sps:$4 sm:$0xff]  }
  0x69   :  { %1161 = vmatpush1.bf16.msra.mxu0 %v846_v47  ;;  %v2174_v47 = vld [vmem:[%s8975_s3 + $0xd0] sm:$0xff] }
  0x6c   :  { %934 = vmatmul.mubr.bf16.gmra.mrb[20].mxu0 %v5285_v61  ;;  %v5319_v61 = vld [vmem:[%s8974_s2 + $0x224] ss:$16 sps:$4 sm:$0xff]  }
  0x6d   :  { %943 = vmatprep.mubr.bf16.mxu0 %v5286_v62  ;;  %v5321_v62 = vld [vmem:[%s8974_s2 + $0x220] ss:$16 sps:$4 sm:$0xff]  }
  0x74   :  { %944 = vmatmul.mubr.bf16.gmra.mrb[24].mxu0 %v5288_v2  ;;  %v5327_v2 = vld [vmem:[%s8974_s2 + $0x260] ss:$16 sps:$4 sm:$0xff]  }
  0x75   :  { %953 = vmatprep.mubr.bf16.mxu0 %v5289_v3  ;;  %v5328_v3 = vld [vmem:[%s8974_s2 + $0x284] ss:$16 sps:$4 sm:$0xff]  }
  0x7c   :  { %954 = vmatmul.mubr.bf16.gmra.mrb[28].mxu0 %v5291_v7  ;;  %v2148_v7 = vld [vmem:[%s8975_s3] sm:$0xff] }
  0x7d   :  { %963 = vmatprep.mubr.bf16.mxu0 %v5292_v8  ;;  %2915 = vperm.xlu1 %5258, %v2148_v7   ;;  %v2149_v8 = vld [vmem:[%s8975_s3 + $0x8] sm:$0xff] }
  0x7e   :  { %v5377_v7 = vld [vmem:[%s8974_s2 + $0x148] ss:$16 sps:$4 sm:$0xff]  }
  0x81   :  { %2920 = vperm.xlu1 %5258, %v2149_v8   ;;  %v5378_v8 = vld [vmem:[%s8974_s2 + $0x16c] ss:$16 sps:$4 sm:$0xff]  }
  0x84   :  { %964 = vmatmul.mubr.bf16.gmra.mrb[32].mxu0 %v5294_v21  ;;  %v2155_v21 = vld [vmem:[%s8975_s3 + $0x38] sm:$0xff] }
  0x85   :  { %973 = vmatprep.mubr.bf16.mxu0 %v5295_v22  ;;  %2925 = vperm.xlu1 %5258, %v2150_v11   ;;  %v2158_v22 = vld [vmem:[%s8975_s3 + $0x50] sm:$0xff]  ;;  %v5383_v11 = vld [vmem:[%s8974_s2 + $0x188] ss:$16 sps:$4 sm:$0xff]  }
  0x86   :  { %2950 = vperm.xlu0 %5259, %v2155_v21   ;;  %v5398_v21 = vld [vmem:[%s8974_s2 + $0x228] ss:$16 sps:$4 sm:$0xff]  }
  0x89   :  { %2940 = vperm.xlu1 %5258, %v2153_v12   ;;  %v5384_v12 = vld [vmem:[%s8974_s2 + $0x1ac] ss:$16 sps:$4 sm:$0xff]  }
  0x8a   :  { %2955 = vperm.xlu0 %5259, %v2156_v24   ;;  %v5402_v24 = vld [vmem:[%s8974_s2 + $0x26c] ss:$16 sps:$4 sm:$0xff]  }
  0x8c   :  { %974 = vmatmul.mubr.bf16.gmra.mrb[36].mxu0 %v5297_v35  ;;  %v2166_v35 = vld [vmem:[%s8975_s3 + $0x90] sm:$0xff] }
  0x8d   :  { %983 = vmatprep.mubr.bf16.mxu0 %v5298_v36  ;;  %2945 = vperm.xlu1 %5258, %v2154_v16   ;;  %v2164_v36 = vld [vmem:[%s8975_s3 + $0x80] sm:$0xff]  ;;  %v5390_v16 = vld [vmem:[%s8974_s2 + $0x1ec] ss:$16 sps:$4 sm:$0xff]  }
  0x8e   :  { %2970 = vperm.xlu0 %5259, %v2159_v28   ;;  %v5408_v28 = vld [vmem:[%s8974_s2 + $0x2ac] ss:$16 sps:$4 sm:$0xff]  }
  0x91   :  { %2960 = vperm.xlu1 %5258, %v2157_v18   ;;  %v5393_v18 = vld [vmem:[%s8974_s2 + $0x20c] ss:$16 sps:$4 sm:$0xff]  }
  0x92   :  { %2975 = vperm.xlu0 %5259, %v2160_v30   ;;  %v5411_v30 = vld [vmem:[%s8974_s2 + $0x2cc] ss:$16 sps:$4 sm:$0xff]  }
  0x94   :  { %984 = vmatmul.mubr.bf16.gmra.mrb[40].mxu0 %v5300_v48  ;;  %v2172_v48 = vld [vmem:[%s8975_s3 + $0xc0] sm:$0xff] }
  0x95   :  { %993 = vmatprep.mubr.bf16.mxu0 %v5301_v49  ;;  %2965 = vperm.xlu1 %5258, %v2158_v22   ;;  %v2177_v49 = vld [vmem:[%s8975_s3 + $0xe8] sm:$0xff] }
  0x96   :  { %2990 = vperm.xlu0 %5259, %v2163_v34   ;;  %v5399_v22 = vld [vmem:[%s8974_s2 + $0x24c] ss:$16 sps:$4 sm:$0xff]  }
  0x97   :  { %v5417_v34 = vld [vmem:[%s8974_s2 + $0x30c] ss:$16 sps:$4 sm:$0xff]  }
  0x99   :  { %2980 = vperm.xlu1 %5258, %v2161_v25   ;;  %v5404_v25 = vld [vmem:[%s8974_s2 + $0x268] ss:$16 sps:$4 sm:$0xff]  }
  0x9a   :  { %2995 = vperm.xlu0 %5259, %v2164_v36   ;;  %v5419_v36 = vld [vmem:[%s8974_s2 + $0x308] ss:$16 sps:$4 sm:$0xff]  }
  0x9c   :  { %994 = vmatmul.mubr.bf16.gmra.mrb[44].mxu0 %v5303_v50  ;;  %v5353_v50 = vld [vmem:[%s8974_s2 + $0x48] ss:$16 sps:$4 sm:$0xff]  }
  0x9d   :  { %1003 = vmatprep.mubr.bf16.mxu0 %v5304_v51  ;;  %2985 = vperm.xlu1 %5258, %v2162_v29   ;;  %v5354_v51 = vld [vmem:[%s8974_s2 + $0x6c] ss:$16 sps:$4 sm:$0xff]   ;;  %v5410_v29 = vld [vmem:[%s8974_s2 + $0x2a8] ss:$16 sps:$4 sm:$0xff]  }
  0x9e   :  { %3010 = vperm.xlu0 %5259, %v2167_v40  }
  0xa1   :  { %3000 = vperm.xlu1 %5258, %v2165_v31   ;;  %v5413_v31 = vld [vmem:[%s8974_s2 + $0x2c8] ss:$16 sps:$4 sm:$0xff]  }
  0xa2   :  { %3015 = vperm.xlu0 %5259, %v2168_v42  }
  0xa4   :  { %1004 = vmatmul.mubr.bf16.gmra.mrb[48].mxu0 %v5306_v52  ;;  %v2175_v52 = vld [vmem:[%s8975_s3 + $0xd8] sm:$0xff] }
  0xa5   :  { %1013 = vmatprep.mubr.bf16.mxu0 %v5307_v53  ;;  %3005 = vperm.xlu1 %5258, %v2166_v35   ;;  %v2179_v53 = vld [vmem:[%s8975_s3 + $0xf8] sm:$0xff]  ;;  %v122_v35 = vld [vmem:[%s8974_s2 + $0x328] sm:$0xff] }
  0xa6   :  { %3030 = vperm.xlu0 %5259, %v2171_v46  }
  0xa9   :  { %3020 = vperm.xlu1 %5258, %v2169_v37   ;;  %v4889_v37 = vcombine.high %v122_v35, %v122_v35 }
  0xaa   :  { %3035 = vperm.xlu0 %5259, %v2172_v48  }
  0xac   :  { %1014 = vmatmul.mubr.bf16.gmra.mrb[52].mxu0 %v5309_v54  ;;  %v2176_v54 = vld [vmem:[%s8975_s3 + $0xe0] sm:$0xff] }
  0xad   :  { %1023 = vmatprep.mubr.bf16.mxu0 %v5310_v55  ;;  %3025 = vperm.xlu1 %5258, %v2170_v41   ;;  %v5356_v55 = vld [vmem:[%s8974_s2 + $0x68] ss:$16 sps:$4 sm:$0xff]  }
  0xae   :  { %3050 = vperm.xlu0 %5259, %v2175_v52  }
  0xb1   :  { %3040 = vperm.xlu1 %5258, %v2173_v43  }
  0xb2   :  { %3055 = vperm.xlu0 %5259, %v2176_v54  }
  0xb4   :  { %1024 = vmatmul.mubr.bf16.gmra.mrb[56].mxu0 %v5312_v56  ;;  %v5357_v56 = vld [vmem:[%s8974_s2 + $0x8c] ss:$16 sps:$4 sm:$0xff]  }
  0xb5   :  { %1033 = vmatprep.mubr.bf16.mxu0 %v5313_v57  ;;  %3045 = vperm.xlu1 %5258, %v2174_v47   ;;  %v2178_v57 = vld [vmem:[%s8975_s3 + $0xf0] sm:$0xff] }
  0xb6   :  { %3065 = vperm.xlu0 %5259, %v2178_v57  }
  0xb9   :  { %3060 = vperm.xlu1 %5258, %v2177_v49  }
  0xbc   :  { %1034 = vmatmul.mubr.bf16.gmra.mrb[60].mxu0 %v5315_v58  ;;  %v5359_v58 = vld [vmem:[%s8974_s2 + $0x88] ss:$16 sps:$4 sm:$0xff]  }
  0xbd   :  { %1043 = vmatprep.mubr.bf16.mxu0 %v5316_v59  ;;  %3070 = vperm.xlu1 %5258, %v2179_v53   ;;  %v5360_v59 = vld [vmem:[%s8974_s2 + $0xac] ss:$16 sps:$4 sm:$0xff]  }
  0xc4   :  { %1044 = vmatmul.mubr.bf16.gmra.mrb[64].mxu0 %v5318_v60  ;;  %v5362_v60 = vld [vmem:[%s8974_s2 + $0xa8] ss:$16 sps:$4 sm:$0xff]  }
  0xc5   :  { %1053 = vmatprep.mubr.bf16.mxu0 %v5319_v61  ;;  %v5363_v61 = vld [vmem:[%s8974_s2 + $0xcc] ss:$16 sps:$4 sm:$0xff]  }
  0xcc   :  { %1054 = vmatmul.mubr.bf16.gmra.mrb[68].mxu0 %v5321_v62  ;;  %v5365_v62 = vld [vmem:[%s8974_s2 + $0xc8] ss:$16 sps:$4 sm:$0xff]  }
  0xcd   :  { %1063 = vmatprep.mubr.bf16.mxu0 %v5322_v63  ;;  %v5366_v63 = vld [vmem:[%s8974_s2 + $0xec] ss:$16 sps:$4 sm:$0xff]  }
  0xd4   :  { %1064 = vmatmul.mubr.bf16.gmra.mrb[72].mxu0 %v5324_v0  ;;  %v5368_v0 = vld [vmem:[%s8974_s2 + $0xe8] ss:$16 sps:$4 sm:$0xff]  }
  0xd5   :  { %1073 = vmatprep.mubr.bf16.mxu0 %v5325_v1  ;;  %v5369_v1 = vld [vmem:[%s8974_s2 + $0x10c] ss:$16 sps:$4 sm:$0xff]  }
  0xdc   :  { %1074 = vmatmul.mubr.bf16.gmra.mrb[76].mxu0 %v5327_v2  ;;  %v5371_v2 = vld [vmem:[%s8974_s2 + $0x108] ss:$16 sps:$4 sm:$0xff]  }
  0xdd   :  { %1083 = vmatprep.mubr.bf16.mxu0 %v5328_v3  ;;  %v5372_v3 = vld [vmem:[%s8974_s2 + $0x12c] ss:$16 sps:$4 sm:$0xff]  }
  0xe4   :  { %1084 = vmatmul.mubr.bf16.gmra.mrb[80].mxu0 %v5330_v4  ;;  %v5374_v4 = vld [vmem:[%s8974_s2 + $0x128] ss:$16 sps:$4 sm:$0xff]  }
  0xe5   :  { %1093 = vmatprep.mubr.bf16.mxu0 %v5331_v5  ;;  %v5375_v5 = vld [vmem:[%s8974_s2 + $0x14c] ss:$16 sps:$4 sm:$0xff]  }
  0xec   :  { %1094 = vmatmul.mubr.bf16.gmra.mrb[84].mxu0 %v5333_v9  ;;  %v5380_v9 = vld [vmem:[%s8974_s2 + $0x168] ss:$16 sps:$4 sm:$0xff]  }
  0xed   :  { %1103 = vmatprep.mubr.bf16.mxu0 %v5334_v10  ;;  %v5381_v10 = vld [vmem:[%s8974_s2 + $0x18c] ss:$16 sps:$4 sm:$0xff]  }
  0xf4   :  { %1104 = vmatmul.mubr.bf16.gmra.mrb[88].mxu0 %v5336_v13  ;;  %v5386_v13 = vld [vmem:[%s8974_s2 + $0x1a8] ss:$16 sps:$4 sm:$0xff]  }
  0xf5   :  { %1113 = vmatprep.mubr.bf16.mxu0 %v5337_v14  ;;  %v5387_v14 = vld [vmem:[%s8974_s2 + $0x1cc] ss:$16 sps:$4 sm:$0xff]  }
  0xfc   :  { %1114 = vmatmul.mubr.bf16.gmra.mrb[92].mxu0 %v5339_v19  ;;  %v5395_v19 = vld [vmem:[%s8974_s2 + $0x208] ss:$16 sps:$4 sm:$0xff]  }
  0xfd   :  { %1123 = vmatprep.mubr.bf16.mxu0 %v5340_v20  ;;  %v5396_v20 = vld [vmem:[%s8974_s2 + $0x22c] ss:$16 sps:$4 sm:$0xff]  }
 0x104   :  { %1124 = vmatmul.mubr.bf16.gmra.mrb[96].mxu0 %v5342_v26  ;;  %v5405_v26 = vld [vmem:[%s8974_s2 + $0x28c] ss:$16 sps:$4 sm:$0xff]  }
 0x105   :  { %1133 = vmatprep.mubr.bf16.mxu0 %v4887_v27  ;;  %v5407_v27 = vld [vmem:[%s8974_s2 + $0x288] ss:$16 sps:$4 sm:$0xff]  }
 0x10c   :  { %1134 = vmatmul.mubr.bf16.gmra.mrb[100].mxu0 %v4886_v32  ;;  %v5414_v32 = vld [vmem:[%s8974_s2 + $0x2ec] ss:$16 sps:$4 sm:$0xff]  }
 0x10d   :  { %4891 = vmatprep.mubr.msk.bf16.mxu0 %vm765_vm1, %v5347_v33  ;;  %v5416_v33 = vld [vmem:[%s8974_s2 + $0x2e8] ss:$16 sps:$4 sm:$0xff]  }
 0x114   :  { %1175 = vmatmul.mubr.bf16.vlgmr.msra.gmra.mrb[0].mxu0 %v5345_v38  ;;  %v4888_v38 = vcombine.low %v122_v35, %v122_v35  ;;  %v6584_v35 = vpop.permute.xlu0 %2930 }
 0x115   :  { %4892 = vmatprep.mubr.msk.bf16.mxu0 %vm765_vm1, %v5348_v39  ;;  %9103 = vst [vmem:[#allocation3_spill] sm:$0xff] %v6584_v35 }
 0x11c   :  { %1185 = vmatmul.mubr.bf16.gmra.mrb[4].mxu0 %v5350_v44 }
 0x11d   :  { %4893 = vmatprep.mubr.msk.bf16.mxu0 %vm765_vm1, %v5351_v45 }
 0x124   :  { %1195 = vmatmul.mubr.bf16.gmra.mrb[8].mxu0 %v5353_v50 }
 0x125   :  { %4894 = vmatprep.mubr.msk.bf16.mxu0 %vm765_vm1, %v5354_v51 }
 0x12c   :  { %1205 = vmatmul.mubr.bf16.gmra.mrb[12].mxu0 %v5356_v55 }
 0x12d   :  { %4895 = vmatprep.mubr.msk.bf16.mxu0 %vm765_vm1, %v5357_v56 }
 0x134   :  { %1215 = vmatmul.mubr.bf16.gmra.mrb[16].mxu0 %v5359_v58 }
 0x135   :  { %4896 = vmatprep.mubr.msk.bf16.mxu0 %vm765_vm1, %v5360_v59 }
 0x13c   :  { %1225 = vmatmul.mubr.bf16.gmra.mrb[20].mxu0 %v5362_v60 }
 0x13d   :  { %4897 = vmatprep.mubr.msk.bf16.mxu0 %vm765_vm1, %v5363_v61 }
 0x144   :  { %1235 = vmatmul.mubr.bf16.gmra.mrb[24].mxu0 %v5365_v62 }
 0x145   :  { %4898 = vmatprep.mubr.msk.bf16.mxu0 %vm765_vm1, %v5366_v63 }
 0x14c   :  { %1245 = vmatmul.mubr.bf16.gmra.mrb[28].mxu0 %v5368_v0 }
 0x14d   :  { %4899 = vmatprep.mubr.msk.bf16.mxu0 %vm765_vm1, %v5369_v1 }
 0x154   :  { %1255 = vmatmul.mubr.bf16.gmra.mrb[32].mxu0 %v5371_v2 }
 0x155   :  { %4900 = vmatprep.mubr.msk.bf16.mxu0 %vm765_vm1, %v5372_v3 }
 0x15c   :  { %1265 = vmatmul.mubr.bf16.gmra.mrb[36].mxu0 %v5374_v4 }
 0x15d   :  { %4901 = vmatprep.mubr.msk.bf16.mxu0 %vm765_vm1, %v5375_v5 }
 0x164   :  { %1275 = vmatmul.mubr.bf16.gmra.mrb[40].mxu0 %v5377_v7 }
 0x165   :  { %4902 = vmatprep.mubr.msk.bf16.mxu0 %vm765_vm1, %v5378_v8 }
 0x16c   :  { %1285 = vmatmul.mubr.bf16.gmra.mrb[44].mxu0 %v5380_v9 }
 0x16d   :  { %4903 = vmatprep.mubr.msk.bf16.mxu0 %vm765_vm1, %v5381_v10 }
 0x174   :  { %1295 = vmatmul.mubr.bf16.gmra.mrb[48].mxu0 %v5383_v11 }
 0x175   :  { %4904 = vmatprep.mubr.msk.bf16.mxu0 %vm765_vm1, %v5384_v12 }
 0x17c   :  { %1305 = vmatmul.mubr.bf16.gmra.mrb[52].mxu0 %v5386_v13 }
 0x17d   :  { %4905 = vmatprep.mubr.msk.bf16.mxu0 %vm765_vm1, %v5387_v14 }
 0x184   :  { %1315 = vmatmul.mubr.bf16.gmra.mrb[56].mxu0 %v5389_v15 }
 0x185   :  { %4906 = vmatprep.mubr.msk.bf16.mxu0 %vm765_vm1, %v5390_v16 }
 0x18c   :  { %1325 = vmatmul.mubr.bf16.gmra.mrb[60].mxu0 %v5392_v17 }
 0x18d   :  { %4907 = vmatprep.mubr.msk.bf16.mxu0 %vm765_vm1, %v5393_v18 }
 0x194   :  { %1335 = vmatmul.mubr.bf16.gmra.mrb[64].mxu0 %v5395_v19 }
 0x195   :  { %4908 = vmatprep.mubr.msk.bf16.mxu0 %vm765_vm1, %v5396_v20 }
 0x19c   :  { %1345 = vmatmul.mubr.bf16.gmra.mrb[68].mxu0 %v5398_v21 }
 0x19d   :  { %4909 = vmatprep.mubr.msk.bf16.mxu0 %vm765_vm1, %v5399_v22 }
 0x1a4   :  { %1355 = vmatmul.mubr.bf16.gmra.mrb[72].mxu0 %v5401_v23 }
 0x1a5   :  { %4910 = vmatprep.mubr.msk.bf16.mxu0 %vm765_vm1, %v5402_v24 }
 0x1ac   :  { %1365 = vmatmul.mubr.bf16.gmra.mrb[76].mxu0 %v5404_v25 }
 0x1ad   :  { %4911 = vmatprep.mubr.msk.bf16.mxu0 %vm765_vm1, %v5405_v26 }
 0x1b4   :  { %1375 = vmatmul.mubr.bf16.gmra.mrb[80].mxu0 %v5407_v27 }
 0x1b5   :  { %4912 = vmatprep.mubr.msk.bf16.mxu0 %vm765_vm1, %v5408_v28 }
 0x1bc   :  { %1385 = vmatmul.mubr.bf16.gmra.mrb[84].mxu0 %v5410_v29 }
 0x1bd   :  { %4913 = vmatprep.mubr.msk.bf16.mxu0 %vm765_vm1, %v5411_v30 }
 0x1c4   :  { %1395 = vmatmul.mubr.bf16.gmra.mrb[88].mxu0 %v5413_v31 }
 0x1c5   :  { %4914 = vmatprep.mubr.msk.bf16.mxu0 %vm765_vm1, %v5414_v32  ;;  %v6578_v32 = vpop.permute.xlu1 %2915 }
 0x1c6   :  { %9102 = vst [vmem:[#allocation2_spill] sm:$0xff] %v6578_v32 }
 0x1cc   :  { %1405 = vmatmul.mubr.bf16.gmra.mrb[92].mxu0 %v5416_v33 }
 0x1cd   :  { %4915 = vmatprep.mubr.msk.bf16.mxu0 %vm765_vm1, %v5417_v34 }
 0x1d4   :  { %1415 = vmatmul.mubr.bf16.gmra.mrb[96].mxu0 %v5419_v36 }
 0x1d5   :  { %4916 = vmatprep.mubr.msk.bf16.mxu0 %vm765_vm1, %v4889_v37 }
 0x1dc   :  { %1425 = vmatmul.mubr.bf16.gmra.mrb[100].mxu0 %v4888_v38 }
 0x1e7   :  { %v6480_v39 = vpop.f32.mrb[0].mxu0 }
 0x1e8   :  { %v6482_v40 = vpop.f32.mrb[1].mxu0 }
 0x1e9   :  { %v1434_v41 = vsel %vm1433_vm2, %v6482_v40, 0.0  ;;  %v6486_v42 = vpop.f32.mrb[2].mxu0 }
 0x1ea   :  { %v6488_v43 = vpop.f32.mrb[3].mxu0  ;;  %v1435_v44 = vadd.f32 %v1434_v41, %v6480_v39 }
 0x1eb   :  { %v1438_v45 = vsel %vm1433_vm2, %v6488_v43, 0.0 }
 0x1ec   :  { %1436 = vadd.xlane.f32.xlu0 %v1435_v44  ;;  %v1439_v46 = vadd.f32 %v1438_v45, %v6486_v42  ;;  %v6593_v44 = vpop.permute.xlu1 %2920 }
 0x1ed   :  { %9104 = vst [vmem:[#allocation4_spill] sm:$0xff] %v6593_v44 }
 0x1ef   :  { %v6494_v47 = vpop.f32.mrb[4].mxu0 }
 0x1f0   :  { %1440 = vadd.xlane.f32.xlu0 %v1439_v46  ;;  %v6496_v48 = vpop.f32.mrb[5].mxu0 }
 0x1f1   :  { %v1442_v49 = vsel %vm1433_vm2, %v6496_v48, 0.0  ;;  %v6500_v50 = vpop.f32.mrb[6].mxu0 }
 0x1f2   :  { %v6502_v51 = vpop.f32.mrb[7].mxu0  ;;  %v1443_v52 = vadd.f32 %v1442_v49, %v6494_v47  ;;  %v6598_v49 = vpop.permute.xlu0 %2935 }
 0x1f3   :  { %v1446_v53 = vsel %vm1433_vm2, %v6502_v51, 0.0  ;;  %9105 = vst [vmem:[#allocation5_spill] sm:$0xff] %v6598_v49 }
 0x1f4   :  { %1444 = vadd.xlane.f32.xlu1 %v1443_v52  ;;  %v1447_v54 = vadd.f32 %v1446_v53, %v6500_v50 }
 0x1f7   :  { %v6508_v55 = vpop.f32.mrb[8].mxu0 }
 0x1f8   :  { %1448 = vadd.xlane.f32.xlu1 %v1447_v54  ;;  %v6510_v56 = vpop.f32.mrb[9].mxu0  ;;  %v6604_v54 = vpop.permute.xlu1 %2925 }
 0x1f9   :  { %v1450_v57 = vsel %vm1433_vm2, %v6510_v56, 0.0  ;;  %v6514_v58 = vpop.f32.mrb[10].mxu0  ;;  %9106 = vst [vmem:[#allocation6_spill] sm:$0xff] %v6604_v54 }
 0x1fa   :  { %v6516_v59 = vpop.f32.mrb[11].mxu0  ;;  %v1451_v60 = vadd.f32 %v1450_v57, %v6508_v55 }
 0x1fb   :  { %v1454_v61 = vsel %vm1433_vm2, %v6516_v59, 0.0 }
 0x1fc   :  { %1452 = vadd.xlane.f32.xlu0 %v1451_v60  ;;  %v1455_v62 = vadd.f32 %v1454_v61, %v6514_v58 }
 0x1fe   :  { %1456 = vadd.xlane.f32.xlu1 %v1455_v62 }
 0x1ff   :  { %v6522_v63 = vpop.f32.mrb[12].mxu0 }
 0x200   :  { %v6524_v0 = vpop.f32.mrb[13].mxu0 }
 0x201   :  { %v1458_v1 = vsel %vm1433_vm2, %v6524_v0, 0.0  ;;  %v6528_v2 = vpop.f32.mrb[14].mxu0 }
 0x202   :  { %v6530_v3 = vpop.f32.mrb[15].mxu0  ;;  %v1459_v4 = vadd.f32 %v1458_v1, %v6522_v63 }
 0x203   :  { %v1462_v5 = vsel %vm1433_vm2, %v6530_v3, 0.0 }
 0x204   :  { %1460 = vadd.xlane.f32.xlu0 %v1459_v4  ;;  %v1463_v7 = vadd.f32 %v1462_v5, %v6528_v2  ;;  %v6616_v5 = vpop.permute.xlu0 %2950 }
 0x205   :  { %9107 = vst [vmem:[#allocation7_spill] sm:$0xff] %v6616_v5 }
 0x206   :  { %1464 = vadd.xlane.f32.xlu1 %v1463_v7  ;;  %v6618_v7 = vpop.permute.xlu1 %2940 }
 0x207   :  { %v6536_v8 = vpop.f32.mrb[16].mxu0  ;;  %9108 = vst [vmem:[#allocation8_spill] sm:$0xff] %v6618_v7 }
 0x208   :  { %v6538_v9 = vpop.f32.mrb[17].mxu0 }
 0x209   :  { %v1466_v10 = vsel %vm1433_vm2, %v6538_v9, 0.0  ;;  %v6542_v11 = vpop.f32.mrb[18].mxu0 }
 0x20a   :  { %v6544_v12 = vpop.f32.mrb[19].mxu0  ;;  %v1467_v13 = vadd.f32 %v1466_v10, %v6536_v8 }
 0x20b   :  { %v1470_v14 = vsel %vm1433_vm2, %v6544_v12, 0.0 }
 0x20c   :  { %1468 = vadd.xlane.f32.xlu0 %v1467_v13  ;;  %v1471_v15 = vadd.f32 %v1470_v14, %v6542_v11 }
 0x20e   :  { %1472 = vadd.xlane.f32.xlu1 %v1471_v15 }
 0x20f   :  { %v6550_v16 = vpop.f32.mrb[20].mxu0 }
 0x210   :  { %v6552_v17 = vpop.f32.mrb[21].mxu0 }
 0x211   :  { %v1474_v18 = vsel %vm1433_vm2, %v6552_v17, 0.0  ;;  %v6556_v19 = vpop.f32.mrb[22].mxu0 }
 0x212   :  { %v6558_v20 = vpop.f32.mrb[23].mxu0  ;;  %v1475_v21 = vadd.f32 %v1474_v18, %v6550_v16 }
 0x213   :  { %v1478_v22 = vsel %vm1433_vm2, %v6558_v20, 0.0 }
 0x214   :  { %1476 = vadd.xlane.f32.xlu0 %v1475_v21  ;;  %v1479_v23 = vadd.f32 %v1478_v22, %v6556_v19  ;;  %v6631_v22 = vpop.permute.xlu0 %2955 }
 0x215   :  { %9109 = vst [vmem:[#allocation9_spill] sm:$0xff] %v6631_v22 }
 0x216   :  { %1480 = vadd.xlane.f32.xlu1 %v1479_v23 }
 0x217   :  { %v6564_v24 = vpop.f32.mrb[24].mxu0 }
 0x218   :  { %v6566_v25 = vpop.f32.mrb[25].mxu0 }
 0x219   :  { %v1482_v26 = vsel %vm1433_vm2, %v6566_v25, 0.0  ;;  %v6570_v27 = vpop.f32.mrb[26].mxu0 }
 0x21a   :  { %v6572_v28 = vpop.f32.mrb[27].mxu0  ;;  %v1483_v29 = vadd.f32 %v1482_v26, %v6564_v24 }
 0x21b   :  { %v1486_v30 = vsel %vm1433_vm2, %v6572_v28, 0.0 }
 0x21c   :  { %1484 = vadd.xlane.f32.xlu0 %v1483_v29  ;;  %v1487_v31 = vadd.f32 %v1486_v30, %v6570_v27  ;;  %v6636_v29 = vpop.permute.xlu1 %2945 }
 0x21d   :  { %9110 = vst [vmem:[#allocation10_spill] sm:$0xff] %v6636_v29 }
 0x21e   :  { %1488 = vadd.xlane.f32.xlu1 %v1487_v31 }
 0x21f   :  { %v6580_v33 = vpop.f32.mrb[28].mxu0 }
 0x220   :  { %v6582_v34 = vpop.f32.mrb[29].mxu0 }
 0x221   :  { %v1490_v36 = vsel %vm1433_vm2, %v6582_v34, 0.0  ;;  %v6588_v37 = vpop.f32.mrb[30].mxu0 }
 0x222   :  { %v6590_v38 = vpop.f32.mrb[31].mxu0  ;;  %v1491_v41 = vadd.f32 %v1490_v36, %v6580_v33  ;;  %v6642_v36 = vpop.permute.xlu0 %2970 }
 0x223   :  { %v1494_v45 = vsel %vm1433_vm2, %v6590_v38, 0.0  ;;  %9111 = vst [vmem:[#allocation11_spill] sm:$0xff] %v6642_v36 }
 0x224   :  { %1492 = vadd.xlane.f32.xlu0 %v1491_v41  ;;  %v1495_v46 = vadd.f32 %v1494_v45, %v6588_v37 }
 0x226   :  { %1496 = vadd.xlane.f32.xlu1 %v1495_v46 }
 0x227   :  { %v6600_v52 = vpop.f32.mrb[32].mxu0 }
 0x228   :  { %v6602_v53 = vpop.f32.mrb[33].mxu0 }
 0x229   :  { %v1498_v57 = vsel %vm1433_vm2, %v6602_v53, 0.0  ;;  %v6608_v60 = vpop.f32.mrb[34].mxu0 }
 0x22a   :  { %v6610_v61 = vpop.f32.mrb[35].mxu0  ;;  %v1499_v62 = vadd.f32 %v1498_v57, %v6600_v52 }
 0x22b   :  { %v1502_v1 = vsel %vm1433_vm2, %v6610_v61, 0.0 }
 0x22c   :  { %1500 = vadd.xlane.f32.xlu0 %v1499_v62  ;;  %v1503_v4 = vadd.f32 %v1502_v1, %v6608_v60  ;;  %v6651_v62 = vpop.permute.xlu1 %2960 }
 0x22d   :  { %9112 = vst [vmem:[#allocation12_spill] sm:$0xff] %v6651_v62 }
 0x22e   :  { %1504 = vadd.xlane.f32.xlu1 %v1503_v4 }
 0x22f   :  { %v6620_v10 = vpop.f32.mrb[36].mxu0 }
 0x230   :  { %v6622_v13 = vpop.f32.mrb[37].mxu0 }
 0x231   :  { %v1506_v14 = vsel %vm1433_vm2, %v6622_v13, 0.0  ;;  %v6626_v15 = vpop.f32.mrb[38].mxu0 }
 0x232   :  { %v6628_v18 = vpop.f32.mrb[39].mxu0  ;;  %v1507_v21 = vadd.f32 %v1506_v14, %v6620_v10  ;;  %v6656_v14 = vpop.permute.xlu0 %2975 }
 0x233   :  { %v1510_v23 = vsel %vm1433_vm2, %v6628_v18, 0.0  ;;  %9113 = vst [vmem:[#allocation13_spill] sm:$0xff] %v6656_v14 }
 0x234   :  { %1508 = vadd.xlane.f32.xlu0 %v1507_v21  ;;  %v1511_v26 = vadd.f32 %v1510_v23, %v6626_v15 }
 0x236   :  { %1512 = vadd.xlane.f32.xlu1 %v1511_v26  ;;  %v6662_v26 = vpop.permute.xlu1 %2965  ;;  %v6674_v14 = vpop.permute.xlu0 %2990 }
 0x237   :  { %v6638_v30 = vpop.f32.mrb[40].mxu0  ;;  %9114 = vst [vmem:[#allocation14_spill] sm:$0xff] %v6662_v26  ;;  %9115 = vst [vmem:[#allocation15_spill] sm:$0xff] %v6674_v14 }
 0x238   :  { %v6640_v31 = vpop.f32.mrb[41].mxu0 }
 0x239   :  { %v1514_v41 = vsel %vm1433_vm2, %v6640_v31, 0.0  ;;  %v6646_v45 = vpop.f32.mrb[42].mxu0 }
 0x23a   :  { %v6648_v46 = vpop.f32.mrb[43].mxu0  ;;  %v1515_v57 = vadd.f32 %v1514_v41, %v6638_v30  ;;  %v6676_v36 = vpop.permute.xlu1 %2980 }
 0x23b   :  { %v1518_v1 = vsel %vm1433_vm2, %v6648_v46, 0.0  ;;  %9116 = vst [vmem:[#allocation16_spill] sm:$0xff] %v6676_v36  ;;  %v6689_v7 = vpop.permute.xlu0 %2995 }
 0x23c   :  { %1516 = vadd.xlane.f32.xlu0 %v1515_v57  ;;  %v1519_v4 = vadd.f32 %v1518_v1, %v6646_v45  ;;  %9118 = vst [vmem:[#allocation18_spill] sm:$0xff] %v6689_v7 }
 0x23e   :  { %1520 = vadd.xlane.f32.xlu1 %v1519_v4  ;;  %v6694_v14 = vpop.permute.xlu1 %2985 }
 0x23f   :  { %v6658_v21 = vpop.f32.mrb[44].mxu0  ;;  %9119 = vst [vmem:[#allocation19_spill] sm:$0xff] %v6694_v14  ;;  %v6700_v35 = vpop.permute.xlu0 %3010 }
 0x240   :  { %v6660_v23 = vpop.f32.mrb[45].mxu0  ;;  %9122 = vst [vmem:[#allocation22_spill] sm:$0xff] %v6700_v35 }
 0x241   :  { %v1522_v41 = vsel %vm1433_vm2, %v6660_v23, 0.0  ;;  %v6666_v6 = vpop.f32.mrb[46].mxu0 }
 0x242   :  { %v6668_v22 = vpop.f32.mrb[47].mxu0  ;;  %v1523_v57 = vadd.f32 %v1522_v41, %v6658_v21  ;;  %v6709_v44 = vpop.permute.xlu1 %3000 }
 0x243   :  { %v1526_v1 = vsel %vm1433_vm2, %v6668_v22, 0.0  ;;  %9125 = vst [vmem:[#allocation25_spill] sm:$0xff] %v6709_v44  ;;  %v6714_v14 = vpop.permute.xlu0 %3015 }
 0x244   :  { %1524 = vadd.xlane.f32.xlu0 %v1523_v57  ;;  %v1527_v4 = vadd.f32 %v1526_v1, %v6666_v6  ;;  %9126 = vst [vmem:[#allocation26_spill] sm:$0xff] %v6714_v14 }
 0x246   :  { %1528 = vadd.xlane.f32.xlu1 %v1527_v4 }
 0x247   :  { %v6678_v26 = vpop.f32.mrb[48].mxu0  ;;  %v6732_v14 = vpop.permute.xlu0 %3030 }
 0x248   :  { %v6680_v62 = vpop.f32.mrb[49].mxu0  ;;  %9132 = vst [vmem:[#allocation32_spill] sm:$0xff] %v6732_v14 }
 0x249   :  { %v1530_v5 = vsel %vm1433_vm2, %v6680_v62, 0.0  ;;  %v6684_v29 = vpop.f32.mrb[50].mxu0 }
 0x24a   :  { %v6686_v41 = vpop.f32.mrb[51].mxu0  ;;  %v1531_v57 = vadd.f32 %v1530_v5, %v6678_v26 }
 0x24b   :  { %9117 = vst [vmem:[#allocation17_spill] sm:$0xff] %v6686_v41  ;;  %v1534_v1 = vsel %vm1433_vm2, %v6686_v41, 0.0 }
 0x24c   :  { %1532 = vadd.xlane.f32.xlu0 %v1531_v57  ;;  %v1535_v4 = vadd.f32 %v1534_v1, %v6684_v29 }
 0x24e   :  { %1536 = vadd.xlane.f32.xlu1 %v1535_v4 }
 0x24f   :  { %v6696_v36 = vpop.f32.mrb[52].mxu0 }
 0x250   :  { %9120 = vst [vmem:[#allocation20_spill] sm:$0xff] %v6696_v36  ;;  %v6698_v49 = vpop.f32.mrb[53].mxu0 }
 0x251   :  { %9121 = vst [vmem:[#allocation21_spill] sm:$0xff] %v6698_v49  ;;  %v1538_v5 = vsel %vm1433_vm2, %v6698_v49, 0.0  ;;  %v6704_v54 = vpop.f32.mrb[54].mxu0  ;;  %v6720_v49 = vpop.permute.xlu1 %3005 }
 0x252   :  { %9123 = vst [vmem:[#allocation23_spill] sm:$0xff] %v6704_v54  ;;  %v6706_v7 = vpop.f32.mrb[55].mxu0  ;;  %v1539_v57 = vadd.f32 %v1538_v5, %v6696_v36  ;;  %9129 = vst [vmem:[#allocation29_spill] sm:$0xff] %v6720_v49 }
 0x253   :  { %9124 = vst [vmem:[#allocation24_spill] sm:$0xff] %v6706_v7  ;;  %v1542_v1 = vsel %vm1433_vm2, %v6706_v7, 0.0 }
 0x254   :  { %1540 = vadd.xlane.f32.xlu0 %v1539_v57  ;;  %v1543_v4 = vadd.f32 %v1542_v1, %v6704_v54 }
 0x255   :  { %v6734_v7 = vpop.permute.xlu1 %3020 }
 0x256   :  { %1544 = vadd.xlane.f32.xlu1 %v1543_v4  ;;  %9133 = vst [vmem:[#allocation33_spill] sm:$0xff] %v6734_v7 }
 0x257   :  { %v6716_v35 = vpop.f32.mrb[56].mxu0 }
 0x258   :  { %9127 = vst [vmem:[#allocation27_spill] sm:$0xff] %v6716_v35  ;;  %v6718_v32 = vpop.f32.mrb[57].mxu0 }
 0x259   :  { %9128 = vst [vmem:[#allocation28_spill] sm:$0xff] %v6718_v32  ;;  %v1546_v5 = vsel %vm1433_vm2, %v6718_v32, 0.0  ;;  %v6724_v36 = vpop.f32.mrb[58].mxu0  ;;  %v6752_v14 = vpop.permute.xlu1 %3025 }
 0x25a   :  { %9130 = vst [vmem:[#allocation30_spill] sm:$0xff] %v6724_v36  ;;  %v6726_v44 = vpop.f32.mrb[59].mxu0  ;;  %v1547_v57 = vadd.f32 %v1546_v5, %v6716_v35  ;;  %9139 = vst [vmem:[#allocation39_spill] sm:$0xff] %v6752_v14 }
 0x25b   :  { %9131 = vst [vmem:[#allocation31_spill] sm:$0xff] %v6726_v44  ;;  %v1550_v1 = vsel %vm1433_vm2, %v6726_v44, 0.0  ;;  %v6747_v44 = vpop.permute.xlu0 %3035 }
 0x25c   :  { %1548 = vadd.xlane.f32.xlu0 %v1547_v57  ;;  %v1551_v4 = vadd.f32 %v1550_v1, %v6724_v36  ;;  %9138 = vst [vmem:[#allocation38_spill] sm:$0xff] %v6747_v44 }
 0x25e   :  { %1552 = vadd.xlane.f32.xlu1 %v1551_v4 }
 0x25f   :  { %v6736_v49 = vpop.f32.mrb[60].mxu0  ;;  %v6758_v36 = vpop.permute.xlu0 %3050 }
 0x260   :  { %9134 = vst [vmem:[#allocation34_spill] sm:$0xff] %v6736_v49  ;;  %v6738_v32 = vpop.f32.mrb[61].mxu0  ;;  %9142 = vst [vmem:[#allocation42_spill] sm:$0xff] %v6758_v36 }
 0x261   :  { %9135 = vst [vmem:[#allocation35_spill] sm:$0xff] %v6738_v32  ;;  %v1554_v54 = vsel %vm1433_vm2, %v6738_v32, 0.0  ;;  %v6742_v41 = vpop.f32.mrb[62].mxu0 }
 0x262   :  { %9136 = vst [vmem:[#allocation36_spill] sm:$0xff] %v6742_v41  ;;  %v6744_v5 = vpop.f32.mrb[63].mxu0  ;;  %v1555_v57 = vadd.f32 %v1554_v54, %v6736_v49 }
 0x263   :  { %9137 = vst [vmem:[#allocation37_spill] sm:$0xff] %v6744_v5  ;;  %v1558_v1 = vsel %vm1433_vm2, %v6744_v5, 0.0  ;;  %v6767_v5 = vpop.permute.xlu1 %3040  ;;  %v6772_v14 = vpop.permute.xlu0 %3055 }
 0x264   :  { %1556 = vadd.xlane.f32.xlu0 %v1555_v57  ;;  %v1559_v4 = vadd.f32 %v1558_v1, %v6742_v41  ;;  %9145 = vst [vmem:[#allocation45_spill] sm:$0xff] %v6767_v5  ;;  %9146 = vst [vmem:[#allocation46_spill] sm:$0xff] %v6772_v14 }
 0x266   :  { %1560 = vadd.xlane.f32.xlu1 %v1559_v4 }
 0x267   :  { %v6754_v7 = vpop.f32.mrb[64].mxu0  ;;  %v6778_v41 = vpop.permute.xlu1 %3045 }
 0x268   :  { %9140 = vst [vmem:[#allocation40_spill] sm:$0xff] %v6754_v7  ;;  %v6756_v32 = vpop.f32.mrb[65].mxu0  ;;  %9149 = vst [vmem:[#allocation49_spill] sm:$0xff] %v6778_v41  ;;  %v6790_v14 = vpop.permute.xlu0 %3065 }
 0x269   :  { %9141 = vst [vmem:[#allocation41_spill] sm:$0xff] %v6756_v32  ;;  %v1562_v54 = vsel %vm1433_vm2, %v6756_v32, 0.0  ;;  %v6762_v49 = vpop.f32.mrb[66].mxu0  ;;  %9152 = vst [vmem:[#allocation52_spill] sm:$0xff] %v6790_v14 }
 0x26a   :  { %9143 = vst [vmem:[#allocation43_spill] sm:$0xff] %v6762_v49  ;;  %v6764_v44 = vpop.f32.mrb[67].mxu0  ;;  %v1563_v57 = vadd.f32 %v1562_v54, %v6754_v7 }
 0x26b   :  { %9144 = vst [vmem:[#allocation44_spill] sm:$0xff] %v6764_v44  ;;  %v1566_v1 = vsel %vm1433_vm2, %v6764_v44, 0.0 }
 0x26c   :  { %1564 = vadd.xlane.f32.xlu0 %v1563_v57  ;;  %v1567_v4 = vadd.f32 %v1566_v1, %v6762_v49  ;;  %v6792_v49 = vpop.permute.xlu1 %3060 }
 0x26d   :  { %9153 = vst [vmem:[#allocation53_spill] sm:$0xff] %v6792_v49 }
 0x26e   :  { %1568 = vadd.xlane.f32.xlu1 %v1567_v4 }
 0x26f   :  { %v6774_v36 = vpop.f32.mrb[68].mxu0 }
 0x270   :  { %9147 = vst [vmem:[#allocation47_spill] sm:$0xff] %v6774_v36  ;;  %v6776_v32 = vpop.f32.mrb[69].mxu0 }
 0x271   :  { %9148 = vst [vmem:[#allocation48_spill] sm:$0xff] %v6776_v32  ;;  %v1570_v54 = vsel %vm1433_vm2, %v6776_v32, 0.0  ;;  %v6782_v7 = vpop.f32.mrb[70].mxu0 }
 0x272   :  { %9150 = vst [vmem:[#allocation50_spill] sm:$0xff] %v6782_v7  ;;  %v6784_v5 = vpop.f32.mrb[71].mxu0  ;;  %v1571_v57 = vadd.f32 %v1570_v54, %v6774_v36 }
 0x273   :  { %9151 = vst [vmem:[#allocation51_spill] sm:$0xff] %v6784_v5  ;;  %v1574_v1 = vsel %vm1433_vm2, %v6784_v5, 0.0 }
 0x274   :  { %1572 = vadd.xlane.f32.xlu0 %v1571_v57  ;;  %v1575_v4 = vadd.f32 %v1574_v1, %v6782_v7  ;;  %v6816_v7 = vpop.permute.xlu1 %3070 }
 0x275   :  { %9160 = vst [vmem:[#allocation60_spill] sm:$0xff] %v6816_v7 }
 0x276   :  { %1576 = vadd.xlane.f32.xlu1 %v1575_v4 }
 0x277   :  { %v6794_v41 = vpop.f32.mrb[72].mxu0 }
 0x278   :  { %9154 = vst [vmem:[#allocation54_spill] sm:$0xff] %v6794_v41  ;;  %v6796_v44 = vpop.f32.mrb[73].mxu0 }
 0x279   :  { %9155 = vst [vmem:[#allocation55_spill] sm:$0xff] %v6796_v44  ;;  %v1578_v32 = vsel %vm1433_vm2, %v6796_v44, 0.0  ;;  %v1437_v35 = vpop.xlane.xlu0 %1436  ;;  %v6800_v54 = vpop.f32.mrb[74].mxu0 }
 0x27a   :  { %9156 = vst [vmem:[#allocation56_spill] sm:$0xff] %v6800_v54  ;;  %v1638_v36 = vmul.f32 0.0051020407, %v1437_v35  ;;  %v6802_v5 = vpop.f32.mrb[75].mxu0  ;;  %v1579_v57 = vadd.f32 %v1578_v32, %v6794_v41 }
 0x27b   :  { %9157 = vst [vmem:[#allocation57_spill] sm:$0xff] %v6802_v5  ;;  %v1582_v1 = vsel %vm1433_vm2, %v6802_v5, 0.0 }
 0x27c   :  { %v6808_v4 = vsub.f32 %v6480_v39, %v1638_v36  ;;  %v6811_v14 = vsub.f32 %v6482_v40, %v1638_v36  ;;  %v6814_v49 = vadd.f32 %v1582_v1, %v6800_v54  ;;  %1580 = vadd.xlane.f32.xlu0 %v1579_v57 }
 0x27d   :  { %v1441_v35 = vpop.xlane.xlu0 %1440 }
 0x27e   :  { %9158 = vst [vmem:[#allocation58_spill] sm:$0xff] %v6808_v4  ;;  %9159 = vst [vmem:[#allocation59_spill] sm:$0xff] %v6811_v14  ;;  %v1639_v44 = vmul.f32 0.0051020407, %v1441_v35  ;;  %v1791_v32 = vmul.f32 %v6808_v4, %v6808_v4  ;;  %v1792_v5 = vmul.f32 %v6811_v14, %v6811_v14 }
 0x27f   :  { %v6822_v41 = vpop.f32.mrb[76].mxu0 }
 0x280   :  { %9161 = vst [vmem:[#allocation61_spill] sm:$0xff] %v6822_v41  ;;  %v6825_v39 = vsub.f32 %v6486_v42, %v1639_v44  ;;  %v6828_v40 = vsub.f32 %v6488_v43, %v1639_v44  ;;  %v6830_v36 = vpop.f32.mrb[77].mxu0  ;;  %v1893_v57 = vsel %vm1433_vm2, %v1792_v5, 0.0 }
 0x281   :  { %9163 = vst [vmem:[#allocation63_spill] sm:$0xff] %v6830_v36  ;;  %v1586_v1 = vsel %vm1433_vm2, %v6830_v36, 0.0  ;;  %v1445_v35 = vpop.xlane.xlu1 %1444  ;;  %v6835_v7 = vpop.f32.mrb[78].mxu0  ;;  %v1894_v54 = vadd.f32 %v1893_v57, %v1791_v32 }
 0x282   :  { %9162 = vst [vmem:[#allocation62_spill] sm:$0xff] %v6828_v40  ;;  %9164 = vst [vmem:[#allocation64_spill] sm:$0xff] %v6835_v7  ;;  %v6838_v14 = vadd.f32 %v1586_v1, %v6822_v41  ;;  %v1640_v4 = vmul.f32 0.0051020407, %v1445_v35  ;;  %v6840_v42 = vpop.f32.mrb[79].mxu0  ;;  %v1793_v43 = vmul.f32 %v6825_v39, %v6825_v39  ;;  %v1794_v44 = vmul.f32 %v6828_v40, %v6828_v40 }
 0x283   :  { %9166 = vst [vmem:[#allocation66_spill] sm:$0xff] %v6840_v42  ;;  %v1590_v5 = vsel %vm1433_vm2, %v6840_v42, 0.0  ;;  %1895 = vadd.xlane.f32.xlu0 %v1894_v54 }
 0x284   :  { %9165 = vst [vmem:[#allocation65_spill] sm:$0xff] %v6838_v14  ;;  %v6849_v36 = vsub.f32 %v6494_v47, %v1640_v4  ;;  %v6852_v32 = vsub.f32 %v6496_v48, %v1640_v4  ;;  %v6855_v57 = vadd.f32 %v1590_v5, %v6835_v7  ;;  %v1897_v1 = vsel %vm1433_vm2, %v1794_v44, 0.0 }
 0x285   :  { %v1449_v35 = vpop.xlane.xlu1 %1448  ;;  %v1898_v41 = vadd.f32 %v1897_v1, %v1793_v43 }
 0x286   :  { %9167 = vst [vmem:[#allocation67_spill] sm:$0xff] %v6855_v57  ;;  %v1641_v14 = vmul.f32 0.0051020407, %v1449_v35  ;;  %v1795_v40 = vmul.f32 %v6849_v36, %v6849_v36  ;;  %v1796_v54 = vmul.f32 %v6852_v32, %v6852_v32 }
 0x287   :  { %1899 = vadd.xlane.f32.xlu1 %v1898_v41  ;;  %v6862_v47 = vpop.f32.mrb[80].mxu0 }
 0x288   :  { %9168 = vst [vmem:[#allocation68_spill] sm:$0xff] %v6862_v47  ;;  %v6865_v48 = vsub.f32 %v6500_v50, %v1641_v14  ;;  %v6868_v4 = vsub.f32 %v6502_v51, %v1641_v14  ;;  %v6870_v5 = vpop.f32.mrb[81].mxu0  ;;  %v1901_v43 = vsel %vm1433_vm2, %v1796_v54, 0.0 }
 0x289   :  { %9169 = vst [vmem:[#allocation69_spill] sm:$0xff] %v6870_v5  ;;  %v1594_v44 = vsel %vm1433_vm2, %v6870_v5, 0.0  ;;  %v1453_v1 = vpop.xlane.xlu0 %1452  ;;  %v6875_v35 = vpop.f32.mrb[82].mxu0  ;;  %v1902_v42 = vadd.f32 %v1901_v43, %v1795_v40 }
 0x28a   :  { %9170 = vst [vmem:[#allocation70_spill] sm:$0xff] %v6875_v35  ;;  %v6878_v41 = vadd.f32 %v1594_v44, %v6862_v47  ;;  %v1642_v7 = vmul.f32 0.0051020407, %v1453_v1  ;;  %v6880_v50 = vpop.f32.mrb[83].mxu0  ;;  %v1797_v51 = vmul.f32 %v6865_v48, %v6865_v48  ;;  %v1798_v14 = vmul.f32 %v6868_v4, %v6868_v4 }
 0x28b   :  { %9172 = vst [vmem:[#allocation72_spill] sm:$0xff] %v6880_v50  ;;  %v1598_v54 = vsel %vm1433_vm2, %v6880_v50, 0.0  ;;  %v1457_v5 = vpop.xlane.xlu1 %1456  ;;  %1903 = vadd.xlane.f32.xlu0 %v1902_v42 }
 0x28c   :  { %9171 = vst [vmem:[#allocation71_spill] sm:$0xff] %v6878_v41  ;;  %v6889_v57 = vsub.f32 %v6508_v55, %v1642_v7  ;;  %v6892_v40 = vsub.f32 %v6510_v56, %v1642_v7  ;;  %v6895_v43 = vadd.f32 %v1598_v54, %v6875_v35  ;;  %v1643_v44 = vmul.f32 0.0051020407, %v1457_v5 }
 0x28d   :  { %v1905_v1 = vsel %vm1433_vm2, %v1798_v14, 0.0 }
 0x28e   :  { %9173 = vst [vmem:[#allocation73_spill] sm:$0xff] %v6889_v57  ;;  %9174 = vst [vmem:[#allocation74_spill] sm:$0xff] %v6892_v40  ;;  %v6899_v47 = vsub.f32 %v6514_v58, %v1643_v44  ;;  %v6902_v41 = vsub.f32 %v6516_v59, %v1643_v44  ;;  %v1906_v50 = vadd.f32 %v1905_v1, %v1797_v51 }
 0x28f   :  { %9175 = vst [vmem:[#allocation75_spill] sm:$0xff] %v6895_v43  ;;  %v1799_v55 = vmul.f32 %v6889_v57, %v6889_v57  ;;  %v6906_v42 = vpop.f32.mrb[84].mxu0  ;;  %v1800_v56 = vmul.f32 %v6892_v40, %v6892_v40 }
 0x290   :  { %9176 = vst [vmem:[#allocation76_spill] sm:$0xff] %v6899_v47  ;;  %9177 = vst [vmem:[#allocation77_spill] sm:$0xff] %v6902_v41  ;;  %1907 = vadd.xlane.f32.xlu1 %v1906_v50  ;;  %v6910_v7 = vpop.f32.mrb[85].mxu0  ;;  %v1801_v5 = vmul.f32 %v6899_v47, %v6899_v47  ;;  %v1802_v58 = vmul.f32 %v6902_v41, %v6902_v41 }
 0x291   :  { %9178 = vst [vmem:[#allocation78_spill] sm:$0xff] %v6906_v42  ;;  %9179 = vst [vmem:[#allocation79_spill] sm:$0xff] %v6910_v7  ;;  %v1602_v59 = vsel %vm1433_vm2, %v6910_v7, 0.0  ;;  %v1461_v51 = vpop.xlane.xlu0 %1460  ;;  %v6918_v14 = vpop.f32.mrb[86].mxu0  ;;  %v1909_v54 = vsel %vm1433_vm2, %v1800_v56, 0.0 }
 0x292   :  { %9180 = vst [vmem:[#allocation80_spill] sm:$0xff] %v6918_v14  ;;  %v6922_v44 = vadd.f32 %v1602_v59, %v6906_v42  ;;  %v1644_v50 = vmul.f32 0.0051020407, %v1461_v51  ;;  %v6924_v1 = vpop.f32.mrb[87].mxu0  ;;  %v1910_v35 = vadd.f32 %v1909_v54, %v1799_v55  ;;  %v1913_v47 = vsel %vm1433_vm2, %v1802_v58, 0.0 }
 0x293   :  { %9182 = vst [vmem:[#allocation82_spill] sm:$0xff] %v6924_v1  ;;  %v1606_v41 = vsel %vm1433_vm2, %v6924_v1, 0.0  ;;  %v1465_v43 = vpop.xlane.xlu1 %1464  ;;  %v1914_v40 = vadd.f32 %v1913_v47, %v1801_v5 }
 0x294   :  { %9181 = vst [vmem:[#allocation81_spill] sm:$0xff] %v6922_v44  ;;  %v6930_v7 = vsub.f32 %v6522_v63, %v1644_v50  ;;  %v6933_v57 = vsub.f32 %v6524_v0, %v1644_v50  ;;  %v6936_v56 = vadd.f32 %v1606_v41, %v6918_v14  ;;  %v1645_v59 = vmul.f32 0.0051020407, %v1465_v43  ;;  %1911 = vadd.xlane.f32.xlu0 %v1910_v35 }
 0x295   :  { %1915 = vadd.xlane.f32.xlu1 %v1914_v40 }
 0x296   :  { %v6939_v55 = vsub.f32 %v6528_v2, %v1645_v59  ;;  %v6942_v58 = vsub.f32 %v6530_v3, %v1645_v59  ;;  %v1803_v47 = vmul.f32 %v6930_v7, %v6930_v7  ;;  %v1804_v63 = vmul.f32 %v6933_v57, %v6933_v57 }
 0x297   :  { %v6948_v0 = vpop.f32.mrb[88].mxu0 }
 0x298   :  { %9183 = vst [vmem:[#allocation83_spill] sm:$0xff] %v6948_v0  ;;  %v6950_v5 = vpop.f32.mrb[89].mxu0  ;;  %v1917_v41 = vsel %vm1433_vm2, %v1804_v63, 0.0  ;;  %v1805_v35 = vmul.f32 %v6939_v55, %v6939_v55  ;;  %v1806_v2 = vmul.f32 %v6942_v58, %v6942_v58 }
 0x299   :  { %9184 = vst [vmem:[#allocation84_spill] sm:$0xff] %v6950_v5  ;;  %v1610_v3 = vsel %vm1433_vm2, %v6950_v5, 0.0  ;;  %v1469_v40 = vpop.xlane.xlu0 %1468  ;;  %v6959_v43 = vpop.f32.mrb[90].mxu0  ;;  %v1918_v51 = vadd.f32 %v1917_v41, %v1803_v47 }
 0x29a   :  { %9185 = vst [vmem:[#allocation85_spill] sm:$0xff] %v6959_v43  ;;  %v6962_v54 = vadd.f32 %v1610_v3, %v6948_v0  ;;  %v1646_v50 = vmul.f32 0.0051020407, %v1469_v40  ;;  %v6964_v59 = vpop.f32.mrb[91].mxu0  ;;  %v1921_v63 = vsel %vm1433_vm2, %v1806_v2, 0.0 }
 0x29b   :  { %9186 = vst [vmem:[#allocation86_spill] sm:$0xff] %v6964_v59  ;;  %v1614_v42 = vsel %vm1433_vm2, %v6964_v59, 0.0  ;;  %v1473_v1 = vpop.xlane.xlu1 %1472  ;;  %1919 = vadd.xlane.f32.xlu0 %v1918_v51  ;;  %v1922_v14 = vadd.f32 %v1921_v63, %v1805_v35  ;;  %v9063_v59 = vmov 0  }
 0x29c   :  { %v6970_v5 = vsub.f32 %v6536_v8, %v1646_v50  ;;  %v6973_v44 = vsub.f32 %v6538_v9, %v1646_v50  ;;  %v6976_v47 = vadd.f32 %v1614_v42, %v6959_v43  ;;  %v1647_v41 = vmul.f32 0.0051020407, %v1473_v1  ;;  %5260 = vset.pattern.permute.xlu0 %v9063_v59  ;;  %5261 = vset.pattern.permute.xlu1 %v9063_v59 }
 0x29d   :  { %1923 = vadd.xlane.f32.xlu1 %v1922_v14 }
 0x29e   :  { %9187 = vst [vmem:[#allocation87_spill] sm:$0xff] %v6970_v5  ;;  %9188 = vst [vmem:[#allocation88_spill] sm:$0xff] %v6973_v44  ;;  %v6979_v3 = vsub.f32 %v6542_v11, %v1647_v41  ;;  %v6982_v2 = vsub.f32 %v6544_v12, %v1647_v41  ;;  %v1807_v35 = vmul.f32 %v6970_v5, %v6970_v5 }
 0x29f   :  { %v1808_v8 = vmul.f32 %v6973_v44, %v6973_v44  ;;  %v6988_v40 = vpop.f32.mrb[92].mxu0 }
 0x2a0   :  { %9189 = vst [vmem:[#allocation89_spill] sm:$0xff] %v6988_v40  ;;  %v6990_v9 = vpop.f32.mrb[93].mxu0  ;;  %v1809_v14 = vmul.f32 %v6979_v3, %v6979_v3  ;;  %v1810_v11 = vmul.f32 %v6982_v2, %v6982_v2 }
 0x2a1   :  { %9190 = vst [vmem:[#allocation90_spill] sm:$0xff] %v6990_v9  ;;  %v1925_v42 = vsel %vm1433_vm2, %v1808_v8, 0.0  ;;  %v1618_v12 = vsel %vm1433_vm2, %v6990_v9, 0.0  ;;  %v1477_v1 = vpop.xlane.xlu0 %1476  ;;  %v6999_v51 = vpop.f32.mrb[94].mxu0 }
 0x2a2   :  { %9191 = vst [vmem:[#allocation91_spill] sm:$0xff] %v6999_v51  ;;  %v1926_v50 = vadd.f32 %v1925_v42, %v1807_v35  ;;  %v7002_v63 = vadd.f32 %v1618_v12, %v6988_v40  ;;  %v1648_v41 = vmul.f32 0.0051020407, %v1477_v1  ;;  %v7004_v0 = vpop.f32.mrb[95].mxu0  ;;  %v1929_v8 = vsel %vm1433_vm2, %v1810_v11, 0.0 }
 0x2a3   :  { %9193 = vst [vmem:[#allocation93_spill] sm:$0xff] %v7004_v0  ;;  %v1622_v9 = vsel %vm1433_vm2, %v7004_v0, 0.0  ;;  %v1481_v43 = vpop.xlane.xlu1 %1480  ;;  %v1930_v44 = vadd.f32 %v1929_v8, %v1809_v14 }
 0x2a4   :  { %9192 = vst [vmem:[#allocation92_spill] sm:$0xff] %v7002_v63  ;;  %1927 = vadd.xlane.f32.xlu0 %v1926_v50  ;;  %v7012_v35 = vsub.f32 %v6550_v16, %v1648_v41  ;;  %v7015_v42 = vsub.f32 %v6552_v17, %v1648_v41  ;;  %v7018_v12 = vadd.f32 %v1622_v9, %v6999_v51  ;;  %v1649_v11 = vmul.f32 0.0051020407, %v1481_v43 }
 0x2a5   :  { %1931 = vadd.xlane.f32.xlu1 %v1930_v44 }
 0x2a6   :  { %v7021_v1 = vsub.f32 %v6556_v19, %v1649_v11  ;;  %v7024_v59 = vsub.f32 %v6558_v20, %v1649_v11  ;;  %v1811_v14 = vmul.f32 %v7012_v35, %v7012_v35  ;;  %v1812_v16 = vmul.f32 %v7015_v42, %v7015_v42 }
 0x2a7   :  { %v7030_v50 = vpop.f32.mrb[96].mxu0 }
 0x2a8   :  { %9194 = vst [vmem:[#allocation94_spill] sm:$0xff] %v7024_v59  ;;  %9195 = vst [vmem:[#allocation95_spill] sm:$0xff] %v7030_v50  ;;  %v7032_v17 = vpop.f32.mrb[97].mxu0  ;;  %v1933_v9 = vsel %vm1433_vm2, %v1812_v16, 0.0  ;;  %v1813_v44 = vmul.f32 %v7021_v1, %v7021_v1  ;;  %v1814_v19 = vmul.f32 %v7024_v59, %v7024_v59 }
 0x2a9   :  { %9196 = vst [vmem:[#allocation96_spill] sm:$0xff] %v7032_v17  ;;  %v1626_v20 = vsel %vm1433_vm2, %v7032_v17, 0.0  ;;  %v1485_v43 = vpop.xlane.xlu0 %1484  ;;  %v7041_v41 = vpop.f32.mrb[98].mxu0  ;;  %v1934_v8 = vadd.f32 %v1933_v9, %v1811_v14 }
 0x2aa   :  { %9197 = vst [vmem:[#allocation97_spill] sm:$0xff] %v7041_v41  ;;  %v7044_v11 = vadd.f32 %v1626_v20, %v7030_v50  ;;  %v1650_v40 = vmul.f32 0.0051020407, %v1485_v43  ;;  %v7046_v0 = vpop.f32.mrb[99].mxu0  ;;  %v1937_v16 = vsel %vm1433_vm2, %v1814_v19, 0.0 }
 0x2ab   :  { %9198 = vst [vmem:[#allocation98_spill] sm:$0xff] %v7046_v0  ;;  %v1630_v51 = vsel %vm1433_vm2, %v7046_v0, 0.0  ;;  %v1489_v5 = vpop.xlane.xlu1 %1488  ;;  %1935 = vadd.xlane.f32.xlu0 %v1934_v8  ;;  %v1938_v63 = vadd.f32 %v1937_v16, %v1813_v44 }
 0x2ac   :  { %v7052_v17 = vsub.f32 %v6564_v24, %v1650_v40  ;;  %v7055_v59 = vsub.f32 %v6566_v25, %v1650_v40  ;;  %v7058_v14 = vadd.f32 %v1630_v51, %v7041_v41  ;;  %v1651_v9 = vmul.f32 0.0051020407, %v1489_v5 }
 0x2ad   :  { %1939 = vadd.xlane.f32.xlu1 %v1938_v63 }
 0x2ae   :  { %9199 = vst [vmem:[#allocation99_spill] sm:$0xff] %v7052_v17  ;;  %9200 = vst [vmem:[#allocation100_spill] sm:$0xff] %v7055_v59  ;;  %v7061_v20 = vsub.f32 %v6570_v27, %v1651_v9  ;;  %v7064_v19 = vsub.f32 %v6572_v28, %v1651_v9  ;;  %v1815_v44 = vmul.f32 %v7052_v17, %v7052_v17 }
 0x2af   :  { %v1816_v24 = vmul.f32 %v7055_v59, %v7055_v59  ;;  %v7070_v43 = vpop.f32.mrb[100].mxu0 }
 0x2b0   :  { %9201 = vst [vmem:[#allocation101_spill] sm:$0xff] %v7070_v43  ;;  %v7072_v25 = vpop.f32.mrb[101].mxu0  ;;  %v1817_v5 = vmul.f32 %v7061_v20, %v7061_v20  ;;  %v1818_v27 = vmul.f32 %v7064_v19, %v7064_v19 }
 0x2b1   :  { %9202 = vst [vmem:[#allocation102_spill] sm:$0xff] %v7072_v25  ;;  %v1941_v40 = vsel %vm1433_vm2, %v1816_v24, 0.0  ;;  %v1634_v28 = vsel %vm1433_vm2, %v7072_v25, 0.0  ;;  %v1493_v51 = vpop.xlane.xlu0 %1492  ;;  %v1430_v63 = vpop.f32.mrb[102].mxu0 }
 0x2b2   :  { %v1942_v8 = vadd.f32 %v1941_v40, %v1815_v44  ;;  %v7082_v16 = vadd.f32 %v1634_v28, %v7070_v43  ;;  %v1652_v9 = vmul.f32 0.0051020407, %v1493_v51  ;;  %v1431_v50 = vpop.f32.mrb[103].mxu0  ;;  %v1945_v0 = vsel %vm1433_vm2, %v1818_v27, 0.0  ;;  %v9215_v43 = vld [vmem:[#allocation23_spill] sm:$0xff] }
 0x2b3   :  { %v1497_v24 = vpop.xlane.xlu1 %1496  ;;  %v1946_v41 = vadd.f32 %v1945_v0, %v1817_v5 }
 0x2b4   :  { %1943 = vadd.xlane.f32.xlu0 %v1942_v8  ;;  %v7086_v59 = vsub.f32 %v6580_v33, %v1652_v9  ;;  %v7089_v17 = vsub.f32 %v6582_v34, %v1652_v9  ;;  %v1653_v25 = vmul.f32 0.0051020407, %v1497_v24 }
 0x2b5   :  { %1947 = vadd.xlane.f32.xlu1 %v1946_v41 }
 0x2b6   :  { %v7092_v44 = vsub.f32 %v6588_v37, %v1653_v25  ;;  %v7095_v40 = vsub.f32 %v6590_v38, %v1653_v25  ;;  %v1819_v50 = vmul.f32 %v7086_v59, %v7086_v59  ;;  %v1820_v0 = vmul.f32 %v7089_v17, %v7089_v17 }
 0x2b8   :  { %v1949_v33 = vsel %vm1433_vm2, %v1820_v0, 0.0  ;;  %v1821_v34 = vmul.f32 %v7092_v44, %v7092_v44  ;;  %v1822_v41 = vmul.f32 %v7095_v40, %v7095_v40 }
 0x2b9   :  { %v1501_v5 = vpop.xlane.xlu0 %1500  ;;  %v1950_v37 = vadd.f32 %v1949_v33, %v1819_v50 }
 0x2ba   :  { %v1654_v27 = vmul.f32 0.0051020407, %v1501_v5  ;;  %v1953_v38 = vsel %vm1433_vm2, %v1822_v41, 0.0 }
 0x2bb   :  { %v1505_v25 = vpop.xlane.xlu1 %1504  ;;  %1951 = vadd.xlane.f32.xlu0 %v1950_v37  ;;  %v1954_v28 = vadd.f32 %v1953_v38, %v1821_v34 }
 0x2bc   :  { %v7108_v51 = vsub.f32 %v6600_v52, %v1654_v27  ;;  %v7111_v63 = vsub.f32 %v6602_v53, %v1654_v27  ;;  %v1655_v8 = vmul.f32 0.0051020407, %v1505_v25 }
 0x2bd   :  { %1955 = vadd.xlane.f32.xlu1 %v1954_v28 }
 0x2be   :  { %v7114_v9 = vsub.f32 %v6608_v60, %v1655_v8  ;;  %v7117_v24 = vsub.f32 %v6610_v61, %v1655_v8  ;;  %v1823_v50 = vmul.f32 %v7108_v51, %v7108_v51  ;;  %v1824_v0 = vmul.f32 %v7111_v63, %v7111_v63 }
 0x2c0   :  { %v1957_v52 = vsel %vm1433_vm2, %v1824_v0, 0.0  ;;  %v1825_v53 = vmul.f32 %v7114_v9, %v7114_v9  ;;  %v1826_v33 = vmul.f32 %v7117_v24, %v7117_v24 }
 0x2c1   :  { %v1509_v34 = vpop.xlane.xlu0 %1508  ;;  %v1958_v60 = vadd.f32 %v1957_v52, %v1823_v50 }
 0x2c2   :  { %v1656_v41 = vmul.f32 0.0051020407, %v1509_v34  ;;  %v1961_v61 = vsel %vm1433_vm2, %v1826_v33, 0.0 }
 0x2c3   :  { %v1513_v5 = vpop.xlane.xlu1 %1512  ;;  %1959 = vadd.xlane.f32.xlu0 %v1958_v60  ;;  %v1962_v37 = vadd.f32 %v1961_v61, %v1825_v53 }
 0x2c4   :  { %v7130_v27 = vsub.f32 %v6620_v10, %v1656_v41  ;;  %v7133_v38 = vsub.f32 %v6622_v13, %v1656_v41  ;;  %v1657_v25 = vmul.f32 0.0051020407, %v1513_v5 }
 0x2c5   :  { %1963 = vadd.xlane.f32.xlu1 %v1962_v37 }
 0x2c6   :  { %v7136_v28 = vsub.f32 %v6626_v15, %v1657_v25  ;;  %v7139_v8 = vsub.f32 %v6628_v18, %v1657_v25  ;;  %v1827_v50 = vmul.f32 %v7130_v27, %v7130_v27  ;;  %v1828_v0 = vmul.f32 %v7133_v38, %v7133_v38 }
 0x2c8   :  { %v1965_v10 = vsel %vm1433_vm2, %v1828_v0, 0.0  ;;  %v1829_v13 = vmul.f32 %v7136_v28, %v7136_v28  ;;  %v1830_v52 = vmul.f32 %v7139_v8, %v7139_v8 }
 0x2c9   :  { %v1517_v53 = vpop.xlane.xlu0 %1516  ;;  %v1966_v15 = vadd.f32 %v1965_v10, %v1827_v50 }
 0x2ca   :  { %v1658_v33 = vmul.f32 0.0051020407, %v1517_v53  ;;  %v1969_v18 = vsel %vm1433_vm2, %v1830_v52, 0.0 }
 0x2cb   :  { %v1521_v34 = vpop.xlane.xlu1 %1520  ;;  %1967 = vadd.xlane.f32.xlu0 %v1966_v15  ;;  %v1970_v60 = vadd.f32 %v1969_v18, %v1829_v13 }
 0x2cc   :  { %v7152_v41 = vsub.f32 %v6638_v30, %v1658_v33  ;;  %v7155_v61 = vsub.f32 %v6640_v31, %v1658_v33  ;;  %v1659_v5 = vmul.f32 0.0051020407, %v1521_v34 }
 0x2cd   :  { %1971 = vadd.xlane.f32.xlu1 %v1970_v60 }
 0x2ce   :  { %v7158_v37 = vsub.f32 %v6646_v45, %v1659_v5  ;;  %v7161_v25 = vsub.f32 %v6648_v46, %v1659_v5  ;;  %v1831_v50 = vmul.f32 %v7152_v41, %v7152_v41  ;;  %v1832_v0 = vmul.f32 %v7155_v61, %v7155_v61 }
 0x2d0   :  { %v1973_v30 = vsel %vm1433_vm2, %v1832_v0, 0.0  ;;  %v1833_v31 = vmul.f32 %v7158_v37, %v7158_v37  ;;  %v1834_v10 = vmul.f32 %v7161_v25, %v7161_v25 }
 0x2d1   :  { %v1525_v13 = vpop.xlane.xlu0 %1524  ;;  %v1974_v45 = vadd.f32 %v1973_v30, %v1831_v50 }
 0x2d2   :  { %v1660_v52 = vmul.f32 0.0051020407, %v1525_v13  ;;  %v1977_v46 = vsel %vm1433_vm2, %v1834_v10, 0.0 }
 0x2d3   :  { %v1529_v53 = vpop.xlane.xlu1 %1528  ;;  %1975 = vadd.xlane.f32.xlu0 %v1974_v45  ;;  %v1978_v15 = vadd.f32 %v1977_v46, %v1833_v31 }
 0x2d4   :  { %v7174_v33 = vsub.f32 %v6658_v21, %v1660_v52  ;;  %v7177_v18 = vsub.f32 %v6660_v23, %v1660_v52  ;;  %v1661_v34 = vmul.f32 0.0051020407, %v1529_v53 }
 0x2d5   :  { %1979 = vadd.xlane.f32.xlu1 %v1978_v15 }
 0x2d6   :  { %9203 = vst [vmem:[#allocation103_spill] sm:$0xff] %v7177_v18  ;;  %v7180_v60 = vsub.f32 %v6666_v6, %v1661_v34  ;;  %v7183_v5 = vsub.f32 %v6668_v22, %v1661_v34  ;;  %v1835_v50 = vmul.f32 %v7174_v33, %v7174_v33  ;;  %v1836_v0 = vmul.f32 %v7177_v18, %v7177_v18  ;;  %v9209_v34 = vld [vmem:[#allocation17_spill] sm:$0xff] }
 0x2d8   :  { %9204 = vst [vmem:[#allocation104_spill] sm:$0xff] %v7180_v60  ;;  %9205 = vst [vmem:[#allocation105_spill] sm:$0xff] %v7183_v5  ;;  %v1981_v21 = vsel %vm1433_vm2, %v1836_v0, 0.0  ;;  %v1837_v23 = vmul.f32 %v7180_v60, %v7180_v60  ;;  %v1838_v30 = vmul.f32 %v7183_v5, %v7183_v5 }
 0x2d9   :  { %v1533_v31 = vpop.xlane.xlu0 %1532  ;;  %v1982_v6 = vadd.f32 %v1981_v21, %v1835_v50 }
 0x2da   :  { %v1662_v10 = vmul.f32 0.0051020407, %v1533_v31  ;;  %v1985_v22 = vsel %vm1433_vm2, %v1838_v30, 0.0 }
 0x2db   :  { %v1537_v13 = vpop.xlane.xlu1 %1536  ;;  %1983 = vadd.xlane.f32.xlu0 %v1982_v6  ;;  %v1986_v45 = vadd.f32 %v1985_v22, %v1837_v23 }
 0x2dc   :  { %v7196_v52 = vsub.f32 %v6678_v26, %v1662_v10  ;;  %v7199_v46 = vsub.f32 %v6680_v62, %v1662_v10  ;;  %v1663_v53 = vmul.f32 0.0051020407, %v1537_v13  ;;  %v9211_v13 = vld [vmem:[#allocation20_spill] sm:$0xff] }
 0x2dd   :  { %1987 = vadd.xlane.f32.xlu1 %v1986_v45 }
 0x2de   :  { %9206 = vst [vmem:[#allocation106_spill] sm:$0xff] %v7196_v52  ;;  %9207 = vst [vmem:[#allocation107_spill] sm:$0xff] %v7199_v46  ;;  %v7202_v15 = vsub.f32 %v6684_v29, %v1663_v53  ;;  %v7205_v0 = vsub.f32 %v9209_v34, %v1663_v53  ;;  %v1839_v50 = vmul.f32 %v7196_v52, %v7196_v52  ;;  %v9213_v53 = vld [vmem:[#allocation21_spill] sm:$0xff] }
 0x2df   :  { %v1840_v21 = vmul.f32 %v7199_v46, %v7199_v46 }
 0x2e0   :  { %9208 = vst [vmem:[#allocation108_spill] sm:$0xff] %v7202_v15  ;;  %9210 = vst [vmem:[#allocation17_spill] sm:$0xff] %v7205_v0  ;;  %v1841_v62 = vmul.f32 %v7202_v15, %v7202_v15  ;;  %v1842_v23 = vmul.f32 %v7205_v0, %v7205_v0  ;;  %v9217_v0 = vld [vmem:[#allocation24_spill] sm:$0xff] }
 0x2e1   :  { %v1989_v26 = vsel %vm1433_vm2, %v1840_v21, 0.0  ;;  %v1541_v30 = vpop.xlane.xlu0 %1540 }
 0x2e2   :  { %v1990_v29 = vadd.f32 %v1989_v26, %v1839_v50  ;;  %v1664_v31 = vmul.f32 0.0051020407, %v1541_v30  ;;  %v1993_v6 = vsel %vm1433_vm2, %v1842_v23, 0.0 }
 0x2e3   :  { %v1545_v10 = vpop.xlane.xlu1 %1544  ;;  %v1994_v22 = vadd.f32 %v1993_v6, %v1841_v62 }
 0x2e4   :  { %1991 = vadd.xlane.f32.xlu0 %v1990_v29  ;;  %v7218_v45 = vsub.f32 %v9211_v13, %v1664_v31  ;;  %v7221_v34 = vsub.f32 %v9213_v53, %v1664_v31  ;;  %v1665_v21 = vmul.f32 0.0051020407, %v1545_v10  ;;  %v9221_v53 = vld [vmem:[#allocation28_spill] sm:$0xff] }
 0x2e5   :  { %1995 = vadd.xlane.f32.xlu1 %v1994_v22  ;;  %v9219_v22 = vld [vmem:[#allocation27_spill] sm:$0xff] }
 0x2e6   :  { %9212 = vst [vmem:[#allocation20_spill] sm:$0xff] %v7218_v45  ;;  %9214 = vst [vmem:[#allocation21_spill] sm:$0xff] %v7221_v34  ;;  %v7224_v15 = vsub.f32 %v9215_v43, %v1665_v21  ;;  %v7227_v46 = vsub.f32 %v9217_v0, %v1665_v21  ;;  %v1843_v50 = vmul.f32 %v7218_v45, %v7218_v45 }
 0x2e7   :  { %v1844_v26 = vmul.f32 %v7221_v34, %v7221_v34 }
 0x2e8   :  { %9216 = vst [vmem:[#allocation23_spill] sm:$0xff] %v7224_v15  ;;  %9218 = vst [vmem:[#allocation24_spill] sm:$0xff] %v7227_v46  ;;  %v1845_v23 = vmul.f32 %v7224_v15, %v7224_v15  ;;  %v1846_v30 = vmul.f32 %v7227_v46, %v7227_v46  ;;  %v9223_v15 = vld [vmem:[#allocation30_spill] sm:$0xff]  ;;  %v9225_v46 = vld [vmem:[#allocation31_spill] sm:$0xff] }
 0x2e9   :  { %v1997_v62 = vsel %vm1433_vm2, %v1844_v26, 0.0  ;;  %v1549_v29 = vpop.xlane.xlu0 %1548 }
 0x2ea   :  { %v1998_v43 = vadd.f32 %v1997_v62, %v1843_v50  ;;  %v1666_v31 = vmul.f32 0.0051020407, %v1549_v29  ;;  %v2001_v0 = vsel %vm1433_vm2, %v1846_v30, 0.0 }
 0x2eb   :  { %v1553_v6 = vpop.xlane.xlu1 %1552  ;;  %v2002_v10 = vadd.f32 %v2001_v0, %v1845_v23 }
 0x2ec   :  { %1999 = vadd.xlane.f32.xlu0 %v1998_v43  ;;  %v7240_v13 = vsub.f32 %v9219_v22, %v1666_v31  ;;  %v7243_v21 = vsub.f32 %v9221_v53, %v1666_v31  ;;  %v1667_v26 = vmul.f32 0.0051020407, %v1553_v6  ;;  %v9229_v53 = vld [vmem:[#allocation35_spill] sm:$0xff] }
 0x2ed   :  { %2003 = vadd.xlane.f32.xlu1 %v2002_v10  ;;  %v9227_v10 = vld [vmem:[#allocation34_spill] sm:$0xff] }
 0x2ee   :  { %9220 = vst [vmem:[#allocation27_spill] sm:$0xff] %v7240_v13  ;;  %9222 = vst [vmem:[#allocation28_spill] sm:$0xff] %v7243_v21  ;;  %v7246_v34 = vsub.f32 %v9223_v15, %v1667_v26  ;;  %v7249_v45 = vsub.f32 %v9225_v46, %v1667_v26  ;;  %v1847_v50 = vmul.f32 %v7240_v13, %v7240_v13  ;;  %v5678_v13 = vld [vmem:[%s8975_s3] sm:$0xff] }
 0x2ef   :  { %v1848_v62 = vmul.f32 %v7243_v21, %v7243_v21 }
 0x2f0   :  { %9224 = vst [vmem:[#allocation30_spill] sm:$0xff] %v7246_v34  ;;  %9226 = vst [vmem:[#allocation31_spill] sm:$0xff] %v7249_v45  ;;  %v1849_v23 = vmul.f32 %v7246_v34, %v7246_v34  ;;  %v1850_v30 = vmul.f32 %v7249_v45, %v7249_v45 }
 0x2f1   :  { %v2005_v29 = vsel %vm1433_vm2, %v1848_v62, 0.0  ;;  %v1557_v43 = vpop.xlane.xlu0 %1556  ;;  %v9231_v62 = vld [vmem:[#allocation36_spill] sm:$0xff] }
 0x2f2   :  { %v2006_v15 = vadd.f32 %v2005_v29, %v1847_v50  ;;  %v1668_v31 = vmul.f32 0.0051020407, %v1557_v43  ;;  %v2009_v46 = vsel %vm1433_vm2, %v1850_v30, 0.0  ;;  %v9233_v30 = vld [vmem:[#allocation37_spill] sm:$0xff] }
 0x2f3   :  { %v1561_v0 = vpop.xlane.xlu1 %1560  ;;  %v2010_v6 = vadd.f32 %v2009_v46, %v1849_v23 }
 0x2f4   :  { %2007 = vadd.xlane.f32.xlu0 %v2006_v15  ;;  %v7262_v22 = vsub.f32 %v9227_v10, %v1668_v31  ;;  %v7265_v26 = vsub.f32 %v9229_v53, %v1668_v31  ;;  %v1669_v34 = vmul.f32 0.0051020407, %v1561_v0 }
 0x2f5   :  { %2011 = vadd.xlane.f32.xlu1 %v2010_v6 }
 0x2f6   :  { %9228 = vst [vmem:[#allocation34_spill] sm:$0xff] %v7262_v22  ;;  %9230 = vst [vmem:[#allocation35_spill] sm:$0xff] %v7265_v26  ;;  %v1851_v45 = vmul.f32 %v7262_v22, %v7262_v22  ;;  %v1852_v50 = vmul.f32 %v7265_v26, %v7265_v26  ;;  %v7272_v29 = vsub.f32 %v9231_v62, %v1669_v34 }
 0x2f7   :  { %v7275_v43 = vsub.f32 %v9233_v30, %v1669_v34 }
 0x2f8   :  { %9232 = vst [vmem:[#allocation36_spill] sm:$0xff] %v7272_v29  ;;  %v1853_v23 = vmul.f32 %v7272_v29, %v7272_v29  ;;  %v2013_v31 = vsel %vm1433_vm2, %v1852_v50, 0.0 }
 0x2f9   :  { %9234 = vst [vmem:[#allocation37_spill] sm:$0xff] %v7275_v43  ;;  %v1854_v15 = vmul.f32 %v7275_v43, %v7275_v43  ;;  %v2014_v46 = vadd.f32 %v2013_v31, %v1851_v45  ;;  %v7283_v10 = vpop.xlane.xlu0 %1564 }
 0x2fb   :  { %v2017_v0 = vsel %vm1433_vm2, %v1854_v15, 0.0  ;;  %2015 = vadd.xlane.f32.xlu0 %v2014_v46  ;;  %v7287_v34 = vpop.xlane.xlu1 %1568 }
 0x2fc   :  { %v2018_v6 = vadd.f32 %v2017_v0, %v1853_v23 }
 0x2fe   :  { %2019 = vadd.xlane.f32.xlu1 %v2018_v6 }
 0x301   :  { %v7285_v53 = vpop.xlane.xlu0 %1572 }
 0x303   :  { %v7291_v30 = vpop.xlane.xlu1 %1576 }
 0x309   :  { %v7289_v62 = vpop.xlane.xlu0 %1580 }
 0x310   :  { %v1896_v29 = vpop.xlane.xlu0 %1895 }
 0x311   :  { %v2097_v43 = vmul.f32 0.0051020407, %v1896_v29 }
 0x313   :  { %v2199_v26 = vadd.f32 1e-05, %v2097_v43 }
 0x314   :  { %v1900_v50 = vpop.xlane.xlu1 %1899 }
 0x315   :  { %5576 = vrsqrt.f32 %v2199_v26  ;;  %v2098_v45 = vmul.f32 0.0051020407, %v1900_v50 }
 0x317   :  { %v2200_v15 = vadd.f32 1e-05, %v2098_v45 }
 0x318   :  { %v1904_v31 = vpop.xlane.xlu0 %1903 }
 0x319   :  { %5578 = vrsqrt.f32 %v2200_v15  ;;  %v2099_v23 = vmul.f32 0.0051020407, %v1904_v31  ;;  %v5679_v31 = vld [vmem:[%s8975_s3 + $0x8] sm:$0xff] }
 0x31b   :  { %v2201_v46 = vadd.f32 1e-05, %v2099_v23 }
 0x31d   :  { %5580 = vrsqrt.f32 %v2201_v46  ;;  %v1908_v0 = vpop.xlane.xlu1 %1907 }
 0x31e   :  { %v2100_v6 = vmul.f32 0.0051020407, %v1908_v0 }
 0x31f   :  { %v5577_v22 = vpop.eup %5576 }
 0x320   :  { %v2202_v21 = vadd.f32 1e-05, %v2100_v6  ;;  %v2301_v52 = vmul.f32 %v5678_v13, %v5577_v22  ;;  %v5680_v13 = vld [vmem:[%s8975_s3 + $0x10] sm:$0xff] }
 0x321   :  { %v1912_v29 = vpop.xlane.xlu0 %1911 }
 0x322   :  { %5582 = vrsqrt.f32 %v2202_v21  ;;  %v2101_v43 = vmul.f32 0.0051020407, %v1912_v29  ;;  %v1916_v26 = vpop.xlane.xlu1 %1915  ;;  %2456 = vperm.xlu0 %5260, %v2301_v52  }
 0x323   :  { %v5579_v50 = vpop.eup %5578  ;;  %v2102_v45 = vmul.f32 0.0051020407, %v1916_v26 }
 0x324   :  { %v2203_v15 = vadd.f32 1e-05, %v2101_v43  ;;  %v2302_v23 = vmul.f32 %v5679_v31, %v5579_v50  ;;  %v5681_v50 = vld [vmem:[%s8975_s3 + $0x18] sm:$0xff]  ;;  %v5682_v31 = vld [vmem:[%s8975_s3 + $0x20] sm:$0xff] }
 0x325   :  { %v2204_v46 = vadd.f32 1e-05, %v2102_v45 }
 0x326   :  { %5584 = vrsqrt.f32 %v2203_v15  ;;  %2461 = vperm.xlu1 %5261, %v2302_v23  }
 0x327   :  { %v5581_v0 = vpop.eup %5580  ;;  %5586 = vrsqrt.f32 %v2204_v46 }
 0x328   :  { %v1920_v6 = vpop.xlane.xlu0 %1919  ;;  %v2303_v21 = vmul.f32 %v5680_v13, %v5581_v0 }
 0x329   :  { %v2103_v52 = vmul.f32 0.0051020407, %v1920_v6 }
 0x32a   :  { %v1924_v22 = vpop.xlane.xlu1 %1923  ;;  %2466 = vperm.xlu1 %5261, %v2303_v21  }
 0x32b   :  { %v2205_v29 = vadd.f32 1e-05, %v2103_v52  ;;  %v2104_v43 = vmul.f32 0.0051020407, %v1924_v22  ;;  %v5683_v52 = vld [vmem:[%s8975_s3 + $0x28] sm:$0xff] }
 0x32c   :  { %v5583_v26 = vpop.eup %5582 }
 0x32d   :  { %5588 = vrsqrt.f32 %v2205_v29  ;;  %v2206_v5 = vadd.f32 1e-05, %v2104_v43  ;;  %v2304_v45 = vmul.f32 %v5681_v50, %v5583_v26  ;;  %v5684_v43 = vld [vmem:[%s8975_s3 + $0x30] sm:$0xff] }
 0x32f   :  { %2471 = vperm.xlu1 %5261, %v2304_v45   ;;  %5590 = vrsqrt.f32 %v2206_v5 }
 0x330   :  { %v5585_v15 = vpop.eup %5584 }
 0x331   :  { %v2305_v23 = vmul.f32 %v5682_v31, %v5585_v15  ;;  %v5587_v46 = vpop.eup %5586  ;;  %v1928_v13 = vpop.xlane.xlu0 %1927 }
 0x332   :  { %v1932_v0 = vpop.xlane.xlu1 %1931  ;;  %v2306_v22 = vmul.f32 %v5683_v52, %v5587_v46  ;;  %v5685_v46 = vld [vmem:[%s8975_s3 + $0x38] sm:$0xff] }
 0x333   :  { %v2106_v6 = vmul.f32 0.0051020407, %v1932_v0  ;;  %2476 = vperm.xlu1 %5261, %v2305_v23  }
 0x335   :  { %v2208_v21 = vadd.f32 1e-05, %v2106_v6 }
 0x337   :  { %v5589_v29 = vpop.eup %5588  ;;  %5592 = vrsqrt.f32 %v2208_v21  ;;  %2481 = vperm.xlu1 %5261, %v2306_v22   ;;  %v2105_v21 = vmul.f32 0.0051020407, %v1928_v13 }
 0x338   :  { %v1936_v5 = vpop.xlane.xlu0 %1935  ;;  %v2307_v26 = vmul.f32 %v5684_v43, %v5589_v29 }
 0x339   :  { %v2107_v50 = vmul.f32 0.0051020407, %v1936_v5  ;;  %v5591_v45 = vpop.eup %5590  ;;  %v5686_v5 = vld [vmem:[%s8975_s3 + $0x48] sm:$0xff] }
 0x33a   :  { %v1940_v15 = vpop.xlane.xlu1 %1939  ;;  %v2308_v6 = vmul.f32 %v5685_v46, %v5591_v45 }
 0x33b   :  { %v2209_v31 = vadd.f32 1e-05, %v2107_v50  ;;  %v2108_v23 = vmul.f32 0.0051020407, %v1940_v15  ;;  %2486 = vperm.xlu1 %5261, %v2307_v26   ;;  %v2207_v50 = vadd.f32 1e-05, %v2105_v21 }
 0x33c   :  { %v5688_v21 = vld [vmem:[%s8975_s3 + $0x58] sm:$0xff] }
 0x33d   :  { %5594 = vrsqrt.f32 %v2209_v31  ;;  %v2210_v0 = vadd.f32 1e-05, %v2108_v23 }
 0x33f   :  { %5596 = vrsqrt.f32 %v2210_v0  ;;  %2491 = vperm.xlu1 %5261, %v2308_v6  }
 0x341   :  { %v5593_v52 = vpop.eup %5592  ;;  %v1944_v22 = vpop.xlane.xlu0 %1943  ;;  %1584 = vadd.xlane.f32.xlu0 %v6814_v49  ;;  %v5687_v49 = vld [vmem:[%s8975_s3 + $0x50] sm:$0xff] }
 0x342   :  { %v1948_v29 = vpop.xlane.xlu1 %1947  ;;  %v2310_v43 = vmul.f32 %v5686_v5, %v5593_v52  ;;  %v2109_v15 = vmul.f32 0.0051020407, %v1944_v22 }
 0x343   :  { %v2110_v26 = vmul.f32 0.0051020407, %v1948_v29 }
 0x344   :  { %2501 = vperm.xlu1 %5261, %v2310_v43   ;;  %v2211_v45 = vadd.f32 1e-05, %v2109_v15 }
 0x345   :  { %v2212_v31 = vadd.f32 1e-05, %v2110_v26 }
 0x347   :  { %v5595_v23 = vpop.eup %5594  ;;  %5598 = vrsqrt.f32 %v2212_v31 }
 0x348   :  { %5600 = vrsqrt.f32 %v2207_v50  ;;  %v1952_v13 = vpop.xlane.xlu0 %1951  ;;  %v2311_v0 = vmul.f32 %v5687_v49, %v5595_v23  ;;  %v5689_v23 = vld [vmem:[%s8975_s3 + $0x68] sm:$0xff] }
 0x349   :  { %v5597_v46 = vpop.eup %5596  ;;  %v2111_v6 = vmul.f32 0.0051020407, %v1952_v13  ;;  %5602 = vrsqrt.f32 %v2211_v45 }
 0x34a   :  { %v1956_v60 = vpop.xlane.xlu1 %1955  ;;  %2506 = vperm.xlu1 %5261, %v2311_v0   ;;  %v2312_v22 = vmul.f32 %v5688_v21, %v5597_v46  ;;  %v5690_v0 = vld [vmem:[%s8975_s3 + $0x40] sm:$0xff]  ;;  %v5691_v21 = vld [vmem:[%s8975_s3 + $0x70] sm:$0xff] }
 0x34b   :  { %v2213_v52 = vadd.f32 1e-05, %v2111_v6  ;;  %v2112_v29 = vmul.f32 0.0051020407, %v1956_v60 }
 0x34d   :  { %5604 = vrsqrt.f32 %v2213_v52  ;;  %v2214_v5 = vadd.f32 1e-05, %v2112_v29 }
 0x34e   :  { %2511 = vperm.xlu1 %5261, %v2312_v22  }
 0x34f   :  { %5606 = vrsqrt.f32 %v2214_v5 }
 0x350   :  { %v1960_v43 = vpop.xlane.xlu0 %1959 }
 0x351   :  { %v5599_v26 = vpop.eup %5598  ;;  %v2113_v50 = vmul.f32 0.0051020407, %v1960_v43 }
 0x352   :  { %v5601_v15 = vpop.eup %5600  ;;  %v1964_v31 = vpop.xlane.xlu1 %1963  ;;  %v2314_v60 = vmul.f32 %v5689_v23, %v5599_v26  ;;  %v5692_v26 = vld [vmem:[%s8975_s3 + $0x60] sm:$0xff] }
 0x353   :  { %v2215_v45 = vadd.f32 1e-05, %v2113_v50  ;;  %v2114_v13 = vmul.f32 0.0051020407, %v1964_v31  ;;  %v2309_v46 = vmul.f32 %v5690_v0, %v5601_v15  ;;  %v5603_v6 = vpop.eup %5602 }
 0x354   :  { %2521 = vperm.xlu1 %5261, %v2314_v60   ;;  %v2313_v50 = vmul.f32 %v5692_v26, %v5603_v6  ;;  %v5693_v60 = vld [vmem:[%s8975_s3 + $0x78] sm:$0xff] }
 0x355   :  { %5608 = vrsqrt.f32 %v2215_v45  ;;  %v2216_v49 = vadd.f32 1e-05, %v2114_v13 }
 0x357   :  { %v5605_v52 = vpop.eup %5604  ;;  %5610 = vrsqrt.f32 %v2216_v49  ;;  %2496 = vperm.xlu0 %5260, %v2309_v46   ;;  %v5694_v46 = vld [vmem:[%s8975_s3 + $0x80] sm:$0xff] }
 0x358   :  { %v1968_v29 = vpop.xlane.xlu0 %1967  ;;  %v2315_v22 = vmul.f32 %v5691_v21, %v5605_v52 }
 0x359   :  { %v5607_v5 = vpop.eup %5606  ;;  %v2115_v43 = vmul.f32 0.0051020407, %v1968_v29 }
 0x35a   :  { %v1972_v31 = vpop.xlane.xlu1 %1971  ;;  %2526 = vperm.xlu1 %5261, %v2315_v22   ;;  %v2316_v45 = vmul.f32 %v5693_v60, %v5607_v5  ;;  %v5695_v22 = vld [vmem:[%s8975_s3 + $0x88] sm:$0xff] }
 0x35b   :  { %v2217_v15 = vadd.f32 1e-05, %v2115_v43  ;;  %v2116_v23 = vmul.f32 0.0051020407, %v1972_v31  ;;  %2516 = vperm.xlu0 %5260, %v2313_v50  }
 0x35d   :  { %5612 = vrsqrt.f32 %v2217_v15  ;;  %v2218_v13 = vadd.f32 1e-05, %v2116_v23  ;;  %v5696_v23 = vld [vmem:[%s8975_s3 + $0x90] sm:$0xff] }
 0x35e   :  { %2531 = vperm.xlu1 %5261, %v2316_v45  }
 0x35f   :  { %v5609_v49 = vpop.eup %5608  ;;  %5614 = vrsqrt.f32 %v2218_v13 }
 0x360   :  { %v1976_v0 = vpop.xlane.xlu0 %1975  ;;  %v2317_v6 = vmul.f32 %v5694_v46, %v5609_v49 }
 0x361   :  { %v5611_v52 = vpop.eup %5610  ;;  %v2117_v29 = vmul.f32 0.0051020407, %v1976_v0 }
 0x362   :  { %v1980_v21 = vpop.xlane.xlu1 %1979  ;;  %2536 = vperm.xlu0 %5260, %v2317_v6   ;;  %v2318_v5 = vmul.f32 %v5695_v22, %v5611_v52  ;;  %v5697_v6 = vld [vmem:[%s8975_s3 + $0x98] sm:$0xff] }
 0x363   :  { %v2219_v43 = vadd.f32 1e-05, %v2117_v29  ;;  %v2118_v26 = vmul.f32 0.0051020407, %v1980_v21 }
 0x364   :  { %2541 = vperm.xlu1 %5261, %v2318_v5   ;;  %v5698_v5 = vld [vmem:[%s8975_s3 + $0xa0] sm:$0xff] }
 0x365   :  { %5616 = vrsqrt.f32 %v2219_v43  ;;  %v2220_v50 = vadd.f32 1e-05, %v2118_v26 }
 0x367   :  { %v5613_v31 = vpop.eup %5612  ;;  %5618 = vrsqrt.f32 %v2220_v50 }
 0x368   :  { %v1984_v15 = vpop.xlane.xlu0 %1983  ;;  %v2319_v60 = vmul.f32 %v5696_v23, %v5613_v31 }
 0x369   :  { %v5615_v45 = vpop.eup %5614  ;;  %v2119_v13 = vmul.f32 0.0051020407, %v1984_v15  ;;  %v5699_v15 = vld [vmem:[%s8975_s3 + $0xa8] sm:$0xff] }
 0x36a   :  { %v1988_v49 = vpop.xlane.xlu1 %1987  ;;  %2546 = vperm.xlu1 %5261, %v2319_v60   ;;  %v2320_v52 = vmul.f32 %v5697_v6, %v5615_v45 }
 0x36b   :  { %v2221_v0 = vadd.f32 1e-05, %v2119_v13  ;;  %v2120_v46 = vmul.f32 0.0051020407, %v1988_v49 }
 0x36d   :  { %5620 = vrsqrt.f32 %v2221_v0  ;;  %v2222_v29 = vadd.f32 1e-05, %v2120_v46  ;;  %v5700_v46 = vld [vmem:[%s8975_s3 + $0xb0] sm:$0xff] }
 0x36e   :  { %2551 = vperm.xlu1 %5261, %v2320_v52  }
 0x36f   :  { %v5617_v21 = vpop.eup %5616  ;;  %5622 = vrsqrt.f32 %v2222_v29 }
 0x370   :  { %v2321_v43 = vmul.f32 %v5698_v5, %v5617_v21 }
 0x371   :  { %v1992_v22 = vpop.xlane.xlu0 %1991  ;;  %v5619_v26 = vpop.eup %5618 }
 0x372   :  { %v2121_v50 = vmul.f32 0.0051020407, %v1992_v22  ;;  %v1996_v31 = vpop.xlane.xlu1 %1995  ;;  %2556 = vperm.xlu0 %5260, %v2321_v43   ;;  %v2322_v23 = vmul.f32 %v5699_v15, %v5619_v26  ;;  %v5701_v43 = vld [vmem:[%s8975_s3 + $0xb8] sm:$0xff] }
 0x373   :  { %v2122_v45 = vmul.f32 0.0051020407, %v1996_v31 }
 0x374   :  { %v2223_v60 = vadd.f32 1e-05, %v2121_v50  ;;  %2561 = vperm.xlu1 %5261, %v2322_v23   ;;  %v5702_v23 = vld [vmem:[%s8975_s3 + $0xc0] sm:$0xff] }
 0x375   :  { %v2224_v13 = vadd.f32 1e-05, %v2122_v45 }
 0x376   :  { %5624 = vrsqrt.f32 %v2223_v60 }
 0x377   :  { %v5621_v49 = vpop.eup %5620  ;;  %5626 = vrsqrt.f32 %v2224_v13 }
 0x378   :  { %v2323_v6 = vmul.f32 %v5700_v46, %v5621_v49 }
 0x379   :  { %v2000_v0 = vpop.xlane.xlu0 %1999  ;;  %v5623_v52 = vpop.eup %5622 }
 0x37a   :  { %v2123_v29 = vmul.f32 0.0051020407, %v2000_v0  ;;  %v2004_v21 = vpop.xlane.xlu1 %2003  ;;  %2566 = vperm.xlu1 %5261, %v2323_v6   ;;  %v2324_v26 = vmul.f32 %v5701_v43, %v5623_v52  ;;  %v5703_v0 = vld [vmem:[%s8975_s3 + $0xc8] sm:$0xff] }
 0x37b   :  { %v2124_v5 = vmul.f32 0.0051020407, %v2004_v21 }
 0x37c   :  { %v2225_v22 = vadd.f32 1e-05, %v2123_v29 }
 0x37d   :  { %v2226_v50 = vadd.f32 1e-05, %v2124_v5  ;;  %v5704_v5 = vld [vmem:[%s8975_s3 + $0xd0] sm:$0xff] }
 0x37e   :  { %5628 = vrsqrt.f32 %v2225_v22  ;;  %2571 = vperm.xlu1 %5261, %v2324_v26  }
 0x37f   :  { %5630 = vrsqrt.f32 %v2226_v50 }
 0x380   :  { %v5625_v31 = vpop.eup %5624 }
 0x381   :  { %v2008_v15 = vpop.xlane.xlu0 %2007  ;;  %v2325_v60 = vmul.f32 %v5702_v23, %v5625_v31  ;;  %v5627_v45 = vpop.eup %5626 }
 0x382   :  { %v2125_v13 = vmul.f32 0.0051020407, %v2008_v15  ;;  %v2012_v49 = vpop.xlane.xlu1 %2011  ;;  %v2326_v46 = vmul.f32 %v5703_v0, %v5627_v45  ;;  %v5706_v0 = vld [vmem:[%s8975_s3 + $0xe0] sm:$0xff] }
 0x383   :  { %2576 = vperm.xlu0 %5260, %v2325_v60   ;;  %v2126_v52 = vmul.f32 0.0051020407, %v2012_v49  ;;  %v5705_v60 = vld [vmem:[%s8975_s3 + $0xd8] sm:$0xff] }
 0x384   :  { %v2227_v6 = vadd.f32 1e-05, %v2125_v13  ;;  %2581 = vperm.xlu1 %5261, %v2326_v46  }
 0x385   :  { %v2228_v29 = vadd.f32 1e-05, %v2126_v52  ;;  %v5707_v52 = vld [vmem:[%s8975_s3 + $0xe8] sm:$0xff] }
 0x386   :  { %5632 = vrsqrt.f32 %v2227_v6 }
 0x387   :  { %5634 = vrsqrt.f32 %v2228_v29 }
 0x388   :  { %v5629_v21 = vpop.eup %5628  ;;  %v2016_v22 = vpop.xlane.xlu0 %2015 }
 0x389   :  { %v2327_v43 = vmul.f32 %v5704_v5, %v5629_v21  ;;  %v5631_v26 = vpop.eup %5630  ;;  %v2127_v50 = vmul.f32 0.0051020407, %v2016_v22  ;;  %v9235_v21 = vmov 1   ;;  %v5708_v5 = vld [vmem:[%s8975_s3 + $0xf0] sm:$0xff] }
 0x38a   :  { %v2328_v45 = vmul.f32 %v5705_v60, %v5631_v26 }
 0x38b   :  { %v2020_v31 = vpop.xlane.xlu1 %2019  ;;  %2586 = vperm.xlu1 %5261, %v2327_v43   ;;  %v2229_v15 = vadd.f32 1e-05, %v2127_v50  ;;  %v5709_v50 = vld [vmem:[%s8975_s3 + $0xf8] sm:$0xff] }
 0x38c   :  { %v2128_v23 = vmul.f32 0.0051020407, %v2020_v31 }
 0x38d   :  { %5636 = vrsqrt.f32 %v2229_v15  ;;  %v2352_v15 = vld [vmem:[%s8976_s1] sm:$0xff] }
 0x38e   :  { %v2230_v13 = vadd.f32 1e-05, %v2128_v23  ;;  %v2353_v23 = vld [vmem:[%s8976_s1 + $0x8] sm:$0xff] }
 0x38f   :  { %2591 = vperm.xlu1 %5261, %v2328_v45   ;;  %v9236_v45 = vld [vmem:[#allocation58_spill] sm:$0xff] }
 0x390   :  { %v5633_v49 = vpop.eup %5632  ;;  %5638 = vrsqrt.f32 %v2230_v13 }
 0x391   :  { %v2329_v46 = vmul.f32 %v5706_v0, %v5633_v49  ;;  %v5635_v6 = vpop.eup %5634  ;;  %v9237_v49 = vld [vmem:[#allocation59_spill] sm:$0xff] }
 0x392   :  { %v2330_v29 = vmul.f32 %v5707_v52, %v5635_v6  ;;  %v2354_v52 = vld [vmem:[%s8976_s1 + $0x10] sm:$0xff] }
 0x393   :  { %2596 = vperm.xlu0 %5260, %v2329_v46  }
 0x394   :  { %2601 = vperm.xlu1 %5261, %v2330_v29  }
 0x397   :  { %5263 = vset.pattern.permute.xlu0 %v9235_v21  ;;  %v5637_v22 = vpop.eup %5636 }
 0x398   :  { %v2331_v43 = vmul.f32 %v5708_v5, %v5637_v22  ;;  %v2355_v22 = vld [vmem:[%s8976_s1 + $0x18] sm:$0xff] }
 0x39a   :  { %v5639_v26 = vpop.eup %5638  ;;  %2606 = vperm.xlu1 %5261, %v2331_v43   ;;  %v9238_v43 = vld [vmem:[#allocation62_spill] sm:$0xff] }
 0x39b   :  { %v2332_v31 = vmul.f32 %v5709_v50, %v5639_v26  ;;  %v9239_v50 = vld [vmem:[#allocation2_spill] sm:$0xff] }
 0x39e   :  { %2611 = vperm.xlu1 %5261, %v2332_v31  }
 0x3a1   :  { %v2457_v60 = vpop.permute.xlu0 %2456 }
 0x3a2   :  { %v2709_v13 = vmul.f32 %v2457_v60, %v9236_v45  ;;  %v2710_v0 = vmul.f32 %v2457_v60, %v9237_v49  ;;  %5262 = vset.pattern.permute.xlu1 %v9235_v21  ;;  %v2358_v21 = vld [vmem:[%s8976_s1 + $0x30] sm:$0xff] }
 0x3a4   :  { %v2811_v46 = vadd.f32 %v2709_v13, %v2352_v15  ;;  %v2812_v6 = vadd.f32 %v2710_v0, %v2353_v23  ;;  %v2356_v23 = vld [vmem:[%s8976_s1 + $0x20] sm:$0xff]  ;;  %v2357_v13 = vld [vmem:[%s8976_s1 + $0x28] sm:$0xff] }
 0x3a5   :  { %v2462_v29 = vpop.permute.xlu1 %2461 }
 0x3a6   :  { %v2711_v5 = vmul.f32 %v2462_v29, %v6825_v39  ;;  %v2712_v26 = vmul.f32 %v2462_v29, %v9238_v43  ;;  %v3169_v31 = vadd.f32 %v9239_v50, %v2812_v6  ;;  %v3168_v60 = vadd.f32 %v9239_v50, %v2811_v46  ;;  %v9240_v29 = vld [vmem:[#allocation4_spill] sm:$0xff] }
 0x3a8   :  { %v2813_v45 = vadd.f32 %v2711_v5, %v2354_v52  ;;  %v2814_v15 = vadd.f32 %v2712_v26, %v2355_v22  ;;  %v3271_v46 = vmax.f32 %v3169_v31, 0.0  ;;  %v3270_v52 = vmax.f32 %v3168_v60, 0.0  ;;  %v9241_v60 = vld [vmem:[#allocation6_spill] sm:$0xff] }
 0x3a9   :  { %v2467_v49 = vpop.permute.xlu1 %2466 }
 0x3aa   :  { %v2713_v0 = vmul.f32 %v2467_v49, %v6849_v36  ;;  %v2714_v39 = vmul.f32 %v2467_v49, %v6852_v32  ;;  %v3171_v43 = vadd.f32 %v9240_v29, %v2814_v15  ;;  %v3170_v6 = vadd.f32 %v9240_v29, %v2813_v45  ;;  %v2359_v36 = vld [vmem:[%s8976_s1 + $0x38] sm:$0xff]  ;;  %v2360_v29 = vld [vmem:[%s8976_s1 + $0x40] sm:$0xff] }
 0x3ac   :  { %v2815_v22 = vadd.f32 %v2713_v0, %v2356_v23  ;;  %v2816_v5 = vadd.f32 %v2714_v39, %v2357_v13  ;;  %v3273_v26 = vmax.f32 %v3171_v43, 0.0  ;;  %v3272_v50 = vmax.f32 %v3170_v6, 0.0  ;;  %v9242_v39 = vld [vmem:[#allocation67_spill] sm:$0xff]  ;;  %v9244_v6 = vld [vmem:[#allocation74_spill] sm:$0xff] }
 0x3ae   :  { %v2472_v18 = vpop.permute.xlu1 %2471  ;;  %v3475_v32 = vpack.c.bf16 %v3273_v26, %v3271_v46  ;;  %v3474_v49 = vpack.c.bf16 %v3272_v50, %v3270_v52  ;;  %v3173_v45 = vadd.f32 %v9241_v60, %v2816_v5  ;;  %v3172_v23 = vadd.f32 %v9241_v60, %v2815_v22  ;;  %v9245_v52 = vld [vmem:[#allocation3_spill] sm:$0xff]  ;;  %v2362_v60 = vld [vmem:[%s8976_s1 + $0x50] sm:$0xff] }
 0x3af   :  { %v2715_v15 = vmul.f32 %v2472_v18, %v6865_v48  ;;  %v2716_v31 = vmul.f32 %v2472_v18, %v6868_v4  ;;  %v2361_v48 = vld [vmem:[%s8976_s1 + $0x48] sm:$0xff]  ;;  %v9243_v4 = vld [vmem:[#allocation73_spill] sm:$0xff] }
 0x3b0   :  { %4098 = vmatprep.subr.bf16.mxu1 %v3475_v32  ;;  %v3275_v5 = vmax.f32 %v3173_v45, 0.0  ;;  %v3274_v26 = vmax.f32 %v3172_v23, 0.0  ;;  %v9246_v32 = vld [vmem:[#allocation75_spill] sm:$0xff]  ;;  %v9248_v23 = vld [vmem:[#allocation77_spill] sm:$0xff] }
 0x3b1   :  { %v2817_v13 = vadd.f32 %v2715_v15, %v2358_v21  ;;  %v2818_v0 = vadd.f32 %v2716_v31, %v2359_v36  ;;  %4099 = vmatpush1.bf16.msra.mxu1 %v3474_v49  ;;  %v1670_v31 = vmul.f32 0.0051020407, %v7283_v10 }
 0x3b2   :  { %1592 = vadd.xlane.f32.xlu0 %v9242_v39  ;;  %v2477_v43 = vpop.permute.xlu1 %2476 }
 0x3b3   :  { %v2717_v18 = vmul.f32 %v2477_v43, %v9243_v4  ;;  %v2718_v46 = vmul.f32 %v2477_v43, %v9244_v6  ;;  %v3175_v22 = vadd.f32 %v9245_v52, %v2818_v0  ;;  %v3174_v21 = vadd.f32 %v9245_v52, %v2817_v13  ;;  %v2363_v0 = vld [vmem:[%s8976_s1 + $0x58] sm:$0xff]  ;;  %v9247_v13 = vld [vmem:[#allocation76_spill] sm:$0xff] }
 0x3b4   :  { %v9249_v4 = vld [vmem:[#allocation5_spill] sm:$0xff] }
 0x3b5   :  { %v2819_v50 = vadd.f32 %v2717_v18, %v2360_v29  ;;  %v2820_v36 = vadd.f32 %v2718_v46, %v2361_v48  ;;  %v3277_v49 = vmax.f32 %v3175_v22, 0.0  ;;  %v3276_v15 = vmax.f32 %v3174_v21, 0.0  ;;  %v9250_v52 = vld [vmem:[#allocation41_spill] sm:$0xff]  ;;  %v2364_v21 = vld [vmem:[%s8976_s1 + $0x60] sm:$0xff] }
 0x3b6   :  { %1600 = vadd.xlane.f32.xlu0 %v9246_v32  ;;  %v2482_v39 = vpop.permute.xlu1 %2481  ;;  %v7455_v22 = vsub.f32 %v9250_v52, %v1670_v31  ;;  %v9251_v32 = vld [vmem:[#allocation8_spill] sm:$0xff]  ;;  %v9254_v52 = vld [vmem:[#allocation10_spill] sm:$0xff] }
 0x3b7   :  { %v2719_v45 = vmul.f32 %v2482_v39, %v9247_v13  ;;  %v2720_v29 = vmul.f32 %v2482_v39, %v9248_v23  ;;  %v3477_v48 = vpack.c.bf16 %v3277_v49, %v3275_v5  ;;  %v3476_v43 = vpack.c.bf16 %v3276_v15, %v3274_v26  ;;  %v2365_v5 = vld [vmem:[%s8976_s1 + $0x68] sm:$0xff] }
 0x3b8   :  { %v3177_v18 = vadd.f32 %v9249_v4, %v2820_v36  ;;  %v3176_v6 = vadd.f32 %v9249_v4, %v2819_v50  ;;  %v1672_v15 = vmul.f32 0.0051020407, %v7285_v53  ;;  %v2367_v53 = vld [vmem:[%s8976_s1 + $0x78] sm:$0xff] }
 0x3b9   :  { %v2821_v10 = vadd.f32 %v2719_v45, %v2362_v60  ;;  %v2822_v46 = vadd.f32 %v2720_v29, %v2363_v0  ;;  %4100 = vmatprep.subr.bf16.mxu1 %v3477_v48  ;;  %v9252_v29 = vld [vmem:[#allocation40_spill] sm:$0xff] }
 0x3ba   :  { %1608 = vadd.xlane.f32.xlu0 %v6936_v56  ;;  %v2487_v26 = vpop.permute.xlu1 %2486  ;;  %4101 = vmatpush1.bf16.msra.mxu1 %v3476_v43  ;;  %v3279_v60 = vmax.f32 %v3177_v18, 0.0  ;;  %v3278_v0 = vmax.f32 %v3176_v6, 0.0  ;;  %v7470_v48 = vsub.f32 %v9252_v29, %v1670_v31  ;;  %v9253_v31 = vld [vmem:[#allocation48_spill] sm:$0xff] }
 0x3bb   :  { %v2721_v50 = vmul.f32 %v2487_v26, %v6930_v7  ;;  %v2722_v36 = vmul.f32 %v2487_v26, %v6933_v57  ;;  %v3179_v49 = vadd.f32 %v9251_v32, %v2822_v46  ;;  %v3178_v56 = vadd.f32 %v9251_v32, %v2821_v10  ;;  %v2366_v7 = vld [vmem:[%s8976_s1 + $0x70] sm:$0xff] }
 0x3bc   :  { %v1856_v57 = vmul.f32 %v7455_v22, %v7455_v22  ;;  %v7483_v10 = vsub.f32 %v9253_v31, %v1672_v15  ;;  %v1674_v46 = vmul.f32 0.0051020407, %v7289_v62  ;;  %v1673_v31 = vmul.f32 0.0051020407, %v7291_v30 }
 0x3bd   :  { %v2823_v39 = vadd.f32 %v2721_v50, %v2364_v21  ;;  %v2824_v13 = vadd.f32 %v2722_v36, %v2365_v5  ;;  %v3281_v45 = vmax.f32 %v3179_v49, 0.0  ;;  %v3280_v23 = vmax.f32 %v3178_v56, 0.0  ;;  %v9256_v36 = vld [vmem:[#allocation47_spill] sm:$0xff] }
 0x3be   :  { %1616 = vadd.xlane.f32.xlu0 %v6976_v47  ;;  %v2492_v43 = vpop.permute.xlu1 %2491  ;;  %v7493_v32 = vsub.f32 %v9256_v36, %v1672_v15  ;;  %v9257_v49 = vld [vmem:[#allocation7_spill] sm:$0xff]  ;;  %v2371_v36 = vld [vmem:[%s8976_s1 + $0x98] sm:$0xff] }
 0x3bf   :  { %v2723_v4 = vmul.f32 %v2492_v43, %v6939_v55  ;;  %v2724_v47 = vmul.f32 %v2492_v43, %v6942_v58  ;;  %v3479_v18 = vpack.c.bf16 %v3281_v45, %v3279_v60  ;;  %v3478_v6 = vpack.c.bf16 %v3280_v23, %v3278_v0  ;;  %v9255_v58 = vld [vmem:[#allocation65_spill] sm:$0xff]  ;;  %v9258_v0 = vld [vmem:[#allocation55_spill] sm:$0xff] }
 0x3c0   :  { %v3181_v21 = vadd.f32 %v9254_v52, %v2824_v13  ;;  %v3180_v50 = vadd.f32 %v9254_v52, %v2823_v39  ;;  %v1855_v55 = vmul.f32 %v7470_v48, %v7470_v48  ;;  %v2021_v60 = vsel %vm1433_vm2, %v1856_v57, 0.0 }
 0x3c1   :  { %v2825_v5 = vadd.f32 %v2723_v4, %v2366_v7  ;;  %v2826_v26 = vadd.f32 %v2724_v47, %v2367_v53  ;;  %4102 = vmatprep.subr.bf16.mxu1 %v3479_v18  ;;  %v7501_v39 = vsub.f32 %v9258_v0, %v1674_v46  ;;  %v1671_v7 = vmul.f32 0.0051020407, %v7287_v34  ;;  %v9259_v53 = vld [vmem:[#allocation71_spill] sm:$0xff]  ;;  %v9260_v4 = vld [vmem:[#allocation54_spill] sm:$0xff] }
 0x3c2   :  { %1624 = vadd.xlane.f32.xlu0 %v7018_v12  ;;  %4103 = vmatpush1.bf16.msra.mxu1 %v3478_v6  ;;  %v1860_v12 = vmul.f32 %v7483_v10, %v7483_v10  ;;  %v3283_v45 = vmax.f32 %v3181_v21, 0.0  ;;  %v3282_v29 = vmax.f32 %v3180_v50, 0.0  ;;  %v2022_v43 = vadd.f32 %v2021_v60, %v1855_v55  ;;  %v9261_v21 = vld [vmem:[#allocation81_spill] sm:$0xff]  ;;  %v9263_v55 = vld [vmem:[#allocation51_spill] sm:$0xff] }
 0x3c3   :  { %1588 = vadd.xlane.f32.xlu1 %v9255_v58  ;;  %v3183_v62 = vadd.f32 %v9257_v49, %v2826_v26  ;;  %v3182_v56 = vadd.f32 %v9257_v49, %v2825_v5  ;;  %v2502_v13 = vpop.permute.xlu1 %2501  ;;  %v1859_v57 = vmul.f32 %v7493_v32, %v7493_v32  ;;  %v7509_v47 = vsub.f32 %v9260_v4, %v1674_v46  ;;  %v9262_v5 = vld [vmem:[#allocation44_spill] sm:$0xff]  ;;  %v9264_v0 = vld [vmem:[#allocation43_spill] sm:$0xff]  ;;  %v9266_v4 = vld [vmem:[#allocation94_spill] sm:$0xff] }
 0x3c4   :  { %v2029_v52 = vsel %vm1433_vm2, %v1860_v12, 0.0  ;;  %v7517_v26 = vsub.f32 %v9262_v5, %v1671_v7  ;;  %v2728_v50 = vmul.f32 %v2502_v13, %v6982_v2  ;;  %v7523_v58 = vsub.f32 %v9263_v55, %v1673_v31 }
 0x3c5   :  { %v3285_v23 = vmax.f32 %v3183_v62, 0.0  ;;  %v3284_v15 = vmax.f32 %v3182_v56, 0.0  ;;  %v1863_v46 = vmul.f32 %v7509_v47, %v7509_v47  ;;  %v2030_v30 = vadd.f32 %v2029_v52, %v1859_v57  ;;  %v2370_v56 = vld [vmem:[%s8976_s1 + $0x90] sm:$0xff] }
 0x3c6   :  { %1632 = vadd.xlane.f32.xlu0 %v7058_v14  ;;  %v1864_v14 = vmul.f32 %v7501_v39, %v7501_v39  ;;  %v2727_v49 = vmul.f32 %v2502_v13, %v6979_v3  ;;  %v2373_v3 = vld [vmem:[%s8976_s1 + $0xa8] sm:$0xff]  ;;  %v9265_v13 = vld [vmem:[#allocation50_spill] sm:$0xff] }
 0x3c7   :  { %1596 = vadd.xlane.f32.xlu1 %v9259_v53  ;;  %v3481_v18 = vpack.c.bf16 %v3285_v23, %v3283_v45  ;;  %v3480_v6 = vpack.c.bf16 %v3284_v15, %v3282_v29  ;;  %v7536_v45 = vsub.f32 %v9264_v0, %v1671_v7  ;;  %v2372_v23 = vld [vmem:[%s8976_s1 + $0xa0] sm:$0xff]  ;;  %v2830_v29 = vadd.f32 %v2728_v50, %v2371_v36  ;;  %v9268_v50 = vld [vmem:[#allocation12_spill] sm:$0xff] }
 0x3c8   :  { %v2037_v62 = vsel %vm1433_vm2, %v1864_v14, 0.0  ;;  %v1862_v53 = vmul.f32 %v7523_v58, %v7523_v58 }
 0x3c9   :  { %4104 = vmatprep.subr.bf16.mxu1 %v3481_v18  ;;  %v2507_v34 = vpop.permute.xlu1 %2506  ;;  %v2038_v7 = vadd.f32 %v2037_v62, %v1863_v46  ;;  %v1857_v52 = vmul.f32 %v7536_v45, %v7536_v45 }
 0x3ca   :  { %2023 = vadd.xlane.f32.xlu0 %v2022_v43  ;;  %4105 = vmatpush1.bf16.msra.mxu1 %v3480_v6  ;;  %v2729_v60 = vmul.f32 %v2507_v34, %v7012_v35  ;;  %v2730_v2 = vmul.f32 %v2507_v34, %v7015_v42  ;;  %v1858_v35 = vmul.f32 %v7517_v26, %v7517_v26  ;;  %v2033_v62 = vsel %vm1433_vm2, %v1862_v53, 0.0  ;;  %v2379_v53 = vld [vmem:[%s8976_s1 + $0xd8] sm:$0xff] }
 0x3cb   :  { %1604 = vadd.xlane.f32.xlu1 %v9261_v21  ;;  %v7548_v42 = vsub.f32 %v9265_v13, %v1673_v31  ;;  %v2829_v43 = vadd.f32 %v2727_v49, %v2370_v56  ;;  %v2375_v31 = vld [vmem:[%s8976_s1 + $0xb8] sm:$0xff]  ;;  %v9267_v21 = vld [vmem:[#allocation92_spill] sm:$0xff]  ;;  %v9269_v56 = vld [vmem:[#allocation14_spill] sm:$0xff] }
 0x3cc   :  { %v2831_v6 = vadd.f32 %v2729_v60, %v2372_v23  ;;  %v2832_v14 = vadd.f32 %v2730_v2, %v2373_v3  ;;  %v2025_v46 = vsel %vm1433_vm2, %v1858_v35, 0.0  ;;  %v9271_v23 = vld [vmem:[#allocation57_spill] sm:$0xff]  ;;  %v2368_v13 = vld [vmem:[%s8976_s1 + $0x80] sm:$0xff] }
 0x3cd   :  { %v2512_v12 = vpop.permute.xlu1 %2511  ;;  %v3186_v49 = vadd.f32 %v9268_v50, %v2829_v43  ;;  %v9273_v43 = vld [vmem:[#allocation87_spill] sm:$0xff] }
 0x3ce   :  { %2031 = vadd.xlane.f32.xlu0 %v2030_v30  ;;  %v1585_v15 = vpop.xlane.xlu0 %1584  ;;  %v2731_v57 = vmul.f32 %v2512_v12, %v7021_v1  ;;  %v2732_v18 = vmul.f32 %v2512_v12, %v9266_v4  ;;  %v1861_v1 = vmul.f32 %v7548_v42, %v7548_v42  ;;  %v7567_v30 = vadd.f32 %v9268_v50, %v2830_v29  ;;  %v9270_v12 = vld [vmem:[#allocation56_spill] sm:$0xff]  ;;  %v2369_v29 = vld [vmem:[%s8976_s1 + $0x88] sm:$0xff] }
 0x3cf   :  { %1612 = vadd.xlane.f32.xlu1 %v6962_v54  ;;  %v2374_v54 = vld [vmem:[%s8976_s1 + $0xb0] sm:$0xff]  ;;  %v1675_v34 = vmul.f32 0.0051020407, %v1585_v15  ;;  %v3189_v60 = vadd.f32 %v9269_v56, %v2832_v14  ;;  %v7573_v2 = vadd.f32 %v9269_v56, %v2831_v6 }
 0x3d0   :  { %v2833_v55 = vadd.f32 %v2731_v57, %v2374_v54  ;;  %v2834_v36 = vadd.f32 %v2732_v18, %v2375_v31  ;;  %v9274_v4 = vld [vmem:[#allocation88_spill] sm:$0xff]  ;;  %v3289_v18 = vmax.f32 %v7567_v30, 0.0  ;;  %v2034_v6 = vadd.f32 %v2033_v62, %v1861_v1  ;;  %v9275_v31 = vld [vmem:[#allocation11_spill] sm:$0xff]  ;;  %v9276_v62 = vld [vmem:[#allocation9_spill] sm:$0xff] }
 0x3d1   :  { %v7576_v0 = vsub.f32 %v9270_v12, %v1675_v34  ;;  %v7579_v3 = vsub.f32 %v9271_v23, %v1675_v34  ;;  %v3288_v54 = vmax.f32 %v3186_v49, 0.0  ;;  %v3291_v56 = vmax.f32 %v3189_v60, 0.0  ;;  %v2381_v23 = vld [vmem:[%s8976_s1 + $0xe8] sm:$0xff] }
 0x3d2   :  { %2039 = vadd.xlane.f32.xlu0 %v2038_v7  ;;  %v2026_v7 = vadd.f32 %v2025_v46, %v1857_v52  ;;  %v3191_v34 = vadd.f32 %v9275_v31, %v2834_v36  ;;  %v3290_v12 = vmax.f32 %v7573_v2, 0.0  ;;  %v2377_v36 = vld [vmem:[%s8976_s1 + $0xc8] sm:$0xff] }
 0x3d3   :  { %1620 = vadd.xlane.f32.xlu1 %v9267_v21  ;;  %v2522_v5 = vpop.permute.xlu1 %2521  ;;  %9272 = vst [vmem:[#allocation58_spill] sm:$0xff] %v7579_v3  ;;  %v3190_v21 = vadd.f32 %v9275_v31, %v2833_v55  ;;  %v1865_v1 = vmul.f32 %v7576_v0, %v7576_v0  ;;  %v2376_v55 = vld [vmem:[%s8976_s1 + $0xc0] sm:$0xff]  ;;  %v2383_v31 = vld [vmem:[%s8976_s1 + $0xf8] sm:$0xff] }
 0x3d4   :  { %v2736_v35 = vmul.f32 %v2522_v5, %v7064_v19  ;;  %v2735_v14 = vmul.f32 %v2522_v5, %v7061_v20  ;;  %v1866_v20 = vmul.f32 %v7579_v3, %v7579_v3 }
 0x3d6   :  { %v2497_v15 = vpop.permute.xlu0 %2496  ;;  %v2838_v5 = vadd.f32 %v2736_v35, %v2379_v53 }
 0x3d7   :  { %1628 = vadd.xlane.f32.xlu1 %v7044_v11  ;;  %v2725_v57 = vmul.f32 %v2497_v15, %v9273_v43  ;;  %v2726_v19 = vmul.f32 %v2497_v15, %v9274_v4  ;;  %v2378_v11 = vld [vmem:[%s8976_s1 + $0xd0] sm:$0xff]  ;;  %v3293_v43 = vmax.f32 %v3191_v34, 0.0 }
 0x3d8   :  { %v2837_v15 = vadd.f32 %v2735_v14, %v2378_v11  ;;  %v2380_v14 = vld [vmem:[%s8976_s1 + $0xe0] sm:$0xff]  ;;  %v9279_v11 = vld [vmem:[#allocation16_spill] sm:$0xff] }
 0x3d9   :  { %v2827_v52 = vadd.f32 %v2725_v57, %v2368_v13  ;;  %v2828_v46 = vadd.f32 %v2726_v19, %v2369_v29  ;;  %v2527_v50 = vpop.permute.xlu1 %2526  ;;  %v9278_v13 = vld [vmem:[#allocation100_spill] sm:$0xff]  ;;  %v3292_v57 = vmax.f32 %v3190_v21, 0.0 }
 0x3da   :  { %v2738_v30 = vmul.f32 %v2527_v50, %v7089_v17  ;;  %v2517_v49 = vpop.permute.xlu0 %2516  ;;  %v9277_v17 = vld [vmem:[#allocation99_spill] sm:$0xff]  ;;  %v2737_v53 = vmul.f32 %v2527_v50, %v7086_v59  ;;  %v3195_v50 = vadd.f32 %v9279_v11, %v2838_v5 }
 0x3db   :  { %1636 = vadd.xlane.f32.xlu1 %v7082_v16  ;;  %v3184_v60 = vadd.f32 %v9276_v62, %v2827_v52  ;;  %v3185_v2 = vadd.f32 %v9276_v62, %v2828_v46  ;;  %v2733_v35 = vmul.f32 %v2517_v49, %v9277_v17  ;;  %v2734_v29 = vmul.f32 %v2517_v49, %v9278_v13  ;;  %v2382_v16 = vld [vmem:[%s8976_s1 + $0xf0] sm:$0xff] }
 0x3dc   :  { %v2840_v59 = vadd.f32 %v2738_v30, %v2381_v23  ;;  %v3485_v13 = vpack.c.bf16 %v3293_v43, %v3291_v56  ;;  %v2839_v3 = vadd.f32 %v2737_v53, %v2380_v14  ;;  %v3194_v30 = vadd.f32 %v9279_v11, %v2837_v15  ;;  %v2386_v53 = vld [vmem:[%s8976_s1 + $0x110] sm:$0xff] }
 0x3dd   :  { %v2835_v4 = vadd.f32 %v2733_v35, %v2376_v55  ;;  %v2836_v19 = vadd.f32 %v2734_v29, %v2377_v36  ;;  %v2532_v52 = vpop.permute.xlu1 %2531  ;;  %v3287_v46 = vmax.f32 %v3185_v2, 0.0  ;;  %v3286_v62 = vmax.f32 %v3184_v60, 0.0  ;;  %v9280_v55 = vld [vmem:[#allocation13_spill] sm:$0xff] }
 0x3de   :  { %v2739_v34 = vmul.f32 %v2532_v52, %v7092_v44  ;;  %v2740_v21 = vmul.f32 %v2532_v52, %v7095_v40  ;;  %v2041_v29 = vsel %vm1433_vm2, %v1866_v20, 0.0  ;;  %v2385_v44 = vld [vmem:[%s8976_s1 + $0x108] sm:$0xff] }
 0x3df   :  { %2027 = vadd.xlane.f32.xlu1 %v2026_v7  ;;  %v3192_v36 = vadd.f32 %v9280_v55, %v2835_v4  ;;  %v3193_v49 = vadd.f32 %v9280_v55, %v2836_v19  ;;  %v3483_v17 = vpack.c.bf16 %v3289_v18, %v3287_v46  ;;  %v3482_v35 = vpack.c.bf16 %v3288_v54, %v3286_v62  ;;  %v2384_v18 = vld [vmem:[%s8976_s1 + $0x100] sm:$0xff]  ;;  %v9281_v20 = vld [vmem:[#allocation15_spill] sm:$0xff] }
 0x3e0   :  { %v2841_v2 = vadd.f32 %v2739_v34, %v2382_v16  ;;  %v2842_v60 = vadd.f32 %v2740_v21, %v2383_v31  ;;  %v3484_v7 = vpack.c.bf16 %v3292_v57, %v3290_v12  ;;  %v2387_v12 = vld [vmem:[%s8976_s1 + $0x118] sm:$0xff]  ;;  %v2042_v43 = vadd.f32 %v2041_v29, %v1865_v1  ;;  %v9283_v34 = vld [vmem:[#allocation18_spill] sm:$0xff] }
 0x3e1   :  { %4106 = vmatprep.subr.bf16.mxu1 %v3483_v17  ;;  %v2537_v40 = vpop.permute.xlu0 %2536  ;;  %v3295_v5 = vmax.f32 %v3193_v49, 0.0  ;;  %v3297_v57 = vmax.f32 %v3195_v50, 0.0  ;;  %v3294_v4 = vmax.f32 %v3192_v36, 0.0  ;;  %v3296_v50 = vmax.f32 %v3194_v30, 0.0  ;;  %v9284_v36 = vld [vmem:[#allocation25_spill] sm:$0xff] }
 0x3e2   :  { %v2741_v54 = vmul.f32 %v2537_v40, %v7108_v51  ;;  %v2742_v56 = vmul.f32 %v2537_v40, %v7111_v63  ;;  %4107 = vmatpush1.bf16.msra.mxu1 %v3482_v35  ;;  %v3199_v23 = vadd.f32 %v9281_v20, %v2842_v60  ;;  %v9282_v51 = vld [vmem:[#allocation19_spill] sm:$0xff]  ;;  %v3198_v31 = vadd.f32 %v9281_v20, %v2841_v2  ;;  %v2388_v60 = vld [vmem:[%s8976_s1 + $0x120] sm:$0xff]  ;;  %v2390_v20 = vld [vmem:[%s8976_s1 + $0x130] sm:$0xff] }
 0x3e3   :  { %2035 = vadd.xlane.f32.xlu1 %v2034_v6  ;;  %v2542_v15 = vpop.permute.xlu1 %2541  ;;  %4108 = vmatprep.subr.bf16.mxu1 %v3485_v13  ;;  %v3197_v19 = vadd.f32 %v9282_v51, %v2840_v59  ;;  %v3487_v46 = vpack.c.bf16 %v3297_v57, %v3295_v5  ;;  %v3196_v14 = vadd.f32 %v9282_v51, %v2839_v3  ;;  %v2389_v13 = vld [vmem:[%s8976_s1 + $0x128] sm:$0xff] }
 0x3e4   :  { %v2844_v63 = vadd.f32 %v2742_v56, %v2385_v44  ;;  %v2743_v6 = vmul.f32 %v2542_v15, %v7114_v9  ;;  %v2744_v16 = vmul.f32 %v2542_v15, %v7117_v24  ;;  %v2843_v52 = vadd.f32 %v2741_v54, %v2384_v18  ;;  %v2393_v51 = vld [vmem:[%s8976_s1 + $0x148] sm:$0xff] }
 0x3e5   :  { %v3301_v62 = vmax.f32 %v3199_v23, 0.0  ;;  %v3299_v59 = vmax.f32 %v3197_v19, 0.0  ;;  %v3486_v55 = vpack.c.bf16 %v3296_v50, %v3294_v4  ;;  %v3300_v9 = vmax.f32 %v3198_v31, 0.0  ;;  %v2391_v23 = vld [vmem:[%s8976_s1 + $0x138] sm:$0xff]  ;;  %v2392_v4 = vld [vmem:[%s8976_s1 + $0x140] sm:$0xff] }
 0x3e6   :  { %v3201_v21 = vadd.f32 %v9283_v34, %v2844_v63  ;;  %v2845_v11 = vadd.f32 %v2743_v6, %v2386_v53  ;;  %v2846_v1 = vadd.f32 %v2744_v16, %v2387_v12  ;;  %4109 = vmatpush1.bf16.msra.mxu1 %v3484_v7  ;;  %v3200_v17 = vadd.f32 %v9283_v34, %v2843_v52  ;;  %v9285_v63 = vld [vmem:[#allocation29_spill] sm:$0xff]  ;;  %v9286_v31 = vld [vmem:[#allocation22_spill] sm:$0xff] }
 0x3e7   :  { %2043 = vadd.xlane.f32.xlu1 %v2042_v43  ;;  %4110 = vmatprep.subr.bf16.mxu1 %v3487_v46  ;;  %v3489_v2 = vpack.c.bf16 %v3301_v62, %v3299_v59  ;;  %v3298_v3 = vmax.f32 %v3196_v14, 0.0  ;;  %v2394_v62 = vld [vmem:[%s8976_s1 + $0x150] sm:$0xff]  ;;  %v2395_v14 = vld [vmem:[%s8976_s1 + $0x158] sm:$0xff] }
 0x3e8   :  { %v3203_v24 = vadd.f32 %v9284_v36, %v2846_v1  ;;  %v3202_v49 = vadd.f32 %v9284_v36, %v2845_v11  ;;  %v3303_v40 = vmax.f32 %v3201_v21, 0.0  ;;  %v3302_v12 = vmax.f32 %v3200_v17, 0.0 }
 0x3e9   :  { %v2547_v35 = vpop.permute.xlu1 %2546  ;;  %v3488_v5 = vpack.c.bf16 %v3300_v9, %v3298_v3  ;;  %v9287_v9 = vld [vmem:[#allocation26_spill] sm:$0xff]  ;;  %v9288_v3 = vld [vmem:[#allocation33_spill] sm:$0xff] }
 0x3ea   :  { %v2745_v29 = vmul.f32 %v2547_v35, %v7130_v27  ;;  %v2746_v44 = vmul.f32 %v2547_v35, %v7133_v38  ;;  %4111 = vmatpush1.bf16.msra.mxu1 %v3486_v55  ;;  %v3305_v7 = vmax.f32 %v3203_v24, 0.0  ;;  %v3304_v18 = vmax.f32 %v3202_v49, 0.0 }
 0x3eb   :  { %4112 = vmatprep.subr.bf16.mxu1 %v3489_v2 }
 0x3ec   :  { %v3491_v30 = vpack.c.bf16 %v3305_v7, %v3303_v40  ;;  %v2847_v54 = vadd.f32 %v2745_v29, %v2388_v60  ;;  %v2848_v56 = vadd.f32 %v2746_v44, %v2389_v13  ;;  %v3490_v57 = vpack.c.bf16 %v3304_v18, %v3302_v12  ;;  %v2396_v44 = vld [vmem:[%s8976_s1 + $0x160] sm:$0xff]  ;;  %v2397_v40 = vld [vmem:[%s8976_s1 + $0x168] sm:$0xff] }
 0x3ed   :  { %v2552_v27 = vpop.permute.xlu1 %2551 }
 0x3ee   :  { %v2747_v38 = vmul.f32 %v2552_v27, %v7136_v28  ;;  %v2748_v53 = vmul.f32 %v2552_v27, %v7139_v8  ;;  %4113 = vmatpush1.bf16.msra.mxu1 %v3488_v5  ;;  %v3205_v6 = vadd.f32 %v9285_v63, %v2848_v56  ;;  %v3204_v28 = vadd.f32 %v9285_v63, %v2847_v54  ;;  %v9289_v5 = vld [vmem:[#allocation103_spill] sm:$0xff] }
 0x3ef   :  { %4114 = vmatprep.subr.bf16.mxu1 %v3491_v30  ;;  %v2401_v63 = vld [vmem:[%s8976_s1 + $0x188] sm:$0xff] }
 0x3f0   :  { %v2849_v15 = vadd.f32 %v2747_v38, %v2390_v20  ;;  %v2850_v43 = vadd.f32 %v2748_v53, %v2391_v23  ;;  %v3307_v1 = vmax.f32 %v3205_v6, 0.0  ;;  %v3306_v59 = vmax.f32 %v3204_v28, 0.0  ;;  %v2398_v38 = vld [vmem:[%s8976_s1 + $0x170] sm:$0xff]  ;;  %v2399_v53 = vld [vmem:[%s8976_s1 + $0x178] sm:$0xff]  ;;  %v9292_v28 = vld [vmem:[#allocation39_spill] sm:$0xff] }
 0x3f1   :  { %v2557_v19 = vpop.permute.xlu0 %2556 }
 0x3f2   :  { %v2749_v8 = vmul.f32 %v2557_v19, %v7152_v41  ;;  %v2750_v16 = vmul.f32 %v2557_v19, %v7155_v61  ;;  %4115 = vmatpush1.bf16.msra.mxu1 %v3490_v57  ;;  %v3207_v52 = vadd.f32 %v9286_v31, %v2850_v43  ;;  %v3206_v46 = vadd.f32 %v9286_v31, %v2849_v15  ;;  %v9290_v15 = vld [vmem:[#allocation104_spill] sm:$0xff]  ;;  %v9291_v43 = vld [vmem:[#allocation105_spill] sm:$0xff]  ;;  %v2400_v19 = vld [vmem:[%s8976_s1 + $0x180] sm:$0xff] }
 0x3f3   :  { %v2562_v34 = vpop.permute.xlu1 %2561  ;;  %v9293_v31 = vld [vmem:[#allocation32_spill] sm:$0xff] }
 0x3f4   :  { %v2851_v21 = vadd.f32 %v2749_v8, %v2392_v4  ;;  %v2852_v11 = vadd.f32 %v2750_v16, %v2393_v51  ;;  %v2751_v41 = vmul.f32 %v2562_v34, %v7158_v37  ;;  %v2752_v61 = vmul.f32 %v2562_v34, %v7161_v25  ;;  %v9295_v34 = vld [vmem:[#allocation107_spill] sm:$0xff] }
 0x3f5   :  { %v3309_v50 = vmax.f32 %v3207_v52, 0.0  ;;  %v3308_v55 = vmax.f32 %v3206_v46, 0.0 }
 0x3f6   :  { %v3208_v36 = vadd.f32 %v9287_v9, %v2851_v21  ;;  %v3209_v24 = vadd.f32 %v9287_v9, %v2852_v11  ;;  %v2853_v49 = vadd.f32 %v2751_v41, %v2394_v62  ;;  %v2854_v17 = vadd.f32 %v2752_v61, %v2395_v14  ;;  %v9294_v62 = vld [vmem:[#allocation106_spill] sm:$0xff]  ;;  %v2402_v11 = vld [vmem:[%s8976_s1 + $0x190] sm:$0xff]  ;;  %v2403_v41 = vld [vmem:[%s8976_s1 + $0x198] sm:$0xff] }
 0x3f7   :  { %v3493_v35 = vpack.c.bf16 %v3309_v50, %v3307_v1  ;;  %v3492_v2 = vpack.c.bf16 %v3308_v55, %v3306_v59  ;;  %v9296_v59 = vld [vmem:[#allocation108_spill] sm:$0xff]  ;;  %v9297_v9 = vld [vmem:[#allocation17_spill] sm:$0xff] }
 0x3f8   :  { %v3211_v60 = vadd.f32 %v9288_v3, %v2854_v17  ;;  %v3210_v13 = vadd.f32 %v9288_v3, %v2853_v49  ;;  %v3311_v29 = vmax.f32 %v3209_v24, 0.0  ;;  %v3310_v25 = vmax.f32 %v3208_v36, 0.0 }
 0x3f9   :  { %4116 = vmatprep.subr.bf16.mxu1 %v3493_v35  ;;  %v2567_v37 = vpop.permute.xlu1 %2566 }
 0x3fa   :  { %v2753_v7 = vmul.f32 %v2567_v37, %v7174_v33  ;;  %v2754_v30 = vmul.f32 %v2567_v37, %v9289_v5  ;;  %4117 = vmatpush1.bf16.msra.mxu1 %v3492_v2  ;;  %v3313_v18 = vmax.f32 %v3211_v60, 0.0  ;;  %v3312_v54 = vmax.f32 %v3210_v13, 0.0  ;;  %v9298_v2 = vld [vmem:[#allocation38_spill] sm:$0xff] }
 0x3fc   :  { %v3495_v56 = vpack.c.bf16 %v3313_v18, %v3311_v29  ;;  %v3494_v20 = vpack.c.bf16 %v3312_v54, %v3310_v25  ;;  %v2855_v23 = vadd.f32 %v2753_v7, %v2396_v44  ;;  %v2856_v27 = vadd.f32 %v2754_v30, %v2397_v40  ;;  %v9299_v44 = vld [vmem:[#allocation45_spill] sm:$0xff]  ;;  %v2404_v54 = vld [vmem:[%s8976_s1 + $0x1a0] sm:$0xff] }
 0x3fd   :  { %v2572_v12 = vpop.permute.xlu1 %2571 }
 0x3fe   :  { %v2755_v33 = vmul.f32 %v2572_v12, %v9290_v15  ;;  %v2756_v57 = vmul.f32 %v2572_v12, %v9291_v43  ;;  %4118 = vmatprep.subr.bf16.mxu1 %v3495_v56  ;;  %v3213_v8 = vadd.f32 %v9292_v28, %v2856_v27  ;;  %v3212_v16 = vadd.f32 %v9292_v28, %v2855_v23  ;;  %v2405_v56 = vld [vmem:[%s8976_s1 + $0x1a8] sm:$0xff]  ;;  %v9301_v27 = vld [vmem:[#allocation21_spill] sm:$0xff]  ;;  %v9303_v28 = vld [vmem:[#allocation24_spill] sm:$0xff] }
 0x3ff   :  { %4119 = vmatpush1.bf16.msra.mxu1 %v3494_v20  ;;  %v9300_v20 = vld [vmem:[#allocation20_spill] sm:$0xff] }
 0x400   :  { %v2857_v4 = vadd.f32 %v2755_v33, %v2398_v38  ;;  %v2858_v51 = vadd.f32 %v2756_v57, %v2399_v53  ;;  %v3315_v24 = vmax.f32 %v3213_v8, 0.0  ;;  %v3314_v17 = vmax.f32 %v3212_v16, 0.0 }
 0x402   :  { %v2577_v6 = vpop.permute.xlu0 %2576  ;;  %v3214_v52 = vadd.f32 %v9293_v31, %v2857_v4  ;;  %v3215_v46 = vadd.f32 %v9293_v31, %v2858_v51  ;;  %v2406_v4 = vld [vmem:[%s8976_s1 + $0x1b0] sm:$0xff]  ;;  %v2407_v51 = vld [vmem:[%s8976_s1 + $0x1b8] sm:$0xff] }
 0x403   :  { %v2757_v14 = vmul.f32 %v2577_v6, %v9294_v62  ;;  %v2758_v21 = vmul.f32 %v2577_v6, %v9295_v34  ;;  %v2582_v61 = vpop.permute.xlu1 %2581  ;;  %v2409_v34 = vld [vmem:[%s8976_s1 + $0x1c8] sm:$0xff] }
 0x404   :  { %v2759_v55 = vmul.f32 %v2582_v61, %v9296_v59  ;;  %v2760_v36 = vmul.f32 %v2582_v61, %v9297_v9  ;;  %v3317_v49 = vmax.f32 %v3215_v46, 0.0  ;;  %v3316_v35 = vmax.f32 %v3214_v52, 0.0  ;;  %v9304_v52 = vld [vmem:[#allocation49_spill] sm:$0xff]  ;;  %v9307_v59 = vld [vmem:[#allocation28_spill] sm:$0xff] }
 0x405   :  { %v2859_v1 = vadd.f32 %v2757_v14, %v2400_v19  ;;  %v2860_v50 = vadd.f32 %v2758_v21, %v2401_v63  ;;  %v9302_v63 = vld [vmem:[#allocation23_spill] sm:$0xff]  ;;  %v2408_v14 = vld [vmem:[%s8976_s1 + $0x1c0] sm:$0xff]  ;;  %v2410_v9 = vld [vmem:[%s8976_s1 + $0x1d0] sm:$0xff] }
 0x406   :  { %v2861_v13 = vadd.f32 %v2759_v55, %v2402_v11  ;;  %v2862_v37 = vadd.f32 %v2760_v36, %v2403_v41  ;;  %v3497_v29 = vpack.c.bf16 %v3317_v49, %v3315_v24  ;;  %v3496_v25 = vpack.c.bf16 %v3316_v35, %v3314_v17  ;;  %v9305_v11 = vld [vmem:[#allocation42_spill] sm:$0xff]  ;;  %v2411_v36 = vld [vmem:[%s8976_s1 + $0x1d8] sm:$0xff] }
 0x407   :  { %v3216_v3 = vadd.f32 %v9298_v2, %v2859_v1  ;;  %v3217_v60 = vadd.f32 %v9298_v2, %v2860_v50  ;;  %v9306_v1 = vld [vmem:[#allocation27_spill] sm:$0xff]  ;;  %v9308_v35 = vld [vmem:[#allocation30_spill] sm:$0xff] }
 0x408   :  { %v3218_v40 = vadd.f32 %v9299_v44, %v2861_v13  ;;  %v3219_v7 = vadd.f32 %v9299_v44, %v2862_v37  ;;  %4120 = vmatprep.subr.bf16.mxu1 %v3497_v29  ;;  %v9310_v44 = vld [vmem:[#allocation46_spill] sm:$0xff] }
 0x409   :  { %v3319_v30 = vmax.f32 %v3217_v60, 0.0  ;;  %v3318_v18 = vmax.f32 %v3216_v3, 0.0  ;;  %4121 = vmatpush1.bf16.msra.mxu1 %v3496_v25  ;;  %v9309_v3 = vld [vmem:[#allocation31_spill] sm:$0xff] }
 0x40a   :  { %v2587_v5 = vpop.permute.xlu1 %2586  ;;  %v3321_v53 = vmax.f32 %v3219_v7, 0.0  ;;  %v3320_v12 = vmax.f32 %v3218_v40, 0.0 }
 0x40b   :  { %v2761_v23 = vmul.f32 %v2587_v5, %v9300_v20  ;;  %v2762_v38 = vmul.f32 %v2587_v5, %v9301_v27  ;;  %v2412_v27 = vld [vmem:[%s8976_s1 + $0x1e0] sm:$0xff] }
 0x40c   :  { %v3499_v15 = vpack.c.bf16 %v3321_v53, %v3319_v30  ;;  %v3498_v33 = vpack.c.bf16 %v3320_v12, %v3318_v18 }
 0x40d   :  { %v2863_v43 = vadd.f32 %v2761_v23, %v2404_v54  ;;  %v2864_v57 = vadd.f32 %v2762_v38, %v2405_v56  ;;  %v9311_v56 = vld [vmem:[#allocation53_spill] sm:$0xff]  ;;  %v2413_v38 = vld [vmem:[%s8976_s1 + $0x1e8] sm:$0xff] }
 0x40e   :  { %v2592_v19 = vpop.permute.xlu1 %2591  ;;  %4122 = vmatprep.subr.bf16.mxu1 %v3499_v15 }
 0x40f   :  { %v2763_v6 = vmul.f32 %v2592_v19, %v9302_v63  ;;  %v2764_v8 = vmul.f32 %v2592_v19, %v9303_v28  ;;  %4123 = vmatpush1.bf16.msra.mxu1 %v3498_v33  ;;  %v3220_v46 = vadd.f32 %v9304_v52, %v2863_v43  ;;  %v3221_v62 = vadd.f32 %v9304_v52, %v2864_v57  ;;  %v9312_v33 = vld [vmem:[#allocation34_spill] sm:$0xff]  ;;  %v9313_v57 = vld [vmem:[#allocation35_spill] sm:$0xff] }
 0x411   :  { %v2865_v16 = vadd.f32 %v2763_v6, %v2406_v4  ;;  %v2866_v31 = vadd.f32 %v2764_v8, %v2407_v51  ;;  %v3323_v13 = vmax.f32 %v3221_v62, 0.0  ;;  %v3322_v29 = vmax.f32 %v3220_v46, 0.0  ;;  %v9314_v46 = vld [vmem:[#allocation36_spill] sm:$0xff] }
 0x412   :  { %v2597_v21 = vpop.permute.xlu0 %2596 }
 0x413   :  { %v3222_v41 = vadd.f32 %v9305_v11, %v2865_v16  ;;  %v3223_v61 = vadd.f32 %v9305_v11, %v2866_v31  ;;  %v2765_v50 = vmul.f32 %v2597_v21, %v9306_v1  ;;  %v2766_v55 = vmul.f32 %v2597_v21, %v9307_v59  ;;  %v2602_v24 = vpop.permute.xlu1 %2601  ;;  %v2414_v16 = vld [vmem:[%s8976_s1 + $0x1f0] sm:$0xff]  ;;  %v2415_v31 = vld [vmem:[%s8976_s1 + $0x1f8] sm:$0xff] }
 0x414   :  { %v2767_v2 = vmul.f32 %v2602_v24, %v9308_v35  ;;  %v2768_v60 = vmul.f32 %v2602_v24, %v9309_v3  ;;  %v9316_v21 = vld [vmem:[#allocation52_spill] sm:$0xff] }
 0x415   :  { %v2867_v49 = vadd.f32 %v2765_v50, %v2408_v14  ;;  %v2868_v17 = vadd.f32 %v2766_v55, %v2409_v34  ;;  %v3325_v37 = vmax.f32 %v3223_v61, 0.0  ;;  %v3324_v25 = vmax.f32 %v3222_v41, 0.0  ;;  %v9315_v14 = vld [vmem:[#allocation37_spill] sm:$0xff]  ;;  %v9317_v50 = vld [vmem:[#allocation60_spill] sm:$0xff] }
 0x416   :  { %v2869_v5 = vadd.f32 %v2767_v2, %v2410_v9  ;;  %v2870_v30 = vadd.f32 %v2768_v60, %v2411_v36  ;;  %v5422_v2 = vld [vmem:[%s8977_s4] ss:$16 sps:$4 sm:$0xff]   ;;  %v5424_v3 = vld [vmem:[%s8977_s4 + $0x4] ss:$16 sps:$4 sm:$0xff]  }
 0x417   :  { %v3224_v40 = vadd.f32 %v9310_v44, %v2867_v49  ;;  %v3225_v7 = vadd.f32 %v9310_v44, %v2868_v17  ;;  %v3501_v18 = vpack.c.bf16 %v3325_v37, %v3323_v13  ;;  %v3500_v54 = vpack.c.bf16 %v3324_v25, %v3322_v29  ;;  %4130 = vmatprep.mubr.bf16.mxu1 %v5424_v3  ;;  %v9318_v37 = vld [vmem:[#allocation64_spill] sm:$0xff]  ;;  %v9319_v25 = vld [vmem:[#allocation66_spill] sm:$0xff] }
 0x418   :  { %v3226_v20 = vadd.f32 %v9311_v56, %v2869_v5  ;;  %v3227_v23 = vadd.f32 %v9311_v56, %v2870_v30  ;;  %v9321_v56 = vld [vmem:[#allocation72_spill] sm:$0xff] }
 0x419   :  { %4124 = vmatprep.subr.bf16.mxu1 %v3501_v18  ;;  %v2607_v53 = vpop.permute.xlu1 %2606  ;;  %v3327_v12 = vmax.f32 %v3225_v7, 0.0  ;;  %v3326_v15 = vmax.f32 %v3224_v40, 0.0  ;;  %v9320_v18 = vld [vmem:[#allocation70_spill] sm:$0xff] }
 0x41a   :  { %v2769_v43 = vmul.f32 %v2607_v53, %v9312_v33  ;;  %v2770_v4 = vmul.f32 %v2607_v53, %v9313_v57  ;;  %4125 = vmatpush1.bf16.msra.mxu1 %v3500_v54  ;;  %v3329_v51 = vmax.f32 %v3227_v23, 0.0  ;;  %v3328_v19 = vmax.f32 %v3226_v20, 0.0  ;;  %v9322_v33 = vld [vmem:[#allocation80_spill] sm:$0xff]  ;;  %v9323_v57 = vld [vmem:[#allocation82_spill] sm:$0xff] }
 0x41c   :  { %v2871_v63 = vadd.f32 %v2769_v43, %v2412_v27  ;;  %v2872_v6 = vadd.f32 %v2770_v4, %v2413_v38  ;;  %v3503_v28 = vpack.c.bf16 %v3329_v51, %v3327_v12  ;;  %v3502_v8 = vpack.c.bf16 %v3328_v19, %v3326_v15 }
 0x41d   :  { %v2612_v52 = vpop.permute.xlu1 %2611 }
 0x41e   :  { %v2771_v62 = vmul.f32 %v2612_v52, %v9314_v46  ;;  %v2772_v34 = vmul.f32 %v2612_v52, %v9315_v14  ;;  %4126 = vmatprep.subr.bf16.mxu1 %v3503_v28  ;;  %v3228_v11 = vadd.f32 %v9316_v21, %v2871_v63  ;;  %v3229_v41 = vadd.f32 %v9316_v21, %v2872_v6  ;;  %v9325_v52 = vld [vmem:[#allocation86_spill] sm:$0xff] }
 0x41f   :  { %4127 = vmatpush1.bf16.msra.mxu1 %v3502_v8 }
 0x420   :  { %v2873_v61 = vadd.f32 %v2771_v62, %v2414_v16  ;;  %v2874_v1 = vadd.f32 %v2772_v34, %v2415_v31  ;;  %v3331_v9 = vmax.f32 %v3229_v41, 0.0  ;;  %v3330_v24 = vmax.f32 %v3228_v11, 0.0  ;;  %v9324_v16 = vld [vmem:[#allocation85_spill] sm:$0xff] }
 0x422   :  { %v3230_v59 = vadd.f32 %v9317_v50, %v2873_v61  ;;  %v3231_v55 = vadd.f32 %v9317_v50, %v2874_v1  ;;  %v9326_v50 = vld [vmem:[#allocation91_spill] sm:$0xff] }
 0x424   :  { %v3333_v36 = vmax.f32 %v3231_v55, 0.0  ;;  %v3332_v49 = vmax.f32 %v3230_v59, 0.0  ;;  %v9327_v55 = vld [vmem:[#allocation93_spill] sm:$0xff] }
 0x426   :  { %v3505_v17 = vpack.c.bf16 %v3333_v36, %v3331_v9  ;;  %v3504_v35 = vpack.c.bf16 %v3332_v49, %v3330_v24  ;;  %v9328_v24 = vld [vmem:[#allocation61_spill] sm:$0xff] }
 0x428   :  { %4128 = vmatprep.subr.bf16.mxu1 %v3505_v17  ;;  %v9329_v17 = vld [vmem:[#allocation63_spill] sm:$0xff] }
 0x429   :  { %4129 = vmatpush1.bf16.msra.mxu1 %v3504_v35 }
 0x42c   :  { %4131 = vmatmul.mubr.bf16.vlgmr.msra.gmra.mrb[0].mxu1 %v5422_v2 }
 0x43f   :  { %v1593_v60 = vpop.xlane.xlu0 %1592 }
 0x440   :  { %v1677_v13 = vmul.f32 0.0051020407, %v1593_v60 }
 0x442   :  { %v7809_v29 = vsub.f32 %v9318_v37, %v1677_v13  ;;  %v7812_v44 = vsub.f32 %v9319_v25, %v1677_v13 }
 0x443   :  { %v1601_v40 = vpop.xlane.xlu0 %1600 }
 0x444   :  { %v1869_v7 = vmul.f32 %v7809_v29, %v7809_v29  ;;  %v1870_v5 = vmul.f32 %v7812_v44, %v7812_v44  ;;  %v1679_v30 = vmul.f32 0.0051020407, %v1601_v40 }
 0x446   :  { %v7819_v54 = vsub.f32 %v9320_v18, %v1679_v30  ;;  %v7822_v20 = vsub.f32 %v9321_v56, %v1679_v30  ;;  %v2049_v23 = vsel %vm1433_vm2, %v1870_v5, 0.0  ;;  %v9330_v30 = vld [vmem:[#allocation97_spill] sm:$0xff]  ;;  %v9331_v56 = vld [vmem:[#allocation98_spill] sm:$0xff] }
 0x447   :  { %v1609_v27 = vpop.xlane.xlu0 %1608  ;;  %v2050_v38 = vadd.f32 %v2049_v23, %v1869_v7 }
 0x448   :  { %v1873_v53 = vmul.f32 %v7819_v54, %v7819_v54  ;;  %v1874_v12 = vmul.f32 %v7822_v20, %v7822_v20  ;;  %v1681_v15 = vmul.f32 0.0051020407, %v1609_v27 }
 0x449   :  { %2051 = vadd.xlane.f32.xlu1 %v2050_v38  ;;  %v9332_v38 = vld [vmem:[#allocation68_spill] sm:$0xff] }
 0x44a   :  { %v7830_v43 = vsub.f32 %v9322_v33, %v1681_v15  ;;  %v7833_v4 = vsub.f32 %v9323_v57, %v1681_v15  ;;  %v2057_v51 = vsel %vm1433_vm2, %v1874_v12, 0.0  ;;  %v9333_v12 = vld [vmem:[#allocation69_spill] sm:$0xff] }
 0x44b   :  { %v1617_v19 = vpop.xlane.xlu0 %1616  ;;  %v2058_v63 = vadd.f32 %v2057_v51, %v1873_v53 }
 0x44c   :  { %v1877_v6 = vmul.f32 %v7830_v43, %v7830_v43  ;;  %v1878_v28 = vmul.f32 %v7833_v4, %v7833_v4  ;;  %v1683_v8 = vmul.f32 0.0051020407, %v1617_v19 }
 0x44d   :  { %2059 = vadd.xlane.f32.xlu1 %v2058_v63 }
 0x44e   :  { %v7841_v31 = vsub.f32 %v9324_v16, %v1683_v8  ;;  %v7844_v46 = vsub.f32 %v9325_v52, %v1683_v8  ;;  %v2065_v62 = vsel %vm1433_vm2, %v1878_v28, 0.0 }
 0x44f   :  { %v1625_v14 = vpop.xlane.xlu0 %1624  ;;  %v2066_v34 = vadd.f32 %v2065_v62, %v1877_v6  ;;  %v9334_v62 = vld [vmem:[#allocation78_spill] sm:$0xff] }
 0x450   :  { %v1881_v21 = vmul.f32 %v7841_v31, %v7841_v31  ;;  %v1882_v11 = vmul.f32 %v7844_v46, %v7844_v46  ;;  %v1685_v41 = vmul.f32 0.0051020407, %v1625_v14  ;;  %v1589_v61 = vpop.xlane.xlu1 %1588 }
 0x451   :  { %v1676_v1 = vmul.f32 0.0051020407, %v1589_v61  ;;  %2067 = vadd.xlane.f32.xlu1 %v2066_v34  ;;  %v9335_v34 = vld [vmem:[#allocation79_spill] sm:$0xff]  ;;  %v5425_v61 = vld [vmem:[%s8977_s4 + $0x24] ss:$16 sps:$4 sm:$0xff]  }
 0x452   :  { %v7852_v59 = vsub.f32 %v9326_v50, %v1685_v41  ;;  %v7855_v9 = vsub.f32 %v9327_v55, %v1685_v41  ;;  %v2073_v36 = vsel %vm1433_vm2, %v1882_v11, 0.0  ;;  %v5427_v55 = vld [vmem:[%s8977_s4 + $0x20] ss:$16 sps:$4 sm:$0xff]   ;;  %4140 = vmatprep.mubr.bf16.mxu1 %v5425_v61 }
 0x453   :  { %v7859_v49 = vsub.f32 %v9328_v24, %v1676_v1  ;;  %v7862_v35 = vsub.f32 %v9329_v17, %v1676_v1  ;;  %v1633_v2 = vpop.xlane.xlu0 %1632  ;;  %v2074_v3 = vadd.f32 %v2073_v36, %v1881_v21  ;;  %4141 = vmatmul.mubr.bf16.gmra.mrb[4].mxu1 %v5427_v55 }
 0x454   :  { %v1885_v60 = vmul.f32 %v7852_v59, %v7852_v59  ;;  %v1886_v13 = vmul.f32 %v7855_v9, %v7855_v9  ;;  %v1687_v37 = vmul.f32 0.0051020407, %v1633_v2  ;;  %v1597_v25 = vpop.xlane.xlu1 %1596  ;;  %v9336_v2 = vld [vmem:[#allocation83_spill] sm:$0xff] }
 0x455   :  { %v1867_v40 = vmul.f32 %v7859_v49, %v7859_v49  ;;  %v1868_v7 = vmul.f32 %v7862_v35, %v7862_v35  ;;  %v1678_v5 = vmul.f32 0.0051020407, %v1597_v25  ;;  %2075 = vadd.xlane.f32.xlu1 %v2074_v3 }
 0x456   :  { %v7873_v18 = vsub.f32 %v9330_v30, %v1687_v37  ;;  %v7876_v23 = vsub.f32 %v9331_v56, %v1687_v37  ;;  %v2081_v27 = vsel %vm1433_vm2, %v1886_v13, 0.0  ;;  %v9338_v56 = vld [vmem:[#allocation89_spill] sm:$0xff] }
 0x457   :  { %v7880_v53 = vsub.f32 %v9332_v38, %v1678_v5  ;;  %v7883_v15 = vsub.f32 %v9333_v12, %v1678_v5  ;;  %v2082_v33 = vadd.f32 %v2081_v27, %v1885_v60  ;;  %v2045_v57 = vsel %vm1433_vm2, %v1868_v7, 0.0  ;;  %v9337_v60 = vld [vmem:[#allocation84_spill] sm:$0xff]  ;;  %v9339_v38 = vld [vmem:[#allocation90_spill] sm:$0xff] }
 0x458   :  { %v1889_v51 = vmul.f32 %v7873_v18, %v7873_v18  ;;  %v1890_v19 = vmul.f32 %v7876_v23, %v7876_v23  ;;  %v1605_v63 = vpop.xlane.xlu1 %1604  ;;  %v2046_v6 = vadd.f32 %v2045_v57, %v1867_v40  ;;  %v5428_v57 = vld [vmem:[%s8977_s4 + $0x44] ss:$16 sps:$4 sm:$0xff]  }
 0x459   :  { %v1871_v28 = vmul.f32 %v7880_v53, %v7880_v53  ;;  %v1872_v8 = vmul.f32 %v7883_v15, %v7883_v15  ;;  %v1680_v16 = vmul.f32 0.0051020407, %v1605_v63  ;;  %2083 = vadd.xlane.f32.xlu1 %v2082_v33  ;;  %v5430_v63 = vld [vmem:[%s8977_s4 + $0x40] ss:$16 sps:$4 sm:$0xff]   ;;  %4150 = vmatprep.mubr.bf16.mxu1 %v5428_v57  ;;  %v5434_v57 = vld [vmem:[%s8977_s4 + $0x84] ss:$16 sps:$4 sm:$0xff]  }
 0x45a   :  { %2047 = vadd.xlane.f32.xlu0 %v2046_v6  ;;  %v2089_v52 = vsel %vm1433_vm2, %v1890_v19, 0.0 }
 0x45b   :  { %v7896_v14 = vsub.f32 %v9334_v62, %v1680_v16  ;;  %v7899_v21 = vsub.f32 %v9335_v34, %v1680_v16  ;;  %v2090_v11 = vadd.f32 %v2089_v52, %v1889_v51  ;;  %v2053_v41 = vsel %vm1433_vm2, %v1872_v8, 0.0  ;;  %4151 = vmatmul.mubr.bf16.gmra.mrb[8].mxu1 %v5430_v63  ;;  %v9340_v16 = vld [vmem:[#allocation95_spill] sm:$0xff]  ;;  %v9341_v62 = vld [vmem:[#allocation96_spill] sm:$0xff]  ;;  %v7993_v63 = vld [vmem:[%s8975_s3 + $0x118] sm:$0xff] }
 0x45c   :  { %v1613_v1 = vpop.xlane.xlu1 %1612  ;;  %v2054_v50 = vadd.f32 %v2053_v41, %v1871_v28 }
 0x45d   :  { %v1875_v36 = vmul.f32 %v7896_v14, %v7896_v14  ;;  %v1876_v24 = vmul.f32 %v7899_v21, %v7899_v21  ;;  %v1682_v17 = vmul.f32 0.0051020407, %v1613_v1  ;;  %2091 = vadd.xlane.f32.xlu1 %v2090_v11 }
 0x45e   :  { %2055 = vadd.xlane.f32.xlu0 %v2054_v50 }
 0x45f   :  { %v7913_v3 = vsub.f32 %v9336_v2, %v1682_v17  ;;  %v7916_v13 = vsub.f32 %v9337_v60, %v1682_v17  ;;  %v2061_v37 = vsel %vm1433_vm2, %v1876_v24, 0.0  ;;  %v9345_v17 = vld [vmem:[#allocation102_spill] sm:$0xff] }
 0x460   :  { %v1621_v25 = vpop.xlane.xlu1 %1620  ;;  %v2062_v40 = vadd.f32 %v2061_v37, %v1875_v36  ;;  %v9343_v36 = vld [vmem:[#allocation101_spill] sm:$0xff]  ;;  %v5431_v37 = vld [vmem:[%s8977_s4 + $0x64] ss:$16 sps:$4 sm:$0xff]  }
 0x461   :  { %v1879_v7 = vmul.f32 %v7913_v3, %v7913_v3  ;;  %v1880_v5 = vmul.f32 %v7916_v13, %v7916_v13  ;;  %v1684_v30 = vmul.f32 0.0051020407, %v1621_v25  ;;  %4160 = vmatprep.mubr.bf16.mxu1 %v5431_v37  ;;  %v5443_v37 = vld [vmem:[%s8977_s4 + $0xe4] ss:$16 sps:$4 sm:$0xff]  }
 0x462   :  { %2063 = vadd.xlane.f32.xlu0 %v2062_v40  ;;  %v5433_v40 = vld [vmem:[%s8977_s4 + $0x60] ss:$16 sps:$4 sm:$0xff]  }
 0x463   :  { %v7924_v27 = vsub.f32 %v9338_v56, %v1684_v30  ;;  %v7927_v12 = vsub.f32 %v9339_v38, %v1684_v30  ;;  %v2069_v33 = vsel %vm1433_vm2, %v1880_v5, 0.0  ;;  %v7971_v30 = vld [vmem:[%s8975_s3 + $0x100] sm:$0xff]  ;;  %v2181_v56 = vld [vmem:[%s8975_s3 + $0x108] sm:$0xff]  ;;  %4161 = vmatmul.mubr.bf16.gmra.mrb[12].mxu1 %v5433_v40 }
 0x464   :  { %v1629_v51 = vpop.xlane.xlu1 %1628  ;;  %v2070_v19 = vadd.f32 %v2069_v33, %v1879_v7  ;;  %4170 = vmatprep.mubr.bf16.mxu1 %v5434_v57  ;;  %v5445_v40 = vld [vmem:[%s8977_s4 + $0xe0] ss:$16 sps:$4 sm:$0xff]  }
 0x465   :  { %v1883_v6 = vmul.f32 %v7924_v27, %v7924_v27  ;;  %v1884_v28 = vmul.f32 %v7927_v12, %v7927_v12  ;;  %v1686_v8 = vmul.f32 0.0051020407, %v1629_v51  ;;  %v5436_v51 = vld [vmem:[%s8977_s4 + $0x80] ss:$16 sps:$4 sm:$0xff]  }
 0x466   :  { %2071 = vadd.xlane.f32.xlu0 %v2070_v19  ;;  %v7987_v19 = vld [vmem:[%s8975_s3 + $0x110] sm:$0xff] }
 0x467   :  { %v7941_v52 = vsub.f32 %v9340_v16, %v1686_v8  ;;  %v7944_v34 = vsub.f32 %v9341_v62, %v1686_v8  ;;  %v2077_v11 = vsel %vm1433_vm2, %v1884_v28, 0.0  ;;  %v7999_v28 = vld [vmem:[%s8975_s3 + $0x128] sm:$0xff]  ;;  %v5437_v8 = vld [vmem:[%s8977_s4 + $0xa4] ss:$16 sps:$4 sm:$0xff]   ;;  %v5439_v16 = vld [vmem:[%s8977_s4 + $0xa0] ss:$16 sps:$4 sm:$0xff]  }
 0x468   :  { %v1637_v41 = vpop.xlane.xlu1 %1636  ;;  %v2078_v61 = vadd.f32 %v2077_v11, %v1883_v6  ;;  %v8011_v11 = vld [vmem:[%s8975_s3 + $0x130] sm:$0xff] }
 0x469   :  { %9342 = vst [vmem:[#allocation59_spill] sm:$0xff] %v7944_v34  ;;  %v1887_v1 = vmul.f32 %v7941_v52, %v7941_v52  ;;  %v1888_v50 = vmul.f32 %v7944_v34, %v7944_v34  ;;  %v1688_v55 = vmul.f32 0.0051020407, %v1637_v41 }
 0x46a   :  { %2079 = vadd.xlane.f32.xlu0 %v2078_v61  ;;  %v8017_v61 = vld [vmem:[%s8975_s3 + $0x138] sm:$0xff] }
 0x46b   :  { %v7952_v24 = vsub.f32 %v9343_v36, %v1688_v55  ;;  %v7955_v2 = vsub.f32 %v9345_v17, %v1688_v55  ;;  %v2085_v60 = vsel %vm1433_vm2, %v1888_v50, 0.0  ;;  %4171 = vmatmul.mubr.bf16.gmra.mrb[16].mxu1 %v5436_v51  ;;  %v5442_v50 = vld [vmem:[%s8977_s4 + $0xc0] ss:$16 sps:$4 sm:$0xff]   ;;  %v2024_v55 = vpop.xlane.xlu0 %2023  ;;  %v8034_v17 = vld [vmem:[%s8975_s3 + $0x148] sm:$0xff] }
 0x46c   :  { %v2086_v25 = vadd.f32 %v2085_v60, %v1887_v1  ;;  %v2028_v6 = vpop.xlane.xlu1 %2027  ;;  %4180 = vmatprep.mubr.bf16.mxu1 %v5437_v8  ;;  %v5440_v1 = vld [vmem:[%s8977_s4 + $0xc4] ss:$16 sps:$4 sm:$0xff]  }
 0x46d   :  { %9344 = vst [vmem:[#allocation62_spill] sm:$0xff] %v7952_v24  ;;  %9346 = vst [vmem:[#allocation2_spill] sm:$0xff] %v7955_v2  ;;  %v1891_v7 = vmul.f32 %v7952_v24, %v7952_v24  ;;  %v1892_v5 = vmul.f32 %v7955_v2, %v7955_v2  ;;  %v2130_v62 = vmul.f32 0.0051020407, %v2028_v6  ;;  %v8029_v36 = vld [vmem:[%s8975_s3 + $0x120] sm:$0xff] }
 0x46e   :  { %2087 = vadd.xlane.f32.xlu0 %v2086_v25  ;;  %3075 = vperm.xlu1 %5262, %v7971_v30   ;;  %v8040_v60 = vld [vmem:[%s8975_s3 + $0x140] sm:$0xff]  ;;  %v8049_v25 = vld [vmem:[%s8975_s3 + $0x150] sm:$0xff] }
 0x46f   :  { %v2093_v38 = vsel %vm1433_vm2, %v1892_v5, 0.0  ;;  %v2232_v41 = vadd.f32 1e-05, %v2130_v62  ;;  %v2032_v5 = vpop.xlane.xlu0 %2031  ;;  %v5452_v2 = vld [vmem:[%s8977_s4 + $0x144] ss:$16 sps:$4 sm:$0xff]  }
 0x470   :  { %v2094_v33 = vadd.f32 %v2093_v38, %v1891_v7  ;;  %v2129_v7 = vmul.f32 0.0051020407, %v2024_v55  ;;  %v8058_v38 = vld [vmem:[%s8975_s3 + $0x160] sm:$0xff]  ;;  %v2131_v6 = vmul.f32 0.0051020407, %v2032_v5  ;;  %v2036_v8 = vpop.xlane.xlu1 %2035 }
 0x471   :  { %5640 = vrsqrt.f32 %v2232_v41  ;;  %v8074_v41 = vld [vmem:[%s8975_s3 + $0x168] sm:$0xff]  ;;  %v2132_v55 = vmul.f32 0.0051020407, %v2036_v8  ;;  %v5451_v8 = vld [vmem:[%s8977_s4 + $0x120] ss:$16 sps:$4 sm:$0xff]  }
 0x472   :  { %3080 = vperm.xlu1 %5262, %v2181_v56   ;;  %2095 = vadd.xlane.f32.xlu0 %v2094_v33  ;;  %v8064_v33 = vld [vmem:[%s8975_s3 + $0x158] sm:$0xff]  ;;  %v2231_v51 = vadd.f32 1e-05, %v2129_v7 }
 0x473   :  { %4181 = vmatmul.mubr.bf16.gmra.mrb[20].mxu1 %v5439_v16  ;;  %v5446_v16 = vld [vmem:[%s8977_s4 + $0x104] ss:$16 sps:$4 sm:$0xff]   ;;  %v2234_v5 = vadd.f32 1e-05, %v2132_v55 }
 0x474   :  { %4190 = vmatprep.mubr.bf16.mxu1 %v5440_v1  ;;  %v5448_v1 = vld [vmem:[%s8977_s4 + $0x100] ss:$16 sps:$4 sm:$0xff]   ;;  %5642 = vrsqrt.f32 %v2231_v51  ;;  %v8090_v51 = vld [vmem:[%s8975_s3 + $0x178] sm:$0xff] }
 0x476   :  { %3085 = vperm.xlu1 %5262, %v7987_v19  }
 0x47a   :  { %3090 = vperm.xlu1 %5262, %v7993_v63  }
 0x47b   :  { %4191 = vmatmul.mubr.bf16.gmra.mrb[24].mxu1 %v5442_v50  ;;  %v5641_v57 = vpop.eup %5640  ;;  %v2233_v50 = vadd.f32 1e-05, %v2131_v6  ;;  %v5449_v6 = vld [vmem:[%s8977_s4 + $0x124] ss:$16 sps:$4 sm:$0xff]  }
 0x47c   :  { %4200 = vmatprep.mubr.bf16.mxu1 %v5443_v37  ;;  %v2334_v62 = vmul.f32 %v5641_v57, %v2181_v56  ;;  %v9347_v37 = vmov 0   ;;  %v8084_v56 = vld [vmem:[%s8975_s3 + $0x170] sm:$0xff]  ;;  %v2044_v57 = vpop.xlane.xlu1 %2043 }
 0x47d   :  { %5644 = vrsqrt.f32 %v2233_v50 }
 0x47e   :  { %3100 = vperm.xlu1 %5262, %v7999_v28   ;;  %5646 = vrsqrt.f32 %v2234_v5 }
 0x482   :  { %3105 = vperm.xlu1 %5262, %v8011_v11  }
 0x483   :  { %4201 = vmatmul.mubr.bf16.gmra.mrb[28].mxu1 %v5445_v40  ;;  %v2040_v40 = vpop.xlane.xlu0 %2039 }
 0x484   :  { %4210 = vmatprep.mubr.bf16.mxu1 %v5446_v16  ;;  %v2133_v7 = vmul.f32 0.0051020407, %v2040_v40 }
 0x486   :  { %3110 = vperm.xlu1 %5262, %v8017_v61   ;;  %v2235_v16 = vadd.f32 1e-05, %v2133_v7  ;;  %v5454_v7 = vld [vmem:[%s8977_s4 + $0x140] ss:$16 sps:$4 sm:$0xff]  }
 0x488   :  { %3095 = vperm.xlu0 %5263, %v8029_v36   ;;  %5648 = vrsqrt.f32 %v2235_v16 }
 0x48a   :  { %3120 = vperm.xlu1 %5262, %v8034_v17  }
 0x48b   :  { %4211 = vmatmul.mubr.bf16.gmra.mrb[32].mxu1 %v5448_v1  ;;  %v5643_v1 = vpop.eup %5642 }
 0x48c   :  { %3115 = vperm.xlu0 %5263, %v8040_v60   ;;  %4220 = vmatprep.mubr.bf16.mxu1 %v5449_v6  ;;  %v2333_v55 = vmul.f32 %v5643_v1, %v7971_v30  ;;  %v5645_v40 = vpop.eup %5644  ;;  %v5464_v1 = vld [vmem:[%s8977_s4 + $0x1c4] ss:$16 sps:$4 sm:$0xff]  }
 0x48d   :  { %v2335_v5 = vmul.f32 %v5645_v40, %v7987_v19  ;;  %v5469_v40 = vld [vmem:[%s8977_s4 + $0x1e0] ss:$16 sps:$4 sm:$0xff]  }
 0x48e   :  { %3125 = vperm.xlu1 %5262, %v8049_v25  }
 0x490   :  { %3135 = vperm.xlu0 %5263, %v8058_v38  }
 0x492   :  { %3130 = vperm.xlu1 %5262, %v8064_v33  }
 0x493   :  { %4221 = vmatmul.mubr.bf16.gmra.mrb[36].mxu1 %v5451_v8  ;;  %v5457_v8 = vld [vmem:[%s8977_s4 + $0x160] ss:$16 sps:$4 sm:$0xff]  }
 0x494   :  { %5265 = vset.pattern.permute.xlu0 %v9347_v37  ;;  %4230 = vmatprep.mubr.bf16.mxu1 %v5452_v2 }
 0x495   :  { %2621 = vperm.xlu0 %5265, %v2334_v62   ;;  %v2134_v62 = vmul.f32 0.0051020407, %v2044_v57  ;;  %v5647_v57 = vpop.eup %5646 }
 0x496   :  { %3140 = vperm.xlu1 %5262, %v8074_v41   ;;  %v2336_v30 = vmul.f32 %v5647_v57, %v7993_v63  ;;  %v5649_v6 = vpop.eup %5648  ;;  %v5458_v63 = vld [vmem:[%s8977_s4 + $0x184] ss:$16 sps:$4 sm:$0xff]  }
 0x497   :  { %v2236_v50 = vadd.f32 1e-05, %v2134_v62  ;;  %v2337_v16 = vmul.f32 %v5649_v6, %v8029_v36  ;;  %v5460_v62 = vld [vmem:[%s8977_s4 + $0x180] ss:$16 sps:$4 sm:$0xff]   ;;  %v5461_v36 = vld [vmem:[%s8977_s4 + $0x1a4] ss:$16 sps:$4 sm:$0xff]  }
 0x498   :  { %v5473_v57 = vld [vmem:[%s8977_s4 + $0x224] ss:$16 sps:$4 sm:$0xff]  }
 0x499   :  { %5650 = vrsqrt.f32 %v2236_v50  ;;  %v5466_v50 = vld [vmem:[%s8977_s4 + $0x1c0] ss:$16 sps:$4 sm:$0xff]  }
 0x49a   :  { %3145 = vperm.xlu1 %5262, %v8084_v56  }
 0x49b   :  { %4231 = vmatmul.mubr.bf16.gmra.mrb[40].mxu1 %v5454_v7  ;;  %v5470_v7 = vld [vmem:[%s8977_s4 + $0x204] ss:$16 sps:$4 sm:$0xff]  }
 0x49e   :  { %3150 = vperm.xlu1 %5262, %v8090_v51  }
 0x4a2   :  { %5264 = vset.pattern.permute.xlu1 %v9347_v37  ;;  %v5455_v37 = vld [vmem:[%s8977_s4 + $0x164] ss:$16 sps:$4 sm:$0xff]  }
 0x4a3   :  { %2616 = vperm.xlu1 %5264, %v2333_v55   ;;  %4240 = vmatprep.mubr.bf16.mxu1 %v5455_v37  ;;  %v5651_v19 = vpop.eup %5650  ;;  %v5467_v55 = vld [vmem:[%s8977_s4 + $0x1e4] ss:$16 sps:$4 sm:$0xff]  }
 0x4a4   :  { %4241 = vmatmul.mubr.bf16.gmra.mrb[44].mxu1 %v5457_v8  ;;  %v2338_v2 = vmul.f32 %v5651_v19, %v7999_v28  ;;  %v5463_v28 = vld [vmem:[%s8977_s4 + $0x1a0] ss:$16 sps:$4 sm:$0xff]   ;;  %v5476_v19 = vld [vmem:[%s8977_s4 + $0x244] ss:$16 sps:$4 sm:$0xff]  }
 0x4a5   :  { %4250 = vmatprep.mubr.bf16.mxu1 %v5458_v63 }
 0x4a7   :  { %2626 = vperm.xlu1 %5264, %v2335_v5   ;;  %v5472_v5 = vld [vmem:[%s8977_s4 + $0x200] ss:$16 sps:$4 sm:$0xff]  }
 0x4ab   :  { %2631 = vperm.xlu1 %5264, %v2336_v30  }
 0x4ac   :  { %4251 = vmatmul.mubr.bf16.gmra.mrb[48].mxu1 %v5460_v62  ;;  %v5478_v62 = vld [vmem:[%s8977_s4 + $0x240] ss:$16 sps:$4 sm:$0xff]  }
 0x4ad   :  { %4260 = vmatprep.mubr.bf16.mxu1 %v5461_v36 }
 0x4af   :  { %2636 = vperm.xlu1 %5264, %v2337_v16   ;;  %v5475_v16 = vld [vmem:[%s8977_s4 + $0x220] ss:$16 sps:$4 sm:$0xff]  }
 0x4b3   :  { %2641 = vperm.xlu1 %5264, %v2338_v2  }
 0x4b4   :  { %4261 = vmatmul.mubr.bf16.gmra.mrb[52].mxu1 %v5463_v28 }
 0x4b5   :  { %4270 = vmatprep.mubr.bf16.mxu1 %v5464_v1 }
 0x4bc   :  { %4271 = vmatmul.mubr.bf16.gmra.mrb[56].mxu1 %v5466_v50 }
 0x4bd   :  { %4280 = vmatprep.mubr.bf16.mxu1 %v5467_v55 }
 0x4c4   :  { %4281 = vmatmul.mubr.bf16.gmra.mrb[60].mxu1 %v5469_v40 }
 0x4c5   :  { %4290 = vmatprep.mubr.bf16.mxu1 %v5470_v7 }
 0x4cc   :  { %4291 = vmatmul.mubr.bf16.gmra.mrb[64].mxu1 %v5472_v5 }
 0x4cd   :  { %4300 = vmatprep.mubr.bf16.mxu1 %v5473_v57 }
 0x4d4   :  { %4301 = vmatmul.mubr.bf16.gmra.mrb[68].mxu1 %v5475_v16 }
 0x4d5   :  { %4310 = vmatprep.mubr.bf16.mxu1 %v5476_v19 }
 0x4d6   :  { %v2052_v30 = vpop.xlane.xlu1 %2051 }
 0x4d7   :  { %v2136_v6 = vmul.f32 0.0051020407, %v2052_v30 }
 0x4d9   :  { %v2238_v37 = vadd.f32 1e-05, %v2136_v6 }
 0x4da   :  { %v2060_v8 = vpop.xlane.xlu1 %2059 }
 0x4db   :  { %5652 = vrsqrt.f32 %v2238_v37  ;;  %v2138_v28 = vmul.f32 0.0051020407, %v2060_v8  ;;  %v5479_v37 = vld [vmem:[%s8977_s4 + $0x264] ss:$16 sps:$4 sm:$0xff]   ;;  %v5481_v8 = vld [vmem:[%s8977_s4 + $0x260] ss:$16 sps:$4 sm:$0xff]  }
 0x4dc   :  { %4311 = vmatmul.mubr.bf16.gmra.mrb[72].mxu1 %v5478_v62 }
 0x4dd   :  { %v2240_v5 = vadd.f32 1e-05, %v2138_v28  ;;  %4320 = vmatprep.mubr.bf16.mxu1 %v5479_v37 }
 0x4de   :  { %v2068_v2 = vpop.xlane.xlu1 %2067 }
 0x4df   :  { %v2140_v7 = vmul.f32 0.0051020407, %v2068_v2 }
 0x4e2   :  { %v2076_v63 = vpop.xlane.xlu1 %2075 }
 0x4e3   :  { %v2142_v19 = vmul.f32 0.0051020407, %v2076_v63  ;;  %v5484_v63 = vld [vmem:[%s8977_s4 + $0x280] ss:$16 sps:$4 sm:$0xff]  }
 0x4e4   :  { %4321 = vmatmul.mubr.bf16.gmra.mrb[76].mxu1 %v5481_v8 }
 0x4e5   :  { %v5653_v36 = vpop.eup %5652 }
 0x4e6   :  { %v2084_v1 = vpop.xlane.xlu1 %2083  ;;  %v2340_v50 = vmul.f32 %v5653_v36, %v8017_v61  ;;  %v2242_v61 = vadd.f32 1e-05, %v2140_v7  ;;  %v5482_v36 = vld [vmem:[%s8977_s4 + $0x284] ss:$16 sps:$4 sm:$0xff]  }
 0x4e7   :  { %v2048_v55 = vpop.xlane.xlu0 %2047  ;;  %4330 = vmatprep.mubr.bf16.mxu1 %v5482_v36 }
 0x4e8   :  { %v2135_v40 = vmul.f32 0.0051020407, %v2048_v55  ;;  %2651 = vperm.xlu1 %5264, %v2340_v50   ;;  %v2244_v55 = vadd.f32 1e-05, %v2142_v19 }
 0x4ea   :  { %v2237_v57 = vadd.f32 1e-05, %v2135_v40  ;;  %v2092_v30 = vpop.xlane.xlu1 %2091  ;;  %v2144_v40 = vmul.f32 0.0051020407, %v2084_v1 }
 0x4eb   :  { %v2056_v6 = vpop.xlane.xlu0 %2055  ;;  %v2146_v8 = vmul.f32 0.0051020407, %v2092_v30 }
 0x4ec   :  { %5654 = vrsqrt.f32 %v2237_v57  ;;  %v2137_v16 = vmul.f32 0.0051020407, %v2056_v6  ;;  %4331 = vmatmul.mubr.bf16.gmra.mrb[80].mxu1 %v5484_v63 }
 0x4ed   :  { %5656 = vrsqrt.f32 %v2240_v5  ;;  %v2248_v24 = vadd.f32 1e-05, %v2146_v8 }
 0x4ee   :  { %v2239_v62 = vadd.f32 1e-05, %v2137_v16  ;;  %v8166_v2 = vpop.permute.xlu1 %3075  ;;  %v2246_v16 = vadd.f32 1e-05, %v2144_v40 }
 0x4ef   :  { %v2064_v28 = vpop.xlane.xlu0 %2063 }
 0x4f0   :  { %5658 = vrsqrt.f32 %v2239_v62  ;;  %v2139_v50 = vmul.f32 0.0051020407, %v2064_v28 }
 0x4f1   :  { %5660 = vrsqrt.f32 %v2242_v61 }
 0x4f2   :  { %v2241_v57 = vadd.f32 1e-05, %v2139_v50  ;;  %v8171_v7 = vpop.permute.xlu1 %3080 }
 0x4f3   :  { %v2072_v5 = vpop.xlane.xlu0 %2071 }
 0x4f4   :  { %5662 = vrsqrt.f32 %v2241_v57  ;;  %v2141_v6 = vmul.f32 0.0051020407, %v2072_v5 }
 0x4f5   :  { %5664 = vrsqrt.f32 %v2244_v55 }
 0x4f6   :  { %v5655_v37 = vpop.eup %5654  ;;  %v2243_v62 = vadd.f32 1e-05, %v2141_v6  ;;  %v8176_v28 = vpop.permute.xlu1 %3085 }
 0x4f7   :  { %v2080_v61 = vpop.xlane.xlu0 %2079  ;;  %v2339_v1 = vmul.f32 %v5655_v37, %v8011_v11  ;;  %v5657_v19 = vpop.eup %5656  ;;  %v5485_v11 = vld [vmem:[%s8977_s4 + $0x2a4] ss:$16 sps:$4 sm:$0xff]   ;;  %v5487_v37 = vld [vmem:[%s8977_s4 + $0x2a0] ss:$16 sps:$4 sm:$0xff]  }
 0x4f8   :  { %5666 = vrsqrt.f32 %v2243_v62  ;;  %v2143_v36 = vmul.f32 0.0051020407, %v2080_v61  ;;  %v2342_v40 = vmul.f32 %v5657_v19, %v8034_v17  ;;  %4340 = vmatprep.mubr.bf16.mxu1 %v5485_v11 }
 0x4f9   :  { %2646 = vperm.xlu0 %5265, %v2339_v1   ;;  %5668 = vrsqrt.f32 %v2246_v16  ;;  %4341 = vmatmul.mubr.bf16.gmra.mrb[84].mxu1 %v5487_v37  ;;  %v2197_v37 = vld [vmem:[%s8975_s3 + $0x188] sm:$0xff] }
 0x4fa   :  { %v5659_v50 = vpop.eup %5658  ;;  %v2245_v57 = vadd.f32 1e-05, %v2143_v36  ;;  %v8179_v5 = vpop.permute.xlu1 %3090 }
 0x4fb   :  { %v2088_v55 = vpop.xlane.xlu0 %2087  ;;  %v2341_v30 = vmul.f32 %v5659_v50, %v8040_v60  ;;  %v5661_v63 = vpop.eup %5660 }
 0x4fc   :  { %5670 = vrsqrt.f32 %v2245_v57  ;;  %v2145_v6 = vmul.f32 0.0051020407, %v2088_v55  ;;  %v2344_v61 = vmul.f32 %v5661_v63, %v8064_v33  ;;  %v5490_v33 = vld [vmem:[%s8977_s4 + $0x2c0] ss:$16 sps:$4 sm:$0xff]  }
 0x4fd   :  { %2656 = vperm.xlu1 %5264, %v2341_v30   ;;  %2661 = vperm.xlu0 %5265, %v2342_v40   ;;  %5672 = vrsqrt.f32 %v2248_v24 }
 0x4fe   :  { %v5663_v16 = vpop.eup %5662  ;;  %v2247_v8 = vadd.f32 1e-05, %v2145_v6  ;;  %v8189_v62 = vpop.permute.xlu1 %3100  ;;  %v2196_v6 = vld [vmem:[%s8975_s3 + $0x180] sm:$0xff] }
 0x4ff   :  { %v2096_v17 = vpop.xlane.xlu0 %2095  ;;  %v2343_v60 = vmul.f32 %v5663_v16, %v8049_v25  ;;  %v5665_v1 = vpop.eup %5664  ;;  %v5488_v25 = vld [vmem:[%s8977_s4 + $0x2c4] ss:$16 sps:$4 sm:$0xff]  }
 0x500   :  { %5674 = vrsqrt.f32 %v2247_v8  ;;  %v2147_v19 = vmul.f32 0.0051020407, %v2096_v17  ;;  %v2346_v55 = vmul.f32 %v5665_v1, %v8074_v41  ;;  %4350 = vmatprep.mubr.bf16.mxu1 %v5488_v25 }
 0x501   :  { %2666 = vperm.xlu0 %5265, %v2343_v60   ;;  %2671 = vperm.xlu1 %5264, %v2344_v61  }
 0x502   :  { %v5667_v36 = vpop.eup %5666  ;;  %v2249_v50 = vadd.f32 1e-05, %v2147_v19  ;;  %v8193_v57 = vpop.permute.xlu1 %3105  ;;  %4351 = vmatmul.mubr.bf16.gmra.mrb[88].mxu1 %v5490_v33  ;;  %v5491_v19 = vld [vmem:[%s8977_s4 + $0x2e4] ss:$16 sps:$4 sm:$0xff]  }
 0x503   :  { %v2345_v24 = vmul.f32 %v5667_v36, %v8058_v38  ;;  %v5669_v30 = vpop.eup %5668  ;;  %4360 = vmatprep.mubr.bf16.mxu1 %v5491_v19  ;;  %v2419_v19 = vld [vmem:[%s8976_s1 + $0x218] sm:$0xff] }
 0x504   :  { %5676 = vrsqrt.f32 %v2249_v50  ;;  %v2348_v41 = vmul.f32 %v5669_v30, %v8090_v51  ;;  %v2198_v51 = vld [vmem:[%s8975_s3 + $0x190] sm:$0xff] }
 0x505   :  { %2676 = vperm.xlu1 %5264, %v2345_v24   ;;  %2681 = vperm.xlu0 %5265, %v2346_v55   ;;  %v5493_v24 = vld [vmem:[%s8977_s4 + $0x2e0] ss:$16 sps:$4 sm:$0xff]   ;;  %v9348_v55 = vmov 1  }
 0x506   :  { %v5671_v40 = vpop.eup %5670  ;;  %v8203_v11 = vpop.permute.xlu1 %3110 }
 0x507   :  { %v2347_v38 = vmul.f32 %v5671_v40, %v8084_v56  ;;  %v5673_v63 = vpop.eup %5672  ;;  %v8213_v16 = vpop.permute.xlu0 %3095  ;;  %v5494_v40 = vld [vmem:[%s8977_s4 + $0x304] ss:$16 sps:$4 sm:$0xff]  }
 0x508   :  { %v2350_v60 = vmul.f32 %v5673_v63, %v2197_v37 }
 0x509   :  { %2686 = vperm.xlu0 %5265, %v2347_v38   ;;  %2691 = vperm.xlu1 %5264, %v2348_v41   ;;  %v5496_v38 = vld [vmem:[%s8977_s4 + $0x300] ss:$16 sps:$4 sm:$0xff]  }
 0x50a   :  { %v5675_v8 = vpop.eup %5674  ;;  %v8215_v17 = vpop.permute.xlu1 %3120  ;;  %4361 = vmatmul.mubr.bf16.gmra.mrb[92].mxu1 %v5493_v24 }
 0x50b   :  { %v2349_v56 = vmul.f32 %v5675_v8, %v2196_v6  ;;  %v8225_v36 = vpop.permute.xlu0 %3115  ;;  %4370 = vmatprep.mubr.bf16.mxu1 %v5494_v40 }
 0x50d   :  { %2696 = vperm.xlu1 %5264, %v2349_v56   ;;  %2701 = vperm.xlu0 %5265, %v2350_v60  }
 0x50e   :  { %v5677_v61 = vpop.eup %5676  ;;  %v8220_v1 = vpop.permute.xlu1 %3125 }
 0x50f   :  { %v2351_v50 = vmul.f32 %v5677_v61, %v2198_v51  ;;  %v8233_v30 = vpop.permute.xlu0 %3135  ;;  %v2418_v61 = vld [vmem:[%s8976_s1 + $0x210] sm:$0xff] }
 0x511   :  { %5266 = vset.pattern.permute.xlu1 %v9348_v55  ;;  %2706 = vperm.xlu0 %5265, %v2351_v50   ;;  %v5501_v50 = vld [vmem:[%s8977_s4 + $0xc] ss:$16 sps:$4 sm:$0xff]  }
 0x512   :  { %3155 = vperm.xlu1 %5266, %v2196_v6   ;;  %v8231_v25 = vpop.permute.xlu1 %3130  ;;  %4371 = vmatmul.mubr.bf16.gmra.mrb[96].mxu1 %v5496_v38  ;;  %v3472_v6 = vld [vmem:[%s8977_s4 + $0x320] sm:$0xff] }
 0x514   :  { %v2622_v63 = vpop.permute.xlu0 %2621 }
 0x515   :  { %5267 = vset.pattern.permute.xlu0 %v9348_v55  ;;  %v2775_v8 = vmul.f32 %v2622_v63, %v7536_v45  ;;  %v2776_v56 = vmul.f32 %v2622_v63, %v7517_v26  ;;  %v2416_v26 = vld [vmem:[%s8976_s1 + $0x200] sm:$0xff]  ;;  %v2417_v55 = vld [vmem:[%s8976_s1 + $0x208] sm:$0xff] }
 0x516   :  { %3165 = vperm.xlu1 %5266, %v2198_v51   ;;  %3160 = vperm.xlu0 %5267, %v2197_v37   ;;  %v8236_v33 = vpop.permute.xlu1 %3140  ;;  %v5018_v37 = vcombine.high %v3472_v6, %v3472_v6  ;;  %v5017_v51 = vcombine.low %v3472_v6, %v3472_v6 }
 0x517   :  { %v2877_v24 = vadd.f32 %v2775_v8, %v2418_v61  ;;  %v2878_v45 = vadd.f32 %v2776_v56, %v2419_v19 }
 0x518   :  { %4380 = vmatprep.mubr.bf16.mxu1 %v5018_v37 }
 0x519   :  { %v3234_v8 = vadd.f32 %v8171_v7, %v2877_v24  ;;  %v3235_v56 = vadd.f32 %v8171_v7, %v2878_v45 }
 0x51a   :  { %v8244_v41 = vpop.permute.xlu1 %3145  ;;  %4381 = vmatmul.mubr.bf16.gmra.mrb[100].mxu1 %v5017_v51  ;;  %v2420_v51 = vld [vmem:[%s8976_s1 + $0x220] sm:$0xff] }
 0x51b   :  { %5022 = vmatprep.mubr.msk.bf16.mxu1 %vm765_vm1, %v5501_v50  ;;  %v3336_v7 = vmax.f32 %v3234_v8, 0.0 }
 0x51e   :  { %v8251_v60 = vpop.permute.xlu1 %3150 }
 0x522   :  { %v2617_v40 = vpop.permute.xlu1 %2616 }
 0x523   :  { %v2773_v38 = vmul.f32 %v2617_v40, %v7470_v48  ;;  %v2774_v63 = vmul.f32 %v2617_v40, %v7455_v22  ;;  %v2421_v22 = vld [vmem:[%s8976_s1 + $0x228] sm:$0xff]  ;;  %v2423_v40 = vld [vmem:[%s8976_s1 + $0x238] sm:$0xff] }
 0x525   :  { %v2875_v6 = vadd.f32 %v2773_v38, %v2416_v26  ;;  %v2876_v37 = vadd.f32 %v2774_v63, %v2417_v55  ;;  %v3337_v63 = vmax.f32 %v3235_v56, 0.0  ;;  %v2425_v56 = vld [vmem:[%s8976_s1 + $0x248] sm:$0xff] }
 0x526   :  { %v2627_v61 = vpop.permute.xlu1 %2626 }
 0x527   :  { %v3232_v19 = vadd.f32 %v8166_v2, %v2875_v6  ;;  %v3233_v34 = vadd.f32 %v8166_v2, %v2876_v37  ;;  %v2777_v48 = vmul.f32 %v2627_v61, %v7493_v32  ;;  %v2778_v50 = vmul.f32 %v2627_v61, %v7483_v10  ;;  %v2422_v2 = vld [vmem:[%s8976_s1 + $0x230] sm:$0xff] }
 0x529   :  { %v3334_v24 = vmax.f32 %v3232_v19, 0.0  ;;  %v3335_v26 = vmax.f32 %v3233_v34, 0.0  ;;  %v2879_v45 = vadd.f32 %v2777_v48, %v2420_v51  ;;  %v2880_v55 = vadd.f32 %v2778_v50, %v2421_v22  ;;  %v2424_v51 = vld [vmem:[%s8976_s1 + $0x240] sm:$0xff] }
 0x52a   :  { %v2632_v38 = vpop.permute.xlu1 %2631 }
 0x52b   :  { %v2779_v6 = vmul.f32 %v2632_v38, %v7548_v42  ;;  %v2780_v32 = vmul.f32 %v2632_v38, %v7523_v58  ;;  %v3507_v10 = vpack.c.bf16 %v3337_v63, %v3335_v26  ;;  %v3506_v37 = vpack.c.bf16 %v3336_v7, %v3334_v24 }
 0x52c   :  { %v3236_v61 = vadd.f32 %v8176_v28, %v2879_v45  ;;  %v3237_v19 = vadd.f32 %v8176_v28, %v2880_v55  ;;  %v2426_v55 = vld [vmem:[%s8976_s1 + $0x250] sm:$0xff] }
 0x52d   :  { %v2881_v34 = vadd.f32 %v2779_v6, %v2422_v2  ;;  %v2882_v8 = vadd.f32 %v2780_v32, %v2423_v40  ;;  %4389 = vmatprep.subr.bf16.mxu1 %v3507_v10  ;;  %v2427_v2 = vld [vmem:[%s8976_s1 + $0x258] sm:$0xff] }
 0x52e   :  { %v2637_v42 = vpop.permute.xlu1 %2636  ;;  %4390 = vmatpush1.bf16.msra.mxu1 %v3506_v37  ;;  %v3338_v45 = vmax.f32 %v3236_v61, 0.0 }
 0x52f   :  { %v3238_v58 = vadd.f32 %v8179_v5, %v2881_v34  ;;  %v3239_v22 = vadd.f32 %v8179_v5, %v2882_v8  ;;  %v2781_v48 = vmul.f32 %v2637_v42, %v7509_v47  ;;  %v2782_v50 = vmul.f32 %v2637_v42, %v7501_v39  ;;  %v9349_v47 = vld [vmem:[#allocation58_spill] sm:$0xff] }
 0x530   :  { %v3339_v5 = vmax.f32 %v3237_v19, 0.0 }
 0x531   :  { %v3340_v28 = vmax.f32 %v3238_v58, 0.0  ;;  %v2883_v24 = vadd.f32 %v2781_v48, %v2424_v51  ;;  %v2884_v26 = vadd.f32 %v2782_v50, %v2425_v56  ;;  %v3341_v7 = vmax.f32 %v3239_v22, 0.0 }
 0x532   :  { %v2642_v40 = vpop.permute.xlu1 %2641 }
 0x533   :  { %v2783_v38 = vmul.f32 %v2642_v40, %v7576_v0  ;;  %v2784_v63 = vmul.f32 %v2642_v40, %v9349_v47  ;;  %v3509_v39 = vpack.c.bf16 %v3341_v7, %v3339_v5  ;;  %v3508_v6 = vpack.c.bf16 %v3340_v28, %v3338_v45  ;;  %v2435_v47 = vld [vmem:[%s8976_s1 + $0x298] sm:$0xff] }
 0x534   :  { %v3240_v32 = vadd.f32 %v8213_v16, %v2883_v24  ;;  %v3241_v10 = vadd.f32 %v8213_v16, %v2884_v26  ;;  %v2430_v16 = vld [vmem:[%s8976_s1 + $0x270] sm:$0xff]  ;;  %v2428_v26 = vld [vmem:[%s8976_s1 + $0x260] sm:$0xff] }
 0x535   :  { %v2885_v37 = vadd.f32 %v2783_v38, %v2426_v55  ;;  %v2886_v34 = vadd.f32 %v2784_v63, %v2427_v2  ;;  %4391 = vmatprep.subr.bf16.mxu1 %v3509_v39  ;;  %v2434_v38 = vld [vmem:[%s8976_s1 + $0x290] sm:$0xff] }
 0x536   :  { %4392 = vmatpush1.bf16.msra.mxu1 %v3508_v6  ;;  %v3342_v51 = vmax.f32 %v3240_v32, 0.0  ;;  %v3343_v56 = vmax.f32 %v3241_v10, 0.0  ;;  %v2433_v10 = vld [vmem:[%s8976_s1 + $0x288] sm:$0xff] }
 0x537   :  { %v3242_v8 = vadd.f32 %v8189_v62, %v2885_v37  ;;  %v3243_v61 = vadd.f32 %v8189_v62, %v2886_v34  ;;  %v2431_v62 = vld [vmem:[%s8976_s1 + $0x278] sm:$0xff] }
 0x539   :  { %v3344_v19 = vmax.f32 %v3242_v8, 0.0  ;;  %v3345_v0 = vmax.f32 %v3243_v61, 0.0 }
 0x53b   :  { %v3511_v42 = vpack.c.bf16 %v3345_v0, %v3343_v56  ;;  %v3510_v58 = vpack.c.bf16 %v3344_v19, %v3342_v51  ;;  %v2437_v0 = vld [vmem:[%s8976_s1 + $0x2a8] sm:$0xff] }
 0x53d   :  { %4393 = vmatprep.subr.bf16.mxu1 %v3511_v42 }
 0x53e   :  { %4394 = vmatpush1.bf16.msra.mxu1 %v3510_v58 }
 0x567   :  { %v2652_v22 = vpop.permute.xlu1 %2651 }
 0x568   :  { %v2787_v48 = vmul.f32 %v2652_v22, %v7809_v29  ;;  %v2788_v50 = vmul.f32 %v2652_v22, %v7812_v44  ;;  %v2429_v29 = vld [vmem:[%s8976_s1 + $0x268] sm:$0xff] }
 0x56a   :  { %v2889_v28 = vadd.f32 %v2787_v48, %v2430_v16  ;;  %v2890_v24 = vadd.f32 %v2788_v50, %v2431_v62  ;;  %v2438_v50 = vld [vmem:[%s8976_s1 + $0x2b0] sm:$0xff]  ;;  %v2439_v62 = vld [vmem:[%s8976_s1 + $0x2b8] sm:$0xff] }
 0x56c   :  { %v3246_v44 = vadd.f32 %v8203_v11, %v2889_v28  ;;  %v3247_v5 = vadd.f32 %v8203_v11, %v2890_v24  ;;  %v2432_v11 = vld [vmem:[%s8976_s1 + $0x280] sm:$0xff] }
 0x56e   :  { %v3348_v8 = vmax.f32 %v3246_v44, 0.0 }
 0x578   :  { %v2647_v7 = vpop.permute.xlu0 %2646 }
 0x579   :  { %v2785_v45 = vmul.f32 %v2647_v7, %v7859_v49  ;;  %v2786_v55 = vmul.f32 %v2647_v7, %v7862_v35 }
 0x57b   :  { %v2887_v2 = vadd.f32 %v2785_v45, %v2428_v26  ;;  %v2888_v40 = vadd.f32 %v2786_v55, %v2429_v29 }
 0x57c   :  { %v2662_v63 = vpop.permute.xlu0 %2661  ;;  %v2657_v39 = vpop.permute.xlu1 %2656 }
 0x57d   :  { %v3244_v49 = vadd.f32 %v8193_v57, %v2887_v2  ;;  %v3245_v35 = vadd.f32 %v8193_v57, %v2888_v40  ;;  %v2791_v6 = vmul.f32 %v2662_v63, %v7819_v54  ;;  %v2792_v32 = vmul.f32 %v2662_v63, %v7822_v20  ;;  %v2436_v20 = vld [vmem:[%s8976_s1 + $0x2a0] sm:$0xff]  ;;  %v2442_v2 = vld [vmem:[%s8976_s1 + $0x2d0] sm:$0xff]  ;;  %v2443_v40 = vld [vmem:[%s8976_s1 + $0x2d8] sm:$0xff] }
 0x57e   :  { %v2789_v37 = vmul.f32 %v2657_v39, %v7880_v53  ;;  %v2790_v34 = vmul.f32 %v2657_v39, %v7883_v15  ;;  %v3349_v53 = vmax.f32 %v3247_v5, 0.0  ;;  %v2440_v39 = vld [vmem:[%s8976_s1 + $0x2c0] sm:$0xff] }
 0x57f   :  { %v2893_v61 = vadd.f32 %v2791_v6, %v2434_v38  ;;  %v2894_v51 = vadd.f32 %v2792_v32, %v2435_v47  ;;  %v3347_v57 = vmax.f32 %v3245_v35, 0.0  ;;  %v3346_v19 = vmax.f32 %v3244_v49, 0.0  ;;  %v2441_v49 = vld [vmem:[%s8976_s1 + $0x2c8] sm:$0xff] }
 0x580   :  { %v2891_v54 = vadd.f32 %v2789_v37, %v2432_v11  ;;  %v2892_v56 = vadd.f32 %v2790_v34, %v2433_v10  ;;  %v2667_v42 = vpop.permute.xlu0 %2666  ;;  %v2672_v58 = vpop.permute.xlu1 %2671 }
 0x581   :  { %v3250_v15 = vadd.f32 %v8215_v17, %v2893_v61  ;;  %v3251_v22 = vadd.f32 %v8215_v17, %v2894_v51  ;;  %v2793_v48 = vmul.f32 %v2667_v42, %v7896_v14  ;;  %v2794_v16 = vmul.f32 %v2667_v42, %v7899_v21  ;;  %v2444_v51 = vld [vmem:[%s8976_s1 + $0x2e0] sm:$0xff] }
 0x582   :  { %v3248_v28 = vadd.f32 %v8225_v36, %v2891_v54  ;;  %v3249_v24 = vadd.f32 %v8225_v36, %v2892_v56  ;;  %v2795_v26 = vmul.f32 %v2672_v58, %v7830_v43  ;;  %v2796_v17 = vmul.f32 %v2672_v58, %v7833_v4 }
 0x583   :  { %v3352_v29 = vmax.f32 %v3250_v15, 0.0  ;;  %v2895_v14 = vadd.f32 %v2793_v48, %v2436_v20  ;;  %v2896_v7 = vadd.f32 %v2794_v16, %v2437_v0  ;;  %v3513_v21 = vpack.c.bf16 %v3349_v53, %v3347_v57  ;;  %v2446_v53 = vld [vmem:[%s8976_s1 + $0x2f0] sm:$0xff] }
 0x584   :  { %v3350_v45 = vmax.f32 %v3248_v28, 0.0  ;;  %v2897_v55 = vadd.f32 %v2795_v26, %v2438_v50  ;;  %v2898_v44 = vadd.f32 %v2796_v17, %v2439_v62  ;;  %v2682_v36 = vpop.permute.xlu0 %2681  ;;  %v3512_v5 = vpack.c.bf16 %v3348_v8, %v3346_v19  ;;  %v2677_v43 = vpop.permute.xlu1 %2676 }
 0x585   :  { %v3252_v4 = vadd.f32 %v8220_v1, %v2895_v14  ;;  %v3253_v38 = vadd.f32 %v8220_v1, %v2896_v7  ;;  %4395 = vmatprep.subr.bf16.mxu1 %v3513_v21  ;;  %v2799_v47 = vmul.f32 %v2682_v36, %v7841_v31  ;;  %v2800_v63 = vmul.f32 %v2682_v36, %v7844_v46 }
 0x586   :  { %v3254_v35 = vadd.f32 %v8231_v25, %v2897_v55  ;;  %v3255_v6 = vadd.f32 %v8231_v25, %v2898_v44  ;;  %4396 = vmatpush1.bf16.msra.mxu1 %v3512_v5  ;;  %v2797_v1 = vmul.f32 %v2677_v43, %v7913_v3  ;;  %v2798_v32 = vmul.f32 %v2677_v43, %v7916_v13  ;;  %v2445_v25 = vld [vmem:[%s8976_s1 + $0x2e8] sm:$0xff] }
 0x587   :  { %v3354_v31 = vmax.f32 %v3252_v4, 0.0  ;;  %v2901_v11 = vadd.f32 %v2799_v47, %v2442_v2  ;;  %v2902_v46 = vadd.f32 %v2800_v63, %v2443_v40  ;;  %v3351_v10 = vmax.f32 %v3249_v24, 0.0  ;;  %v9350_v2 = vld [vmem:[#allocation59_spill] sm:$0xff]  ;;  %v2450_v4 = vld [vmem:[%s8976_s1 + $0x310] sm:$0xff]  ;;  %v9351_v47 = vld [vmem:[#allocation62_spill] sm:$0xff] }
 0x588   :  { %v3356_v37 = vmax.f32 %v3254_v35, 0.0  ;;  %v2899_v34 = vadd.f32 %v2797_v1, %v2440_v39  ;;  %v2900_v8 = vadd.f32 %v2798_v32, %v2441_v49  ;;  %v3353_v61 = vmax.f32 %v3251_v22, 0.0  ;;  %v2687_v57 = vpop.permute.xlu0 %2686  ;;  %v2692_v3 = vpop.permute.xlu1 %2691  ;;  %v9352_v39 = vld [vmem:[#allocation2_spill] sm:$0xff]  ;;  %v2453_v1 = vld [vmem:[%s8976_s1 + $0x328] sm:$0xff] }
 0x589   :  { %v3258_v13 = vadd.f32 %v8236_v33, %v2901_v11  ;;  %v3259_v19 = vadd.f32 %v8236_v33, %v2902_v46  ;;  %v2801_v54 = vmul.f32 %v2687_v57, %v7924_v27  ;;  %v2802_v56 = vmul.f32 %v2687_v57, %v7927_v12  ;;  %v2447_v33 = vld [vmem:[%s8976_s1 + $0x2f8] sm:$0xff] }
 0x58a   :  { %v3256_v20 = vadd.f32 %v8233_v30, %v2899_v34  ;;  %v3257_v0 = vadd.f32 %v8233_v30, %v2900_v8  ;;  %v3515_v42 = vpack.c.bf16 %v3353_v61, %v3351_v10  ;;  %v3514_v58 = vpack.c.bf16 %v3352_v29, %v3350_v45 }
 0x58b   :  { %v3360_v15 = vmax.f32 %v3258_v13, 0.0  ;;  %v2903_v22 = vadd.f32 %v2801_v54, %v2444_v51  ;;  %v2904_v48 = vadd.f32 %v2802_v56, %v2445_v25  ;;  %v2803_v27 = vmul.f32 %v2692_v3, %v7852_v59 }
 0x58c   :  { %v3358_v12 = vmax.f32 %v3256_v20, 0.0  ;;  %4397 = vmatprep.subr.bf16.mxu1 %v3515_v42  ;;  %v2804_v16 = vmul.f32 %v2692_v3, %v7855_v9  ;;  %v3355_v30 = vmax.f32 %v3253_v38, 0.0  ;;  %v3357_v50 = vmax.f32 %v3255_v6, 0.0  ;;  %v2702_v62 = vpop.permute.xlu0 %2701  ;;  %v2697_v28 = vpop.permute.xlu1 %2696  ;;  %v2448_v9 = vld [vmem:[%s8976_s1 + $0x300] sm:$0xff] }
 0x58d   :  { %v3260_v24 = vadd.f32 %v8244_v41, %v2903_v22  ;;  %v3261_v26 = vadd.f32 %v8244_v41, %v2904_v48  ;;  %4398 = vmatpush1.bf16.msra.mxu1 %v3514_v58  ;;  %v2905_v17 = vadd.f32 %v2803_v27, %v2446_v53  ;;  %v2807_v29 = vmul.f32 %v2702_v62, %v7873_v18  ;;  %v2449_v18 = vld [vmem:[%s8976_s1 + $0x308] sm:$0xff]  ;;  %v2452_v6 = vld [vmem:[%s8976_s1 + $0x320] sm:$0xff] }
 0x58e   :  { %v2906_v14 = vadd.f32 %v2804_v16, %v2447_v33  ;;  %v3517_v7 = vpack.c.bf16 %v3357_v50, %v3355_v30  ;;  %v2808_v59 = vmul.f32 %v2702_v62, %v7876_v23  ;;  %v3516_v21 = vpack.c.bf16 %v3356_v37, %v3354_v31  ;;  %v5499_v30 = vld [vmem:[%s8977_s4 + $0x8] ss:$16 sps:$4 sm:$0xff]   ;;  %v5502_v50 = vld [vmem:[%s8977_s4 + $0x2c] ss:$16 sps:$4 sm:$0xff]  }
 0x58f   :  { %v3362_v45 = vmax.f32 %v3260_v24, 0.0  ;;  %v3262_v55 = vadd.f32 %v8251_v60, %v2905_v17  ;;  %v2805_v44 = vmul.f32 %v2697_v28, %v7941_v52  ;;  %v2806_v41 = vmul.f32 %v2697_v28, %v9350_v2  ;;  %v2451_v52 = vld [vmem:[%s8976_s1 + $0x318] sm:$0xff] }
 0x590   :  { %v3263_v40 = vadd.f32 %v8251_v60, %v2906_v14  ;;  %4399 = vmatprep.subr.bf16.mxu1 %v3517_v7  ;;  %v3359_v23 = vmax.f32 %v3257_v0, 0.0  ;;  %v3361_v36 = vmax.f32 %v3259_v19, 0.0  ;;  %v2707_v5 = vpop.permute.xlu0 %2706  ;;  %v3518_v43 = vpack.c.bf16 %v3360_v15, %v3358_v12  ;;  %v5504_v62 = vld [vmem:[%s8977_s4 + $0x28] ss:$16 sps:$4 sm:$0xff]   ;;  %v5505_v28 = vld [vmem:[%s8977_s4 + $0x4c] ss:$16 sps:$4 sm:$0xff]  }
 0x591   :  { %v3364_v38 = vmax.f32 %v3262_v55, 0.0  ;;  %4400 = vmatpush1.bf16.msra.mxu1 %v3516_v21  ;;  %v2809_v63 = vmul.f32 %v2707_v5, %v9351_v47  ;;  %v2810_v49 = vmul.f32 %v2707_v5, %v9352_v39  ;;  %v2907_v60 = vadd.f32 %v2805_v44, %v2448_v9  ;;  %v3156_v35 = vpop.permute.xlu1 %3155  ;;  %v5507_v24 = vld [vmem:[%s8977_s4 + $0x48] ss:$16 sps:$4 sm:$0xff]   ;;  %v5514_v7 = vld [vmem:[%s8977_s4 + $0xac] ss:$16 sps:$4 sm:$0xff]  }
 0x592   :  { %v3519_v32 = vpack.c.bf16 %v3361_v36, %v3359_v23  ;;  %v2908_v31 = vadd.f32 %v2806_v41, %v2449_v18  ;;  %v3363_v11 = vmax.f32 %v3261_v26, 0.0  ;;  %v3365_v46 = vmax.f32 %v3263_v40, 0.0  ;;  %v5508_v26 = vld [vmem:[%s8977_s4 + $0x6c] ss:$16 sps:$4 sm:$0xff]   ;;  %v5510_v17 = vld [vmem:[%s8977_s4 + $0x68] ss:$16 sps:$4 sm:$0xff]  }
 0x593   :  { %v3264_v10 = vadd.f32 %v3156_v35, %v2907_v60  ;;  %v2909_v37 = vadd.f32 %v2807_v29, %v2450_v4  ;;  %v2910_v34 = vadd.f32 %v2808_v59, %v2451_v52  ;;  %v2911_v51 = vadd.f32 %v2809_v63, %v2452_v6  ;;  %v5511_v29 = vld [vmem:[%s8977_s4 + $0x8c] ss:$16 sps:$4 sm:$0xff]   ;;  %v5513_v14 = vld [vmem:[%s8977_s4 + $0x88] ss:$16 sps:$4 sm:$0xff]  }
 0x594   :  { %4401 = vmatprep.subr.bf16.mxu1 %v3519_v32  ;;  %v3265_v8 = vadd.f32 %v3156_v35, %v2908_v31  ;;  %v3521_v61 = vpack.c.bf16 %v3365_v46, %v3363_v11  ;;  %v2912_v25 = vadd.f32 %v2810_v49, %v2453_v1  ;;  %v3520_v57 = vpack.c.bf16 %v3364_v38, %v3362_v45  ;;  %v5516_v59 = vld [vmem:[%s8977_s4 + $0xa8] ss:$16 sps:$4 sm:$0xff]   ;;  %v5517_v21 = vld [vmem:[%s8977_s4 + $0xcc] ss:$16 sps:$4 sm:$0xff]  }
 0x595   :  { %4402 = vmatpush1.bf16.msra.mxu1 %v3518_v43  ;;  %v3161_v3 = vpop.permute.xlu0 %3160  ;;  %v3166_v13 = vpop.permute.xlu1 %3165  ;;  %v3366_v20 = vmax.f32 %v3264_v10, 0.0  ;;  %v5519_v9 = vld [vmem:[%s8977_s4 + $0xc8] ss:$16 sps:$4 sm:$0xff]   ;;  %v5520_v45 = vld [vmem:[%s8977_s4 + $0xec] ss:$16 sps:$4 sm:$0xff]  }
 0x596   :  { %4403 = vmatprep.subr.bf16.mxu1 %v3521_v61  ;;  %v3266_v19 = vadd.f32 %v3161_v3, %v2909_v37  ;;  %v3267_v54 = vadd.f32 %v3161_v3, %v2910_v34  ;;  %v3268_v56 = vadd.f32 %v3166_v13, %v2911_v51  ;;  %v3269_v0 = vadd.f32 %v3166_v13, %v2912_v25  ;;  %v5522_v55 = vld [vmem:[%s8977_s4 + $0xe8] ss:$16 sps:$4 sm:$0xff]   ;;  %v5523_v44 = vld [vmem:[%s8977_s4 + $0x10c] ss:$16 sps:$4 sm:$0xff]  }
 0x597   :  { %v3367_v42 = vmax.f32 %v3265_v8, 0.0  ;;  %v5525_v2 = vld [vmem:[%s8977_s4 + $0x108] ss:$16 sps:$4 sm:$0xff]   ;;  %v5526_v41 = vld [vmem:[%s8977_s4 + $0x12c] ss:$16 sps:$4 sm:$0xff]  }
 0x598   :  { %v3368_v58 = vmax.f32 %v3266_v19, 0.0  ;;  %v3369_v53 = vmax.f32 %v3267_v54, 0.0  ;;  %v3370_v15 = vmax.f32 %v3268_v56, 0.0  ;;  %v3371_v22 = vmax.f32 %v3269_v0, 0.0  ;;  %v5528_v18 = vld [vmem:[%s8977_s4 + $0x128] ss:$16 sps:$4 sm:$0xff]  }
 0x599   :  { %4404 = vmatpush1.bf16.msra.mxu1 %v3520_v57  ;;  %v5529_v40 = vld [vmem:[%s8977_s4 + $0x14c] ss:$16 sps:$4 sm:$0xff]   ;;  %v5531_v23 = vld [vmem:[%s8977_s4 + $0x148] ss:$16 sps:$4 sm:$0xff]  }
 0x59a   :  { %v3522_v48 = vpack.c.bf16 %v3368_v58, %v3366_v20  ;;  %v3523_v33 = vpack.c.bf16 %v3369_v53, %v3367_v42  ;;  %v3524_v27 = vpack.c.bf16 %v3370_v15, %v3370_v15  ;;  %v3525_v12 = vpack.c.bf16 %v3371_v22, %v3371_v22  ;;  %v5532_v36 = vld [vmem:[%s8977_s4 + $0x16c] ss:$16 sps:$4 sm:$0xff]   ;;  %v5534_v5 = vld [vmem:[%s8977_s4 + $0x168] ss:$16 sps:$4 sm:$0xff]  }
 0x59b   :  { %v5535_v43 = vld [vmem:[%s8977_s4 + $0x18c] ss:$16 sps:$4 sm:$0xff]   ;;  %v5537_v4 = vld [vmem:[%s8977_s4 + $0x188] ss:$16 sps:$4 sm:$0xff]  }
 0x59c   :  { %4405 = vmatprep.subr.bf16.mxu1 %v3523_v33  ;;  %v4093_v16 = vsel %vm844_vm0, %v3524_v27, 0  ;;  %v5538_v52 = vld [vmem:[%s8977_s4 + $0x1ac] ss:$16 sps:$4 sm:$0xff]   ;;  %v5540_v38 = vld [vmem:[%s8977_s4 + $0x1a8] ss:$16 sps:$4 sm:$0xff]  }
 0x59d   :  { %4406 = vmatpush1.bf16.msra.mxu1 %v3522_v48  ;;  %v5541_v47 = vld [vmem:[%s8977_s4 + $0x1cc] ss:$16 sps:$4 sm:$0xff]   ;;  %v5543_v63 = vld [vmem:[%s8977_s4 + $0x1c8] ss:$16 sps:$4 sm:$0xff]  }
 0x59e   :  { %5021 = vmatprep.subr.msk.bf16.mxu1 %vm844_vm0, %v3525_v12  ;;  %v5544_v39 = vld [vmem:[%s8977_s4 + $0x1ec] ss:$16 sps:$4 sm:$0xff]   ;;  %v5546_v49 = vld [vmem:[%s8977_s4 + $0x1e8] ss:$16 sps:$4 sm:$0xff]  }
 0x59f   :  { %v5547_v60 = vld [vmem:[%s8977_s4 + $0x20c] ss:$16 sps:$4 sm:$0xff]   ;;  %v5549_v35 = vld [vmem:[%s8977_s4 + $0x208] ss:$16 sps:$4 sm:$0xff]  }
 0x5a0   :  { %v5550_v6 = vld [vmem:[%s8977_s4 + $0x22c] ss:$16 sps:$4 sm:$0xff]   ;;  %v5552_v1 = vld [vmem:[%s8977_s4 + $0x228] ss:$16 sps:$4 sm:$0xff]  }
 0x5a1   :  { %4408 = vmatpush1.bf16.msra.mxu1 %v4093_v16  ;;  %v5553_v32 = vld [vmem:[%s8977_s4 + $0x24c] ss:$16 sps:$4 sm:$0xff]   ;;  %v5555_v31 = vld [vmem:[%s8977_s4 + $0x248] ss:$16 sps:$4 sm:$0xff]  }
 0x5a2   :  { %v5556_v11 = vld [vmem:[%s8977_s4 + $0x26c] ss:$16 sps:$4 sm:$0xff]   ;;  %v5558_v46 = vld [vmem:[%s8977_s4 + $0x268] ss:$16 sps:$4 sm:$0xff]  }
 0x5a3   :  { %v5559_v10 = vld [vmem:[%s8977_s4 + $0x28c] ss:$16 sps:$4 sm:$0xff]   ;;  %v5561_v37 = vld [vmem:[%s8977_s4 + $0x288] ss:$16 sps:$4 sm:$0xff]  }
 0x5a4   :  { %4422 = vmatmul.mubr.bf16.vlgmr.msra.gmra.mrb[0].mxu1 %v5499_v30  ;;  %v5562_v34 = vld [vmem:[%s8977_s4 + $0x2ac] ss:$16 sps:$4 sm:$0xff]   ;;  %v5564_v8 = vld [vmem:[%s8977_s4 + $0x2a8] ss:$16 sps:$4 sm:$0xff]  }
 0x5a5   :  { %5023 = vmatprep.mubr.msk.bf16.mxu1 %vm765_vm1, %v5502_v50  ;;  %v5565_v61 = vld [vmem:[%s8977_s4 + $0x2cc] ss:$16 sps:$4 sm:$0xff]   ;;  %v5567_v51 = vld [vmem:[%s8977_s4 + $0x2c8] ss:$16 sps:$4 sm:$0xff]  }
 0x5a6   :  { %v5568_v25 = vld [vmem:[%s8977_s4 + $0x2ec] ss:$16 sps:$4 sm:$0xff]   ;;  %v5570_v57 = vld [vmem:[%s8977_s4 + $0x2e8] ss:$16 sps:$4 sm:$0xff]  }
 0x5a7   :  { %v5571_v3 = vld [vmem:[%s8977_s4 + $0x30c] ss:$16 sps:$4 sm:$0xff]   ;;  %v5573_v19 = vld [vmem:[%s8977_s4 + $0x308] ss:$16 sps:$4 sm:$0xff]  }
 0x5a8   :  { %v3473_v13 = vld [vmem:[%s8977_s4 + $0x328] sm:$0xff] }
 0x5a9   :  { %v5020_v54 = vcombine.high %v3473_v13, %v3473_v13  ;;  %v5019_v56 = vcombine.low %v3473_v13, %v3473_v13 }
 0x5ac   :  { %4432 = vmatmul.mubr.bf16.gmra.mrb[4].mxu1 %v5504_v62 }
 0x5ad   :  { %5024 = vmatprep.mubr.msk.bf16.mxu1 %vm765_vm1, %v5505_v28 }
 0x5b4   :  { %4442 = vmatmul.mubr.bf16.gmra.mrb[8].mxu1 %v5507_v24 }
 0x5b5   :  { %5025 = vmatprep.mubr.msk.bf16.mxu1 %vm765_vm1, %v5508_v26 }
 0x5bc   :  { %4452 = vmatmul.mubr.bf16.gmra.mrb[12].mxu1 %v5510_v17 }
 0x5bd   :  { %5026 = vmatprep.mubr.msk.bf16.mxu1 %vm765_vm1, %v5511_v29 }
 0x5c4   :  { %4462 = vmatmul.mubr.bf16.gmra.mrb[16].mxu1 %v5513_v14 }
 0x5c5   :  { %5027 = vmatprep.mubr.msk.bf16.mxu1 %vm765_vm1, %v5514_v7 }
 0x5cc   :  { %4472 = vmatmul.mubr.bf16.gmra.mrb[20].mxu1 %v5516_v59 }
 0x5cd   :  { %5028 = vmatprep.mubr.msk.bf16.mxu1 %vm765_vm1, %v5517_v21 }
 0x5d4   :  { %4482 = vmatmul.mubr.bf16.gmra.mrb[24].mxu1 %v5519_v9 }
 0x5d5   :  { %5029 = vmatprep.mubr.msk.bf16.mxu1 %vm765_vm1, %v5520_v45 }
 0x5dc   :  { %4492 = vmatmul.mubr.bf16.gmra.mrb[28].mxu1 %v5522_v55 }
 0x5dd   :  { %5030 = vmatprep.mubr.msk.bf16.mxu1 %vm765_vm1, %v5523_v44 }
 0x5e4   :  { %4502 = vmatmul.mubr.bf16.gmra.mrb[32].mxu1 %v5525_v2 }
 0x5e5   :  { %5031 = vmatprep.mubr.msk.bf16.mxu1 %vm765_vm1, %v5526_v41 }
 0x5ec   :  { %4512 = vmatmul.mubr.bf16.gmra.mrb[36].mxu1 %v5528_v18 }
 0x5ed   :  { %5032 = vmatprep.mubr.msk.bf16.mxu1 %vm765_vm1, %v5529_v40 }
 0x5f4   :  { %4522 = vmatmul.mubr.bf16.gmra.mrb[40].mxu1 %v5531_v23 }
 0x5f5   :  { %5033 = vmatprep.mubr.msk.bf16.mxu1 %vm765_vm1, %v5532_v36 }
 0x5fc   :  { %4532 = vmatmul.mubr.bf16.gmra.mrb[44].mxu1 %v5534_v5 }
 0x5fd   :  { %5034 = vmatprep.mubr.msk.bf16.mxu1 %vm765_vm1, %v5535_v43 }
 0x604   :  { %4542 = vmatmul.mubr.bf16.gmra.mrb[48].mxu1 %v5537_v4 }
 0x605   :  { %5035 = vmatprep.mubr.msk.bf16.mxu1 %vm765_vm1, %v5538_v52 }
 0x60c   :  { %4552 = vmatmul.mubr.bf16.gmra.mrb[52].mxu1 %v5540_v38 }
 0x60d   :  { %5036 = vmatprep.mubr.msk.bf16.mxu1 %vm765_vm1, %v5541_v47 }
 0x614   :  { %4562 = vmatmul.mubr.bf16.gmra.mrb[56].mxu1 %v5543_v63 }
 0x615   :  { %5037 = vmatprep.mubr.msk.bf16.mxu1 %vm765_vm1, %v5544_v39 }
 0x61c   :  { %4572 = vmatmul.mubr.bf16.gmra.mrb[60].mxu1 %v5546_v49 }
 0x61d   :  { %5038 = vmatprep.mubr.msk.bf16.mxu1 %vm765_vm1, %v5547_v60 }
 0x624   :  { %4582 = vmatmul.mubr.bf16.gmra.mrb[64].mxu1 %v5549_v35 }
 0x625   :  { %5039 = vmatprep.mubr.msk.bf16.mxu1 %vm765_vm1, %v5550_v6 }
 0x62c   :  { %4592 = vmatmul.mubr.bf16.gmra.mrb[68].mxu1 %v5552_v1 }
 0x62d   :  { %5040 = vmatprep.mubr.msk.bf16.mxu1 %vm765_vm1, %v5553_v32 }
 0x634   :  { %4602 = vmatmul.mubr.bf16.gmra.mrb[72].mxu1 %v5555_v31 }
 0x635   :  { %5041 = vmatprep.mubr.msk.bf16.mxu1 %vm765_vm1, %v5556_v11 }
 0x63c   :  { %4612 = vmatmul.mubr.bf16.gmra.mrb[76].mxu1 %v5558_v46 }
 0x63d   :  { %5042 = vmatprep.mubr.msk.bf16.mxu1 %vm765_vm1, %v5559_v10 }
 0x644   :  { %4622 = vmatmul.mubr.bf16.gmra.mrb[80].mxu1 %v5561_v37 }
 0x645   :  { %5043 = vmatprep.mubr.msk.bf16.mxu1 %vm765_vm1, %v5562_v34 }
 0x64c   :  { %4632 = vmatmul.mubr.bf16.gmra.mrb[84].mxu1 %v5564_v8 }
 0x64d   :  { %5044 = vmatprep.mubr.msk.bf16.mxu1 %vm765_vm1, %v5565_v61 }
 0x654   :  { %4642 = vmatmul.mubr.bf16.gmra.mrb[88].mxu1 %v5567_v51 }
 0x655   :  { %5045 = vmatprep.mubr.msk.bf16.mxu1 %vm765_vm1, %v5568_v25 }
 0x65c   :  { %4652 = vmatmul.mubr.bf16.gmra.mrb[92].mxu1 %v5570_v57 }
 0x65d   :  { %5046 = vmatprep.mubr.msk.bf16.mxu1 %vm765_vm1, %v5571_v3 }
 0x664   :  { %4662 = vmatmul.mubr.bf16.gmra.mrb[96].mxu1 %v5573_v19 }
 0x665   :  { %5047 = vmatprep.mubr.msk.bf16.mxu1 %vm765_vm1, %v5020_v54 }
 0x66c   :  { %4672 = vmatmul.mubr.bf16.gmra.mrb[100].mxu1 %v5019_v56 }
 0x677   :  { %v4423_v20 = vpop.f32.mrb[0].mxu1 }
 0x678   :  { %4680 = vst [vmem:[%s8978_s5] sm:$0xff] %v4423_v20  ;;  %v4425_v0 = vpop.f32.mrb[1].mxu1 }
 0x679   :  { %4681 = vst.msk [vmem:[%s8978_s5 + $0x8] sm:$0xff] %vm1433_vm2, %v4425_v0  ;;  %v4427_v42 = vpop.f32.mrb[2].mxu1 }
 0x67a   :  { %4682 = vst [vmem:[%s8978_s5 + $0x10] sm:$0xff] %v4427_v42  ;;  %v4429_v58 = vpop.f32.mrb[3].mxu1 }
 0x67b   :  { %4683 = vst.msk [vmem:[%s8978_s5 + $0x18] sm:$0xff] %vm1433_vm2, %v4429_v58 }
 0x67f   :  { %v4433_v53 = vpop.f32.mrb[4].mxu1 }
 0x680   :  { %4684 = vst [vmem:[%s8978_s5 + $0x20] sm:$0xff] %v4433_v53  ;;  %v4435_v15 = vpop.f32.mrb[5].mxu1 }
 0x681   :  { %4685 = vst.msk [vmem:[%s8978_s5 + $0x28] sm:$0xff] %vm1433_vm2, %v4435_v15  ;;  %v4437_v22 = vpop.f32.mrb[6].mxu1 }
 0x682   :  { %4686 = vst [vmem:[%s8978_s5 + $0x30] sm:$0xff] %v4437_v22  ;;  %v4439_v48 = vpop.f32.mrb[7].mxu1 }
 0x683   :  { %4687 = vst.msk [vmem:[%s8978_s5 + $0x38] sm:$0xff] %vm1433_vm2, %v4439_v48 }
 0x687   :  { %v4443_v33 = vpop.f32.mrb[8].mxu1 }
 0x688   :  { %4688 = vst [vmem:[%s8978_s5 + $0x40] sm:$0xff] %v4443_v33  ;;  %v4445_v27 = vpop.f32.mrb[9].mxu1 }
 0x689   :  { %4689 = vst.msk [vmem:[%s8978_s5 + $0x48] sm:$0xff] %vm1433_vm2, %v4445_v27  ;;  %v4447_v12 = vpop.f32.mrb[10].mxu1 }
 0x68a   :  { %4690 = vst [vmem:[%s8978_s5 + $0x50] sm:$0xff] %v4447_v12  ;;  %v4449_v16 = vpop.f32.mrb[11].mxu1 }
 0x68b   :  { %4691 = vst.msk [vmem:[%s8978_s5 + $0x58] sm:$0xff] %vm1433_vm2, %v4449_v16 }
 0x68f   :  { %v4453_v30 = vpop.f32.mrb[12].mxu1 }
 0x690   :  { %4692 = vst [vmem:[%s8978_s5 + $0x60] sm:$0xff] %v4453_v30  ;;  %v4455_v50 = vpop.f32.mrb[13].mxu1 }
 0x691   :  { %4693 = vst.msk [vmem:[%s8978_s5 + $0x68] sm:$0xff] %vm1433_vm2, %v4455_v50  ;;  %v4457_v62 = vpop.f32.mrb[14].mxu1 }
 0x692   :  { %4694 = vst [vmem:[%s8978_s5 + $0x70] sm:$0xff] %v4457_v62  ;;  %v4459_v28 = vpop.f32.mrb[15].mxu1 }
 0x693   :  { %4695 = vst.msk [vmem:[%s8978_s5 + $0x78] sm:$0xff] %vm1433_vm2, %v4459_v28 }
 0x697   :  { %v4463_v24 = vpop.f32.mrb[16].mxu1 }
 0x698   :  { %4696 = vst [vmem:[%s8978_s5 + $0x80] sm:$0xff] %v4463_v24  ;;  %v4465_v26 = vpop.f32.mrb[17].mxu1 }
 0x699   :  { %4697 = vst.msk [vmem:[%s8978_s5 + $0x88] sm:$0xff] %vm1433_vm2, %v4465_v26  ;;  %v4467_v17 = vpop.f32.mrb[18].mxu1 }
 0x69a   :  { %4698 = vst [vmem:[%s8978_s5 + $0x90] sm:$0xff] %v4467_v17  ;;  %v4469_v29 = vpop.f32.mrb[19].mxu1 }
 0x69b   :  { %4699 = vst.msk [vmem:[%s8978_s5 + $0x98] sm:$0xff] %vm1433_vm2, %v4469_v29 }
 0x69f   :  { %v4473_v14 = vpop.f32.mrb[20].mxu1 }
 0x6a0   :  { %4700 = vst [vmem:[%s8978_s5 + $0xa0] sm:$0xff] %v4473_v14  ;;  %v4475_v7 = vpop.f32.mrb[21].mxu1 }
 0x6a1   :  { %4701 = vst.msk [vmem:[%s8978_s5 + $0xa8] sm:$0xff] %vm1433_vm2, %v4475_v7  ;;  %v4477_v59 = vpop.f32.mrb[22].mxu1 }
 0x6a2   :  { %4702 = vst [vmem:[%s8978_s5 + $0xb0] sm:$0xff] %v4477_v59  ;;  %v4479_v21 = vpop.f32.mrb[23].mxu1 }
 0x6a3   :  { %4703 = vst.msk [vmem:[%s8978_s5 + $0xb8] sm:$0xff] %vm1433_vm2, %v4479_v21 }
 0x6a7   :  { %v4483_v9 = vpop.f32.mrb[24].mxu1 }
 0x6a8   :  { %4704 = vst [vmem:[%s8978_s5 + $0xc0] sm:$0xff] %v4483_v9  ;;  %v4485_v45 = vpop.f32.mrb[25].mxu1 }
 0x6a9   :  { %4705 = vst.msk [vmem:[%s8978_s5 + $0xc8] sm:$0xff] %vm1433_vm2, %v4485_v45  ;;  %v4487_v55 = vpop.f32.mrb[26].mxu1 }
 0x6aa   :  { %4706 = vst [vmem:[%s8978_s5 + $0xd0] sm:$0xff] %v4487_v55  ;;  %v4489_v44 = vpop.f32.mrb[27].mxu1 }
 0x6ab   :  { %4707 = vst.msk [vmem:[%s8978_s5 + $0xd8] sm:$0xff] %vm1433_vm2, %v4489_v44 }
 0x6af   :  { %v4493_v2 = vpop.f32.mrb[28].mxu1 }
 0x6b0   :  { %4708 = vst [vmem:[%s8978_s5 + $0xe0] sm:$0xff] %v4493_v2  ;;  %v4495_v41 = vpop.f32.mrb[29].mxu1 }
 0x6b1   :  { %4709 = vst.msk [vmem:[%s8978_s5 + $0xe8] sm:$0xff] %vm1433_vm2, %v4495_v41  ;;  %v4497_v18 = vpop.f32.mrb[30].mxu1 }
 0x6b2   :  { %4710 = vst [vmem:[%s8978_s5 + $0xf0] sm:$0xff] %v4497_v18  ;;  %v4499_v40 = vpop.f32.mrb[31].mxu1 }
 0x6b3   :  { %4711 = vst.msk [vmem:[%s8978_s5 + $0xf8] sm:$0xff] %vm1433_vm2, %v4499_v40 }
 0x6b7   :  { %v4503_v23 = vpop.f32.mrb[32].mxu1 }
 0x6b8   :  { %4712 = vst [vmem:[%s8978_s5 + $0x100] sm:$0xff] %v4503_v23  ;;  %v4505_v36 = vpop.f32.mrb[33].mxu1 }
 0x6b9   :  { %4713 = vst.msk [vmem:[%s8978_s5 + $0x108] sm:$0xff] %vm1433_vm2, %v4505_v36  ;;  %v4507_v5 = vpop.f32.mrb[34].mxu1 }
 0x6ba   :  { %4714 = vst [vmem:[%s8978_s5 + $0x110] sm:$0xff] %v4507_v5  ;;  %v4509_v43 = vpop.f32.mrb[35].mxu1 }
 0x6bb   :  { %4715 = vst.msk [vmem:[%s8978_s5 + $0x118] sm:$0xff] %vm1433_vm2, %v4509_v43 }
 0x6bf   :  { %v4513_v4 = vpop.f32.mrb[36].mxu1 }
 0x6c0   :  { %4716 = vst [vmem:[%s8978_s5 + $0x120] sm:$0xff] %v4513_v4  ;;  %v4515_v52 = vpop.f32.mrb[37].mxu1 }
 0x6c1   :  { %4717 = vst.msk [vmem:[%s8978_s5 + $0x128] sm:$0xff] %vm1433_vm2, %v4515_v52  ;;  %v4517_v38 = vpop.f32.mrb[38].mxu1 }
 0x6c2   :  { %4718 = vst [vmem:[%s8978_s5 + $0x130] sm:$0xff] %v4517_v38  ;;  %v4519_v47 = vpop.f32.mrb[39].mxu1 }
 0x6c3   :  { %4719 = vst.msk [vmem:[%s8978_s5 + $0x138] sm:$0xff] %vm1433_vm2, %v4519_v47 }
 0x6c7   :  { %v4523_v63 = vpop.f32.mrb[40].mxu1 }
 0x6c8   :  { %4720 = vst [vmem:[%s8978_s5 + $0x140] sm:$0xff] %v4523_v63  ;;  %v4525_v39 = vpop.f32.mrb[41].mxu1 }
 0x6c9   :  { %4721 = vst.msk [vmem:[%s8978_s5 + $0x148] sm:$0xff] %vm1433_vm2, %v4525_v39  ;;  %v4527_v49 = vpop.f32.mrb[42].mxu1 }
 0x6ca   :  { %4722 = vst [vmem:[%s8978_s5 + $0x150] sm:$0xff] %v4527_v49  ;;  %v4529_v60 = vpop.f32.mrb[43].mxu1 }
 0x6cb   :  { %4723 = vst.msk [vmem:[%s8978_s5 + $0x158] sm:$0xff] %vm1433_vm2, %v4529_v60 }
 0x6cf   :  { %v4533_v35 = vpop.f32.mrb[44].mxu1 }
 0x6d0   :  { %4724 = vst [vmem:[%s8978_s5 + $0x160] sm:$0xff] %v4533_v35  ;;  %v4535_v6 = vpop.f32.mrb[45].mxu1 }
 0x6d1   :  { %4725 = vst.msk [vmem:[%s8978_s5 + $0x168] sm:$0xff] %vm1433_vm2, %v4535_v6  ;;  %v4537_v1 = vpop.f32.mrb[46].mxu1 }
 0x6d2   :  { %4726 = vst [vmem:[%s8978_s5 + $0x170] sm:$0xff] %v4537_v1  ;;  %v4539_v32 = vpop.f32.mrb[47].mxu1 }
 0x6d3   :  { %4727 = vst.msk [vmem:[%s8978_s5 + $0x178] sm:$0xff] %vm1433_vm2, %v4539_v32 }
 0x6d7   :  { %v4543_v31 = vpop.f32.mrb[48].mxu1 }
 0x6d8   :  { %4728 = vst [vmem:[%s8978_s5 + $0x180] sm:$0xff] %v4543_v31  ;;  %v4545_v11 = vpop.f32.mrb[49].mxu1 }
 0x6d9   :  { %4729 = vst.msk [vmem:[%s8978_s5 + $0x188] sm:$0xff] %vm1433_vm2, %v4545_v11  ;;  %v4547_v46 = vpop.f32.mrb[50].mxu1 }
 0x6da   :  { %4730 = vst [vmem:[%s8978_s5 + $0x190] sm:$0xff] %v4547_v46  ;;  %v4549_v10 = vpop.f32.mrb[51].mxu1 }
 0x6db   :  { %4731 = vst.msk [vmem:[%s8978_s5 + $0x198] sm:$0xff] %vm1433_vm2, %v4549_v10 }
 0x6df   :  { %v4553_v37 = vpop.f32.mrb[52].mxu1 }
 0x6e0   :  { %4732 = vst [vmem:[%s8978_s5 + $0x1a0] sm:$0xff] %v4553_v37  ;;  %v4555_v34 = vpop.f32.mrb[53].mxu1 }
 0x6e1   :  { %4733 = vst.msk [vmem:[%s8978_s5 + $0x1a8] sm:$0xff] %vm1433_vm2, %v4555_v34  ;;  %v4557_v8 = vpop.f32.mrb[54].mxu1 }
 0x6e2   :  { %4734 = vst [vmem:[%s8978_s5 + $0x1b0] sm:$0xff] %v4557_v8  ;;  %v4559_v61 = vpop.f32.mrb[55].mxu1 }
 0x6e3   :  { %4735 = vst.msk [vmem:[%s8978_s5 + $0x1b8] sm:$0xff] %vm1433_vm2, %v4559_v61 }
 0x6e7   :  { %v4563_v51 = vpop.f32.mrb[56].mxu1 }
 0x6e8   :  { %4736 = vst [vmem:[%s8978_s5 + $0x1c0] sm:$0xff] %v4563_v51  ;;  %v4565_v25 = vpop.f32.mrb[57].mxu1 }
 0x6e9   :  { %4737 = vst.msk [vmem:[%s8978_s5 + $0x1c8] sm:$0xff] %vm1433_vm2, %v4565_v25  ;;  %v4567_v57 = vpop.f32.mrb[58].mxu1 }
 0x6ea   :  { %4738 = vst [vmem:[%s8978_s5 + $0x1d0] sm:$0xff] %v4567_v57  ;;  %v4569_v3 = vpop.f32.mrb[59].mxu1 }
 0x6eb   :  { %4739 = vst.msk [vmem:[%s8978_s5 + $0x1d8] sm:$0xff] %vm1433_vm2, %v4569_v3 }
 0x6ef   :  { %v4573_v13 = vpop.f32.mrb[60].mxu1 }
 0x6f0   :  { %4740 = vst [vmem:[%s8978_s5 + $0x1e0] sm:$0xff] %v4573_v13  ;;  %v4575_v19 = vpop.f32.mrb[61].mxu1 }
 0x6f1   :  { %4741 = vst.msk [vmem:[%s8978_s5 + $0x1e8] sm:$0xff] %vm1433_vm2, %v4575_v19  ;;  %v4577_v54 = vpop.f32.mrb[62].mxu1 }
 0x6f2   :  { %4742 = vst [vmem:[%s8978_s5 + $0x1f0] sm:$0xff] %v4577_v54  ;;  %v4579_v56 = vpop.f32.mrb[63].mxu1 }
 0x6f3   :  { %4743 = vst.msk [vmem:[%s8978_s5 + $0x1f8] sm:$0xff] %vm1433_vm2, %v4579_v56 }
 0x6f7   :  { %v4583_v20 = vpop.f32.mrb[64].mxu1 }
 0x6f8   :  { %4744 = vst [vmem:[%s8978_s5 + $0x200] sm:$0xff] %v4583_v20  ;;  %v4585_v0 = vpop.f32.mrb[65].mxu1 }
 0x6f9   :  { %4745 = vst.msk [vmem:[%s8978_s5 + $0x208] sm:$0xff] %vm1433_vm2, %v4585_v0  ;;  %v4587_v42 = vpop.f32.mrb[66].mxu1 }
 0x6fa   :  { %4746 = vst [vmem:[%s8978_s5 + $0x210] sm:$0xff] %v4587_v42  ;;  %v4589_v58 = vpop.f32.mrb[67].mxu1 }
 0x6fb   :  { %4747 = vst.msk [vmem:[%s8978_s5 + $0x218] sm:$0xff] %vm1433_vm2, %v4589_v58 }
 0x6ff   :  { %v4593_v53 = vpop.f32.mrb[68].mxu1 }
 0x700   :  { %4748 = vst [vmem:[%s8978_s5 + $0x220] sm:$0xff] %v4593_v53  ;;  %v4595_v15 = vpop.f32.mrb[69].mxu1 }
 0x701   :  { %4749 = vst.msk [vmem:[%s8978_s5 + $0x228] sm:$0xff] %vm1433_vm2, %v4595_v15  ;;  %v4597_v22 = vpop.f32.mrb[70].mxu1 }
 0x702   :  { %4750 = vst [vmem:[%s8978_s5 + $0x230] sm:$0xff] %v4597_v22  ;;  %v4599_v48 = vpop.f32.mrb[71].mxu1 }
 0x703   :  { %4751 = vst.msk [vmem:[%s8978_s5 + $0x238] sm:$0xff] %vm1433_vm2, %v4599_v48 }
 0x707   :  { %v4603_v33 = vpop.f32.mrb[72].mxu1 }
 0x708   :  { %4752 = vst [vmem:[%s8978_s5 + $0x240] sm:$0xff] %v4603_v33  ;;  %v4605_v27 = vpop.f32.mrb[73].mxu1 }
 0x709   :  { %4753 = vst.msk [vmem:[%s8978_s5 + $0x248] sm:$0xff] %vm1433_vm2, %v4605_v27  ;;  %v4607_v12 = vpop.f32.mrb[74].mxu1 }
 0x70a   :  { %4754 = vst [vmem:[%s8978_s5 + $0x250] sm:$0xff] %v4607_v12  ;;  %v4609_v16 = vpop.f32.mrb[75].mxu1 }
 0x70b   :  { %4755 = vst.msk [vmem:[%s8978_s5 + $0x258] sm:$0xff] %vm1433_vm2, %v4609_v16 }
 0x70f   :  { %v4613_v30 = vpop.f32.mrb[76].mxu1 }
 0x710   :  { %4756 = vst [vmem:[%s8978_s5 + $0x260] sm:$0xff] %v4613_v30  ;;  %v4615_v50 = vpop.f32.mrb[77].mxu1 }
 0x711   :  { %4757 = vst.msk [vmem:[%s8978_s5 + $0x268] sm:$0xff] %vm1433_vm2, %v4615_v50  ;;  %v4617_v62 = vpop.f32.mrb[78].mxu1 }
 0x712   :  { %4758 = vst [vmem:[%s8978_s5 + $0x270] sm:$0xff] %v4617_v62  ;;  %v4619_v28 = vpop.f32.mrb[79].mxu1 }
 0x713   :  { %4759 = vst.msk [vmem:[%s8978_s5 + $0x278] sm:$0xff] %vm1433_vm2, %v4619_v28 }
 0x717   :  { %v4623_v24 = vpop.f32.mrb[80].mxu1 }
 0x718   :  { %4760 = vst [vmem:[%s8978_s5 + $0x280] sm:$0xff] %v4623_v24  ;;  %v4625_v26 = vpop.f32.mrb[81].mxu1 }
 0x719   :  { %4761 = vst.msk [vmem:[%s8978_s5 + $0x288] sm:$0xff] %vm1433_vm2, %v4625_v26  ;;  %v4627_v17 = vpop.f32.mrb[82].mxu1 }
 0x71a   :  { %4762 = vst [vmem:[%s8978_s5 + $0x290] sm:$0xff] %v4627_v17  ;;  %v4629_v29 = vpop.f32.mrb[83].mxu1 }
 0x71b   :  { %4763 = vst.msk [vmem:[%s8978_s5 + $0x298] sm:$0xff] %vm1433_vm2, %v4629_v29 }
 0x71f   :  { %v4633_v14 = vpop.f32.mrb[84].mxu1 }
 0x720   :  { %4764 = vst [vmem:[%s8978_s5 + $0x2a0] sm:$0xff] %v4633_v14  ;;  %v4635_v7 = vpop.f32.mrb[85].mxu1 }
 0x721   :  { %4765 = vst.msk [vmem:[%s8978_s5 + $0x2a8] sm:$0xff] %vm1433_vm2, %v4635_v7  ;;  %v4637_v59 = vpop.f32.mrb[86].mxu1 }
 0x722   :  { %4766 = vst [vmem:[%s8978_s5 + $0x2b0] sm:$0xff] %v4637_v59  ;;  %v4639_v21 = vpop.f32.mrb[87].mxu1 }
 0x723   :  { %4767 = vst.msk [vmem:[%s8978_s5 + $0x2b8] sm:$0xff] %vm1433_vm2, %v4639_v21 }
 0x727   :  { %v4643_v9 = vpop.f32.mrb[88].mxu1 }
 0x728   :  { %4768 = vst [vmem:[%s8978_s5 + $0x2c0] sm:$0xff] %v4643_v9  ;;  %v4645_v45 = vpop.f32.mrb[89].mxu1 }
 0x729   :  { %4769 = vst.msk [vmem:[%s8978_s5 + $0x2c8] sm:$0xff] %vm1433_vm2, %v4645_v45  ;;  %v4647_v55 = vpop.f32.mrb[90].mxu1 }
 0x72a   :  { %4770 = vst [vmem:[%s8978_s5 + $0x2d0] sm:$0xff] %v4647_v55  ;;  %v4649_v44 = vpop.f32.mrb[91].mxu1 }
 0x72b   :  { %4771 = vst.msk [vmem:[%s8978_s5 + $0x2d8] sm:$0xff] %vm1433_vm2, %v4649_v44 }
 0x72f   :  { %v4653_v2 = vpop.f32.mrb[92].mxu1 }
 0x730   :  { %4772 = vst [vmem:[%s8978_s5 + $0x2e0] sm:$0xff] %v4653_v2  ;;  %v4655_v41 = vpop.f32.mrb[93].mxu1 }
 0x731   :  { %4773 = vst.msk [vmem:[%s8978_s5 + $0x2e8] sm:$0xff] %vm1433_vm2, %v4655_v41  ;;  %v4657_v18 = vpop.f32.mrb[94].mxu1 }
 0x732   :  { %4774 = vst [vmem:[%s8978_s5 + $0x2f0] sm:$0xff] %v4657_v18  ;;  %v4659_v40 = vpop.f32.mrb[95].mxu1 }
 0x733   :  { %4775 = vst.msk [vmem:[%s8978_s5 + $0x2f8] sm:$0xff] %vm1433_vm2, %v4659_v40 }
 0x737   :  { %v4663_v23 = vpop.f32.mrb[96].mxu1 }
 0x738   :  { %4776 = vst [vmem:[%s8978_s5 + $0x300] sm:$0xff] %v4663_v23  ;;  %v4665_v36 = vpop.f32.mrb[97].mxu1 }
 0x739   :  { %4777 = vst.msk [vmem:[%s8978_s5 + $0x308] sm:$0xff] %vm1433_vm2, %v4665_v36  ;;  %v4667_v5 = vpop.f32.mrb[98].mxu1 }
 0x73a   :  { %4778 = vst [vmem:[%s8978_s5 + $0x310] sm:$0xff] %v4667_v5  ;;  %v4669_v43 = vpop.f32.mrb[99].mxu1 }
 0x73b   :  { %4779 = vst.msk [vmem:[%s8978_s5 + $0x318] sm:$0xff] %vm1433_vm2, %v4669_v43 }
 0x73f   :  { %v4673_v4 = vpop.f32.mrb[100].mxu1 }
 0x740   :  { %4780 = vst [vmem:[%s8978_s5 + $0x320] sm:$0xff] %v4673_v4  ;;  %v4675_v52 = vpop.f32.mrb[101].mxu1 }
 0x741   :  { %4781 = vst.msk [vmem:[%s8978_s5 + $0x328] sm:$0xff] %vm1433_vm2, %v4675_v52  ;;  %v4677_v38 = vpop.f32.mrb[102].mxu1 }
 0x742   :  { %v4678_v47 = vpop.f32.mrb[103].mxu1 }

</bundles_post_ra>
